<compile_context>
chip_gen: v6e
topology: v6e:2x2x1
jax: 0.10.0
libtpu: 0.0.40
codegen_flags: <defaults>
</compile_context>

<pallas_src>
import functools

import jax
import jax.numpy as jnp
from jax.experimental import pallas as pl
from jax.experimental.pallas import tpu as pltpu

EPS = 1e-5  # torch.nn.LayerNorm default


def _layernorm(h, gamma, beta):
    # One-pass statistics (biased variance, like torch.nn.LayerNorm), clamped at 0.
    mu = jnp.mean(h, axis=-1, keepdims=True)
    msq = jnp.mean(h * h, axis=-1, keepdims=True)
    var = jnp.maximum(msq - mu * mu, 0.0)
    return (h - mu) * jax.lax.rsqrt(var + EPS) * gamma + beta


def _make_kernel(sd_dim, dims, out_dim):
    """Fused MLP kernel. Residual-add decisions are static (shape based).

    Kernel ref order:
      sd (tm, sd_dim) bf16 | e (tm, 1) f32 | w0sd (sd_dim, d0) bf16 |
      [wa_i, wb_i] bf16 per middle block | [wf bf16 iff out_dim != 1] |
      vecs (n_vecs, maxw) f32 | out (tm, out_dim) f32
    """
    n_mid = len(dims) - 1
    in_dim = sd_dim + 1
    use_mxu_final = out_dim != 1

    def kernel(*refs):
        out_ref = refs[-1]
        vecs_ref = refs[-2]
        sd_ref, e_ref, w0_ref = refs[0], refs[1], refs[2]
        w_mid = refs[3:3 + 2 * n_mid]
        wf_ref = refs[3 + 2 * n_mid] if use_mxu_final else None

        vecs = vecs_ref[...]  # (n_vecs, maxw) f32, resident

        def vrow(r, width):
            # Static slice of the packed small-vector table -> (1, width) f32.
            return vecs[r:r + 1, :width]

        d0 = dims[0]

        # ---- block 0: split-weight Linear (fused concat) -> LayerNorm -> (+res) -> ReLU ----
        # src||dest share one K=sd_dim MXU pass; edge scalar column is a VPU broadcast mul.
        h = jnp.dot(sd_ref[...], w0_ref[...], preferred_element_type=jnp.float32)
        h = h + e_ref[...] * vrow(0, d0)          # edge column of W0
        h = h + vrow(1, d0)                        # b0
        h = _layernorm(h, vrow(2, d0), vrow(3, d0))
        if in_dim == d0:
            # Static shape match -> residual is the (virtually) concatenated input.
            # NOTE: residual uses the bf16-rounded gathered inputs (documented divergence).
            res = jnp.concatenate([sd_ref[...].astype(jnp.float32), e_ref[...]], axis=-1)
            h = h + res
        x = jnp.maximum(h, 0.0)

        # ---- middle blocks: Linear -> ReLU -> Linear -> LayerNorm -> (+res) -> ReLU ----
        r = 4
        for i in range(n_mid):
            wa_ref, wb_ref = w_mid[2 * i], w_mid[2 * i + 1]
            d = dims[i + 1]
            res = x
            h = jnp.dot(x.astype(jnp.bfloat16), wa_ref[...],
                        preferred_element_type=jnp.float32) + vrow(r, d)
            h = jnp.maximum(h, 0.0)
            h = jnp.dot(h.astype(jnp.bfloat16), wb_ref[...],
                        preferred_element_type=jnp.float32) + vrow(r + 1, d)
            h = _layernorm(h, vrow(r + 2, d), vrow(r + 3, d))
            if dims[i] == dims[i + 1]:
                h = h + res
            x = jnp.maximum(h, 0.0)
            r += 4

        # ---- final block: Linear -> Identity -> (+res) -> Identity ----
        if out_dim == 1:
            # VPU multiply + XLU lane reduce instead of an N=1 MXU dot.
            wf = vrow(r, dims[-1])                 # (1, dims[-1]) f32
            bf = vecs[r + 1:r + 2, 0:1]            # (1, 1) f32
            h = jnp.sum(x * wf, axis=-1, keepdims=True) + bf
        else:
            h = jnp.dot(x.astype(jnp.bfloat16), wf_ref[...],
                        preferred_element_type=jnp.float32) + vrow(r, out_dim)
        if dims[-1] == out_dim:
            h = h + x
        out_ref[...] = h.astype(out_ref.dtype)

    return kernel


def init_params(key, in_dim, dims, out_dim):
    """Torch-layout params: Linear weights stored (fan_in, fan_out), biases (1, fan_out)."""
    def linear(k, fi, fo):
        k1, k2 = jax.random.split(k)
        bound = 1.0 / float(fi) ** 0.5
        w = jax.random.uniform(k1, (fi, fo), jnp.float32, -bound, bound)
        b = jax.random.uniform(k2, (1, fo), jnp.float32, -bound, bound)
        return w, b

    n_lin = 1 + 2 * (len(dims) - 1) + 1
    keys = jax.random.split(key, n_lin)
    ki = 0
    params = []
    w, b = linear(keys[ki], in_dim, dims[0]); ki += 1
    params += [w, b, jnp.ones((1, dims[0]), jnp.float32), jnp.zeros((1, dims[0]), jnp.float32)]
    for i in range(len(dims) - 1):
        wa, ba = linear(keys[ki], dims[i], dims[i + 1]); ki += 1
        wb, bb = linear(keys[ki], dims[i + 1], dims[i + 1]); ki += 1
        params += [wa, ba, wb, bb,
                   jnp.ones((1, dims[i + 1]), jnp.float32),
                   jnp.zeros((1, dims[i + 1]), jnp.float32)]
    wf, bf_ = linear(keys[ki], dims[-1], out_dim); ki += 1
    params += [wf, bf_]
    return params


def prepare_params(params, sd_dim, dims, out_dim):
    """Kernel-ready params.

    Returns (weights, vecs):
      weights : tuple of bf16 matmul weights (W0[:sd_dim], wa_i, wb_i, [wf if out_dim != 1])
      vecs    : one packed (n_vecs, maxw) f32 array of all small row vectors
                [w0_edge, b0, g0, be0, (ba, bb, g, be)*, wf_row?, bf]
    """
    n_mid = len(dims) - 1
    w0, b0, g0, be0 = params[0:4]
    weights = [w0[:sd_dim, :].astype(jnp.bfloat16)]
    vec_rows = [w0[sd_dim:sd_dim + 1, :], b0, g0, be0]
    idx = 4
    for _ in range(n_mid):
        wa, ba, wb, bb, g, be = params[idx:idx + 6]; idx += 6
        weights += [wa.astype(jnp.bfloat16), wb.astype(jnp.bfloat16)]
        vec_rows += [ba, bb, g, be]
    wf, bf_ = params[idx:idx + 2]
    if out_dim == 1:
        vec_rows += [wf.T, bf_]                 # final weight as a row + scalar bias
    else:
        weights += [wf.astype(jnp.bfloat16)]
        vec_rows += [bf_]
    maxw = max(int(r.shape[1]) for r in vec_rows)
    vecs = jnp.concatenate(
        [jnp.pad(r.astype(jnp.float32), ((0, 0), (0, maxw - r.shape[1]))) for r in vec_rows],
        axis=0)
    return tuple(weights), vecs


def _pick_tm(n, min_tiles=4, tm_max=2048):
    """Row-tile size: at least `min_tiles` grid steps (keeps both v7x TensorCores busy via
    the 'parallel' axis), rounded up to the sublane quantum, capped so large E still
    amortizes the ~0.35 us per-grid-step overhead. VMEM is never the constraint here."""
    tm = -(-n // min_tiles)        # cdiv
    tm = -(-tm // 8) * 8           # round up to 8
    return int(max(8, min(tm_max, tm)))


@functools.partial(jax.jit, static_argnames=("dims", "out_dim", "tm"))
def edge_model_forward(sd, e, weights, vecs, *, dims, out_dim, tm):
    n, sd_dim = sd.shape
    n_blocks = pl.cdiv(n, tm)
    n_pad = n_blocks * tm
    if n_pad != n:
        sd = jnp.pad(sd, ((0, n_pad - n), (0, 0)))
        e = jnp.pad(e, ((0, n_pad - n), (0, 0)))

    kernel = _make_kernel(sd_dim, dims, out_dim)

    in_specs = [
        pl.BlockSpec((tm, sd_dim), lambda i: (i, 0)),   # merged src||dest, bf16
        pl.BlockSpec((tm, 1), lambda i: (i, 0)),        # edge scalar column, f32
    ]
    # Resident params: constant index_map -> fetched once, reused across row tiles.
    in_specs += [pl.BlockSpec(w.shape, lambda i: (0, 0)) for w in weights]
    in_specs += [pl.BlockSpec(vecs.shape, lambda i: (0, 0))]

    out = pl.pallas_call(
        kernel,
        out_shape=jax.ShapeDtypeStruct((n_pad, out_dim), jnp.float32),
        grid=(n_blocks,),
        in_specs=in_specs,
        out_specs=pl.BlockSpec((tm, out_dim), lambda i: (i, 0)),
        compiler_params=pltpu.CompilerParams(
            dimension_semantics=("parallel",),  # shards row tiles across TCs on v7x
        ),
    )(sd, e, *weights, vecs)
    return out[:n]


def residual_block_edge_head(data, edge_index, edge_attr, weights, vecs,
                             *, dims, out_dim, tm=None):
    # ResidualBlock.forward tail (gather + EdgeModel + standardize + abs).
    n_edges = int(edge_index.shape[1])
    if tm is None:
        tm = _pick_tm(n_edges)
    # Single merged gather: src||dest as ONE (E, 2*dim) bf16 operand (one HBM stream,
    # one K=2*dim MXU pass in block 0 instead of two K=dim passes).
    sd = data.astype(jnp.bfloat16)[edge_index.T].reshape(n_edges, -1)
    e = edge_attr.reshape(-1, 1).astype(jnp.float32)
    out = edge_model_forward(sd, e, weights, vecs, dims=dims, out_dim=out_dim, tm=tm)
    out = (out - out.mean()) / jnp.std(out, ddof=1)   # torch .std() is unbiased
    return jnp.abs(out)


def edge_model_reference(sd, e, params, sd_dim, dims, out_dim):
    """Pure-JAX reference mirroring the kernel numerics exactly (bf16 matmul operands,
    f32 elementwise, split block-0 weight, VPU final reduce for out_dim == 1)."""
    def bdot(a, w):
        return jnp.dot(a.astype(jnp.bfloat16), w.astype(jnp.bfloat16),
                       preferred_element_type=jnp.float32)

    in_dim = sd_dim + 1
    w0, b0, g0, be0 = params[0:4]
    h = bdot(sd, w0[:sd_dim]) + e * w0[sd_dim:sd_dim + 1].astype(jnp.float32) + b0
    h = _layernorm(h, g0, be0)
    if in_dim == dims[0]:
        h = h + jnp.concatenate([sd.astype(jnp.float32), e], axis=1)
    x = jnp.maximum(h, 0.0)
    idx = 4
    for i in range(len(dims) - 1):
        wa, ba, wb, bb, g, be = params[idx:idx + 6]; idx += 6
        res = x
        h = jnp.maximum(bdot(x, wa) + ba, 0.0)
        h = bdot(h, wb) + bb
        h = _layernorm(h, g, be)
        if dims[i] == dims[i + 1]:
            h = h + res
        x = jnp.maximum(h, 0.0)
    wf, bf_ = params[idx:idx + 2]
    if out_dim == 1:
        h = jnp.sum(x * wf.astype(jnp.float32).T, axis=-1, keepdims=True) + bf_
    else:
        h = bdot(x, wf) + bf_
    if dims[-1] == out_dim:
        h = h + x
    return h


if __name__ == "__main__":
    # ResidualBlock(dim=(32, 32), ...) -> EdgeModel(in_dim=2*32+1, dims=dim[::-1], out_dim=1)
    DIM = (32, 32)
    DIMS = tuple(DIM[::-1])            # (32, 32): middle-block residual fires
    IN_DIM = DIM[-1] * 2 + 1           # 65
    SD_DIM = DIM[-1] * 2               # 64 (merged src||dest)
    OUT_D = 1
    NUM_NODES, NUM_EDGES = 200, 1000   # deliberately not a multiple of tm

    key = jax.random.PRNGKey(0)
    k_x, k_ei, k_ea, k_p = jax.random.split(key, 4)
    data = jax.random.normal(k_x, (NUM_NODES, DIM[-1]), jnp.float32)   # stand-in node embeddings
    edge_index = jax.random.randint(k_ei, (2, NUM_EDGES), 0, NUM_NODES)
    edge_attr = jax.random.normal(k_ea, (NUM_EDGES,), jnp.float32)

    params = init_params(k_p, IN_DIM, DIMS, OUT_D)
    weights, vecs = prepare_params(params, sd_dim=SD_DIM, dims=DIMS, out_dim=OUT_D)

    out = residual_block_edge_head(data, edge_index, edge_attr, weights, vecs,
                                   dims=DIMS, out_dim=OUT_D)
    out = jax.block_until_ready(out)
    assert out.shape == (NUM_EDGES, OUT_D)

    # Reference (same bf16 matmul operands / f32 elementwise path as the kernel).
    sd_in = data.astype(jnp.bfloat16)[edge_index.T].reshape(NUM_EDGES, -1)
    e_col = edge_attr.reshape(-1, 1).astype(jnp.float32)
    ref = edge_model_reference(sd_in, e_col, params, SD_DIM, DIMS, OUT_D)
    ref = (ref - ref.mean()) / jnp.std(ref, ddof=1)
    ref = jnp.abs(ref)

    assert jnp.allclose(out, ref, atol=3e-3, rtol=3e-3), float(jnp.max(jnp.abs(out - ref)))

    print("KERNEL_OK")
</pallas_src>

<mosaic_0001>
module attributes {stable_mosaic.version = 11 : i64} {
  func.func @kernel(%arg0: i32, %arg1: memref<256x64xbf16, #tpu.memory_space<vmem>>, %arg2: memref<256x1xf32, #tpu.memory_space<vmem>>, %arg3: memref<64x32xbf16, #tpu.memory_space<vmem>>, %arg4: memref<32x32xbf16, #tpu.memory_space<vmem>>, %arg5: memref<32x32xbf16, #tpu.memory_space<vmem>>, %arg6: memref<10x32xf32, #tpu.memory_space<vmem>>, %arg7: memref<256x1xf32, #tpu.memory_space<vmem>>) attributes {dimension_semantics = [#tpu.dimension_semantics<parallel>], iteration_bounds = array<i64: 4>, scalar_prefetch = 0 : i64, scratch_operands = 0 : i64, tpu.core_type = #tpu.core_type<tc>, window_params = [{transform_indices = @transform_0, window_bounds = array<i64: 256, 64>}, {transform_indices = @transform_1, window_bounds = array<i64: 256, 1>}, {pipeline_mode = #tpu.pipeline_mode<synchronous>, transform_indices = @transform_2, window_bounds = array<i64: 64, 32>}, {pipeline_mode = #tpu.pipeline_mode<synchronous>, transform_indices = @transform_3, window_bounds = array<i64: 32, 32>}, {pipeline_mode = #tpu.pipeline_mode<synchronous>, transform_indices = @transform_4, window_bounds = array<i64: 32, 32>}, {pipeline_mode = #tpu.pipeline_mode<synchronous>, transform_indices = @transform_5, window_bounds = array<i64: 10, 32>}, {transform_indices = @transform_6, window_bounds = array<i64: 256, 1>}]} {
    %c0 = arith.constant 0 : index
    %c0_0 = arith.constant 0 : index
    %0 = vector.load %arg6[%c0, %c0_0] : memref<10x32xf32, #tpu.memory_space<vmem>>, vector<10x32xf32>
    %c0_1 = arith.constant 0 : index
    %c0_2 = arith.constant 0 : index
    %1 = vector.load %arg1[%c0_1, %c0_2] : memref<256x64xbf16, #tpu.memory_space<vmem>>, vector<256x64xbf16>
    %c0_3 = arith.constant 0 : index
    %c0_4 = arith.constant 0 : index
    %2 = vector.load %arg3[%c0_3, %c0_4] : memref<64x32xbf16, #tpu.memory_space<vmem>>, vector<64x32xbf16>
    %cst = arith.constant dense<0.000000e+00> : vector<256x32xf32>
    %3 = tpu.matmul %1, %2, %cst {dimension_numbers = #tpu.dot_dimension_numbers<[1], [0], [0], [1], [0, 0, 1, 1], [], []>} : vector<256x64xbf16>, vector<64x32xbf16>, vector<256x32xf32> -> vector<256x32xf32>
    %c0_5 = arith.constant 0 : index
    %c0_6 = arith.constant 0 : index
    %4 = vector.load %arg2[%c0_5, %c0_6] : memref<256x1xf32, #tpu.memory_space<vmem>>, vector<256x1xf32>
    %5 = vector.extract_strided_slice %0 {offsets = [0, 0], sizes = [1, 32], strides = [1, 1]} : vector<10x32xf32> to vector<1x32xf32>
    %6 = vector.broadcast %4 : vector<256x1xf32> to vector<256x32xf32>
    %7 = vector.broadcast %5 : vector<1x32xf32> to vector<256x32xf32>
    %8 = arith.mulf %6, %7 : vector<256x32xf32>
    %9 = arith.addf %3, %8 : vector<256x32xf32>
    %10 = vector.extract_strided_slice %0 {offsets = [1, 0], sizes = [1, 32], strides = [1, 1]} : vector<10x32xf32> to vector<1x32xf32>
    %11 = vector.broadcast %10 : vector<1x32xf32> to vector<256x32xf32>
    %12 = arith.addf %9, %11 : vector<256x32xf32>
    %13 = vector.extract_strided_slice %0 {offsets = [2, 0], sizes = [1, 32], strides = [1, 1]} : vector<10x32xf32> to vector<1x32xf32>
    %14 = vector.extract_strided_slice %0 {offsets = [3, 0], sizes = [1, 32], strides = [1, 1]} : vector<10x32xf32> to vector<1x32xf32>
    %cst_7 = arith.constant dense<0.000000e+00> : vector<256xf32>
    %15 = vector.multi_reduction <add>, %12, %cst_7 [1] : vector<256x32xf32> to vector<256xf32>
    %16 = vector.shape_cast %15 : vector<256xf32> to vector<256x1xf32>
    %cst_8 = arith.constant 3.200000e+01 : f32
    %17 = vector.broadcast %cst_8 : f32 to vector<256x1xf32>
    %18 = arith.divf %16, %17 : vector<256x1xf32>
    %19 = arith.mulf %12, %12 : vector<256x32xf32>
    %cst_9 = arith.constant dense<0.000000e+00> : vector<256xf32>
    %20 = vector.multi_reduction <add>, %19, %cst_9 [1] : vector<256x32xf32> to vector<256xf32>
    %21 = vector.shape_cast %20 : vector<256xf32> to vector<256x1xf32>
    %cst_10 = arith.constant 3.200000e+01 : f32
    %22 = vector.broadcast %cst_10 : f32 to vector<256x1xf32>
    %23 = arith.divf %21, %22 : vector<256x1xf32>
    %24 = arith.mulf %18, %18 : vector<256x1xf32>
    %25 = arith.subf %23, %24 : vector<256x1xf32>
    %cst_11 = arith.constant 0.000000e+00 : f32
    %26 = vector.broadcast %cst_11 : f32 to vector<256x1xf32>
    %27 = arith.maximumf %25, %26 : vector<256x1xf32>
    %28 = vector.broadcast %18 : vector<256x1xf32> to vector<256x32xf32>
    %29 = arith.subf %12, %28 : vector<256x32xf32>
    %cst_12 = arith.constant 9.99999974E-6 : f32
    %30 = vector.broadcast %cst_12 : f32 to vector<256x1xf32>
    %31 = arith.addf %27, %30 : vector<256x1xf32>
    %32 = math.rsqrt %31 : vector<256x1xf32>
    %33 = vector.broadcast %32 : vector<256x1xf32> to vector<256x32xf32>
    %34 = arith.mulf %29, %33 : vector<256x32xf32>
    %35 = vector.broadcast %13 : vector<1x32xf32> to vector<256x32xf32>
    %36 = arith.mulf %34, %35 : vector<256x32xf32>
    %37 = vector.broadcast %14 : vector<1x32xf32> to vector<256x32xf32>
    %38 = arith.addf %36, %37 : vector<256x32xf32>
    %cst_13 = arith.constant 0.000000e+00 : f32
    %39 = vector.broadcast %cst_13 : f32 to vector<256x32xf32>
    %40 = arith.maximumf %38, %39 : vector<256x32xf32>
    %41 = arith.truncf %40 : vector<256x32xf32> to vector<256x32xbf16>
    %c0_14 = arith.constant 0 : index
    %c0_15 = arith.constant 0 : index
    %42 = vector.load %arg4[%c0_14, %c0_15] : memref<32x32xbf16, #tpu.memory_space<vmem>>, vector<32x32xbf16>
    %cst_16 = arith.constant dense<0.000000e+00> : vector<256x32xf32>
    %43 = tpu.matmul %41, %42, %cst_16 {dimension_numbers = #tpu.dot_dimension_numbers<[1], [0], [0], [1], [0, 0, 1, 1], [], []>} : vector<256x32xbf16>, vector<32x32xbf16>, vector<256x32xf32> -> vector<256x32xf32>
    %44 = vector.extract_strided_slice %0 {offsets = [4, 0], sizes = [1, 32], strides = [1, 1]} : vector<10x32xf32> to vector<1x32xf32>
    %45 = vector.broadcast %44 : vector<1x32xf32> to vector<256x32xf32>
    %46 = arith.addf %43, %45 : vector<256x32xf32>
    %cst_17 = arith.constant 0.000000e+00 : f32
    %47 = vector.broadcast %cst_17 : f32 to vector<256x32xf32>
    %48 = arith.maximumf %46, %47 : vector<256x32xf32>
    %49 = arith.truncf %48 : vector<256x32xf32> to vector<256x32xbf16>
    %c0_18 = arith.constant 0 : index
    %c0_19 = arith.constant 0 : index
    %50 = vector.load %arg5[%c0_18, %c0_19] : memref<32x32xbf16, #tpu.memory_space<vmem>>, vector<32x32xbf16>
    %cst_20 = arith.constant dense<0.000000e+00> : vector<256x32xf32>
    %51 = tpu.matmul %49, %50, %cst_20 {dimension_numbers = #tpu.dot_dimension_numbers<[1], [0], [0], [1], [0, 0, 1, 1], [], []>} : vector<256x32xbf16>, vector<32x32xbf16>, vector<256x32xf32> -> vector<256x32xf32>
    %52 = vector.extract_strided_slice %0 {offsets = [5, 0], sizes = [1, 32], strides = [1, 1]} : vector<10x32xf32> to vector<1x32xf32>
    %53 = vector.broadcast %52 : vector<1x32xf32> to vector<256x32xf32>
    %54 = arith.addf %51, %53 : vector<256x32xf32>
    %55 = vector.extract_strided_slice %0 {offsets = [6, 0], sizes = [1, 32], strides = [1, 1]} : vector<10x32xf32> to vector<1x32xf32>
    %56 = vector.extract_strided_slice %0 {offsets = [7, 0], sizes = [1, 32], strides = [1, 1]} : vector<10x32xf32> to vector<1x32xf32>
    %cst_21 = arith.constant dense<0.000000e+00> : vector<256xf32>
    %57 = vector.multi_reduction <add>, %54, %cst_21 [1] : vector<256x32xf32> to vector<256xf32>
    %58 = vector.shape_cast %57 : vector<256xf32> to vector<256x1xf32>
    %cst_22 = arith.constant 3.200000e+01 : f32
    %59 = vector.broadcast %cst_22 : f32 to vector<256x1xf32>
    %60 = arith.divf %58, %59 : vector<256x1xf32>
    %61 = arith.mulf %54, %54 : vector<256x32xf32>
    %cst_23 = arith.constant dense<0.000000e+00> : vector<256xf32>
    %62 = vector.multi_reduction <add>, %61, %cst_23 [1] : vector<256x32xf32> to vector<256xf32>
    %63 = vector.shape_cast %62 : vector<256xf32> to vector<256x1xf32>
    %cst_24 = arith.constant 3.200000e+01 : f32
    %64 = vector.broadcast %cst_24 : f32 to vector<256x1xf32>
    %65 = arith.divf %63, %64 : vector<256x1xf32>
    %66 = arith.mulf %60, %60 : vector<256x1xf32>
    %67 = arith.subf %65, %66 : vector<256x1xf32>
    %cst_25 = arith.constant 0.000000e+00 : f32
    %68 = vector.broadcast %cst_25 : f32 to vector<256x1xf32>
    %69 = arith.maximumf %67, %68 : vector<256x1xf32>
    %70 = vector.broadcast %60 : vector<256x1xf32> to vector<256x32xf32>
    %71 = arith.subf %54, %70 : vector<256x32xf32>
    %cst_26 = arith.constant 9.99999974E-6 : f32
    %72 = vector.broadcast %cst_26 : f32 to vector<256x1xf32>
    %73 = arith.addf %69, %72 : vector<256x1xf32>
    %74 = math.rsqrt %73 : vector<256x1xf32>
    %75 = vector.broadcast %74 : vector<256x1xf32> to vector<256x32xf32>
    %76 = arith.mulf %71, %75 : vector<256x32xf32>
    %77 = vector.broadcast %55 : vector<1x32xf32> to vector<256x32xf32>
    %78 = arith.mulf %76, %77 : vector<256x32xf32>
    %79 = vector.broadcast %56 : vector<1x32xf32> to vector<256x32xf32>
    %80 = arith.addf %78, %79 : vector<256x32xf32>
    %81 = arith.addf %80, %40 : vector<256x32xf32>
    %cst_27 = arith.constant 0.000000e+00 : f32
    %82 = vector.broadcast %cst_27 : f32 to vector<256x32xf32>
    %83 = arith.maximumf %81, %82 : vector<256x32xf32>
    %84 = vector.extract_strided_slice %0 {offsets = [8, 0], sizes = [1, 32], strides = [1, 1]} : vector<10x32xf32> to vector<1x32xf32>
    %85 = vector.extract_strided_slice %0 {offsets = [9, 0], sizes = [1, 1], strides = [1, 1]} : vector<10x32xf32> to vector<1x1xf32>
    %86 = vector.broadcast %84 : vector<1x32xf32> to vector<256x32xf32>
    %87 = arith.mulf %83, %86 : vector<256x32xf32>
    %cst_28 = arith.constant dense<0.000000e+00> : vector<256xf32>
    %88 = vector.multi_reduction <add>, %87, %cst_28 [1] : vector<256x32xf32> to vector<256xf32>
    %89 = vector.shape_cast %88 : vector<256xf32> to vector<256x1xf32>
    %90 = vector.broadcast %85 : vector<1x1xf32> to vector<256x1xf32>
    %91 = arith.addf %89, %90 : vector<256x1xf32>
    %c0_29 = arith.constant 0 : index
    %c0_30 = arith.constant 0 : index
    %92 = vector.load %arg7[%c0_29, %c0_30] : memref<256x1xf32, #tpu.memory_space<vmem>>, vector<256x1xf32>
    tpu.vector_store %arg7[%c0_29, %c0_30], %91 {strides = array<i32>} : memref<256x1xf32, #tpu.memory_space<vmem>>, vector<256x1xf32>,
    return
  }
  func.func @transform_0(%arg0: i32) -> (i32, i32) {
    %c0_i32 = arith.constant 0 : i32
    %c0_i32_0 = arith.constant 0 : i32
    return %arg0, %c0_i32 : i32, i32
  }
  func.func @transform_1(%arg0: i32) -> (i32, i32) {
    %c0_i32 = arith.constant 0 : i32
    %c0_i32_0 = arith.constant 0 : i32
    return %arg0, %c0_i32 : i32, i32
  }
  func.func @transform_2(%arg0: i32) -> (i32, i32) {
    %c0_i32 = arith.constant 0 : i32
    %c0_i32_0 = arith.constant 0 : i32
    %c0_i32_1 = arith.constant 0 : i32
    return %c0_i32, %c0_i32_0 : i32, i32
  }
  func.func @transform_3(%arg0: i32) -> (i32, i32) {
    %c0_i32 = arith.constant 0 : i32
    %c0_i32_0 = arith.constant 0 : i32
    %c0_i32_1 = arith.constant 0 : i32
    return %c0_i32, %c0_i32_0 : i32, i32
  }
  func.func @transform_4(%arg0: i32) -> (i32, i32) {
    %c0_i32 = arith.constant 0 : i32
    %c0_i32_0 = arith.constant 0 : i32
    %c0_i32_1 = arith.constant 0 : i32
    return %c0_i32, %c0_i32_0 : i32, i32
  }
  func.func @transform_5(%arg0: i32) -> (i32, i32) {
    %c0_i32 = arith.constant 0 : i32
    %c0_i32_0 = arith.constant 0 : i32
    %c0_i32_1 = arith.constant 0 : i32
    return %c0_i32, %c0_i32_0 : i32, i32
  }
  func.func @transform_6(%arg0: i32) -> (i32, i32) {
    %c0_i32 = arith.constant 0 : i32
    %c0_i32_0 = arith.constant 0 : i32
    return %arg0, %c0_i32 : i32, i32
  }
}

</mosaic_0001>

<bundles_post_ra>
// kernel: edge_model_forward.1
= control target key start
LH: loop header
LB: loop body
LE: loop exit
PB: predicated region body
PF: predicated region fallthrough
CT: control target
= control target key end

     0   :  { %s3421_s21 = smov 0   ;;  %s5165_s0 = inlined_call_operand.vmem [shape: bf16[1024,64], index: 0, kind: input, shape index: {}]   ;;  %s5166_s1 = inlined_call_operand.vmem [shape: f32[1024,1], index: 1, kind: input, shape index: {}]   ;;  %s5167_s2 = inlined_call_operand.vmem [shape: bf16[64,32], index: 2, kind: input, shape index: {}]   ;;  %s5168_s3 = inlined_call_operand.vmem [shape: bf16[32,32], index: 3, kind: input, shape index: {}]   ;;  %s5169_s4 = inlined_call_operand.vmem [shape: bf16[32,32], index: 4, kind: input, shape index: {}]   ;;  %s5170_s5 = inlined_call_operand.vmem [shape: f32[10,32], index: 5, kind: input, shape index: {}]   ;;  %s5171_s6 = inlined_call_operand.vmem [shape: f32[1024,1], index: 6, kind: output, shape index: {}]  }
   0x1 LB: > { %s2955_s22 = sadd.s32 4294967295, %s3383_s21   ;;  %p2959_p0 = scmp.ge.s32.totalorder %s3383_s21, 1  ;;  %s3383_s21 = sphi %s3421_s21, %s16_s21  }
   0x2   : > { %p224_p1 = scmp.lt.s32.totalorder %s3383_s21, 5 }
   0x4   : > { %p225_p2 = pnand %p2959_p0, %p224_p1 }
   0x6   : > { %228 = sbr.rel (%p225_p2) target bundleno = 1258 (0x4ea), region = 44 }
   0xb   : > { %v3223_v0 = vld [vmem:[%s5167_s2 + $0x18] sm:$0xff]   ;;  %s2960_s25 = sshll.u32 %s2955_s22, 5  ;;  %v3224_v1 = vld [vmem:[%s5167_s2 + $0x10] sm:$0xff]   ;;  %v3225_v2 = vld [vmem:[%s5167_s2 + $0x8] sm:$0xff]   ;;  %v3385_v3 = vmov 0   ;;  %vm652_vm0 = vcmask 523264   ;;  %v512_v60 = vlaneseq }
   0xc   : > { %p260_p3 = scmp.lt.s32.totalorder %s2960_s25, 127  ;;  %3096 = vmatprep.subr.bf16.mxu0 %v3223_v0  ;;  %3222 = vset.pattern.permute.xlu1 %v3385_v3  ;;  %v3226_v5 = vld [vmem:[%s5167_s2] sm:$0xff]   ;;  %vm898_vm1 = vcmask 261120   ;;  %vm2854_vm2 = vcmask 7168  }
   0xd   : > { %3097 = vmatpush3.bf16.msra.mxu0 %v3223_v0  ;;  %3221 = vset.pattern.permute.xlu0 %v3385_v3  ;;  %v3523_v62 = vshrl.u32 %v512_v60, 7 }
   0xe   : > { %s5331_s25 = smov (!%p260_p3, %s2960_s25), 127  ;;  %3098 = vmatprep.subr.bf16.mxu0 %v3224_v1 }
   0xf   : > { %s2961_s30 = sshll.u32 %s5331_s25, 2  ;;  %s2963_s7 = sshll.u32 %s5331_s25, 3  ;;  %v5176_v0 = vsub.s32 0, %v3523_v62 }
  0x10   : > { %s3445_s10 = scalar_lea.vmem %s5165_s0, %s2961_s30  ;;  %s3452_s13 = scalar_lea.vmem %s5166_s1, %s2963_s7 }
  0x11   : > { %3099 = vmatpush3.bf16.msra.mxu0 %v3224_v1  ;;  %v3227_v4 = vld [vmem:[%s3445_s10] sm:$0xff]   ;;  %v322_v6 = vld [vmem:[%s3452_s13 + $0x10] sm:$0xff]  ;;  %v323_v7 = vld [vmem:[%s3452_s13 + $0x18] sm:$0xff] }
  0x12   : > { %3100 = vmatprep.subr.bf16.mxu0 %v3225_v2  ;;  %3104 = vmatprep.mubr.msk.bf16.mxu0 %vm652_vm0, %v3227_v4  ;;  %v320_v8 = vld [vmem:[%s3452_s13] sm:$0xff]  ;;  %v321_v9 = vld [vmem:[%s3452_s13 + $0x8] sm:$0xff]  ;;  %v3229_v11 = vld [vmem:[%s3445_s10 + $0x10] sm:$0xff]  }
  0x13   : > { %364 = vperm.xlu1 %3222, %v322_v6   ;;  %354 = vperm.xlu0 %3221, %v320_v8   ;;  %v3228_v10 = vld [vmem:[%s3445_s10 + $0x8] sm:$0xff]   ;;  %v324_v13 = vld [vmem:[%s3452_s13 + $0x20] sm:$0xff]  ;;  %v327_v14 = vld [vmem:[%s3452_s13 + $0x38] sm:$0xff]  ;;  %v5172_v6 = vsub.s32 1, %v3523_v62 }
  0x14   : > { %v325_v12 = vld [vmem:[%s3452_s13 + $0x28] sm:$0xff]  ;;  %v326_v15 = vld [vmem:[%s3452_s13 + $0x30] sm:$0xff]  ;;  %v3230_v16 = vld [vmem:[%s3445_s10 + $0x18] sm:$0xff]  }
  0x15   : > { %3101 = vmatpush3.bf16.msra.mxu0 %v3225_v2  ;;  %v3231_v17 = vld [vmem:[%s3445_s10 + $0x20] sm:$0xff]   ;;  %v329_v18 = vld [vmem:[%s3452_s13 + $0x48] sm:$0xff]  ;;  %v331_v20 = vld [vmem:[%s3452_s13 + $0x58] sm:$0xff] }
  0x16   : > { %3102 = vmatprep.subr.bf16.mxu0 %v3226_v5  ;;  %v328_v19 = vld [vmem:[%s3452_s13 + $0x40] sm:$0xff]  ;;  %v330_v21 = vld [vmem:[%s3452_s13 + $0x50] sm:$0xff]  ;;  %v3232_v22 = vld [vmem:[%s3445_s10 + $0x28] sm:$0xff]  }
  0x17   : > { %369 = vperm.xlu1 %3222, %v323_v7   ;;  %359 = vperm.xlu0 %3221, %v321_v9   ;;  %v3233_v23 = vld [vmem:[%s3445_s10 + $0x30] sm:$0xff]   ;;  %v333_v24 = vld [vmem:[%s3452_s13 + $0x68] sm:$0xff]  ;;  %v332_v25 = vld [vmem:[%s3452_s13 + $0x60] sm:$0xff] }
  0x18   : > { %v335_v26 = vld [vmem:[%s3452_s13 + $0x78] sm:$0xff]  ;;  %v334_v27 = vld [vmem:[%s3452_s13 + $0x70] sm:$0xff]  ;;  %v3235_v29 = vld [vmem:[%s3445_s10 + $0x40] sm:$0xff]  }
  0x19   : > { %3103 = vmatpush3.bf16.msra.mxu0 %v3226_v5  ;;  %v3234_v28 = vld [vmem:[%s3445_s10 + $0x38] sm:$0xff]   ;;  %v337_v30 = vld [vmem:[%s3452_s13 + $0x88] sm:$0xff]  ;;  %v336_v31 = vld [vmem:[%s3452_s13 + $0x80] sm:$0xff] }
  0x1a   : > { %v339_v32 = vld [vmem:[%s3452_s13 + $0x98] sm:$0xff]  ;;  %v338_v33 = vld [vmem:[%s3452_s13 + $0x90] sm:$0xff]  ;;  %v3236_v34 = vld [vmem:[%s3445_s10 + $0x48] sm:$0xff]  }
  0x1b   : > { %379 = vperm.xlu1 %3222, %v325_v12   ;;  %374 = vperm.xlu0 %3221, %v324_v13   ;;  %v3237_v35 = vld [vmem:[%s3445_s10 + $0x50] sm:$0xff]   ;;  %v341_v36 = vld [vmem:[%s3452_s13 + $0xa8] sm:$0xff]  ;;  %v340_v37 = vld [vmem:[%s3452_s13 + $0xa0] sm:$0xff] }
  0x1c   : > { %3105 = vmatmul.mubr.msk.bf16.vlgmr.msra.gmra.mxu0 %vm652_vm0, %v3228_v10  ;;  %v343_v38 = vld [vmem:[%s3452_s13 + $0xb8] sm:$0xff]  ;;  %v342_v39 = vld [vmem:[%s3452_s13 + $0xb0] sm:$0xff]  ;;  %v3239_v41 = vld [vmem:[%s3445_s10 + $0x60] sm:$0xff]  }
  0x1d   : > { %3108 = vmatprep.mubr.msk.bf16.mxu0 %vm652_vm0, %v3229_v11  ;;  %v3238_v40 = vld [vmem:[%s3445_s10 + $0x58] sm:$0xff]   ;;  %v345_v42 = vld [vmem:[%s3452_s13 + $0xc8] sm:$0xff]  ;;  %v344_v43 = vld [vmem:[%s3452_s13 + $0xc0] sm:$0xff] }
  0x1e   : > { %v347_v44 = vld [vmem:[%s3452_s13 + $0xd8] sm:$0xff]  ;;  %v346_v45 = vld [vmem:[%s3452_s13 + $0xd0] sm:$0xff]  ;;  %v3240_v46 = vld [vmem:[%s3445_s10 + $0x68] sm:$0xff]  }
  0x1f   : > { %389 = vperm.xlu1 %3222, %v327_v14   ;;  %384 = vperm.xlu0 %3221, %v326_v15   ;;  %v3241_v47 = vld [vmem:[%s3445_s10 + $0x70] sm:$0xff]   ;;  %v349_v48 = vld [vmem:[%s3452_s13 + $0xe8] sm:$0xff]  ;;  %v348_v49 = vld [vmem:[%s3452_s13 + $0xe0] sm:$0xff] }
  0x20   : > { %v351_v50 = vld [vmem:[%s3452_s13 + $0xf8] sm:$0xff]  ;;  %v350_v51 = vld [vmem:[%s3452_s13 + $0xf0] sm:$0xff]  ;;  %v3533_v2 = vld [vmem:[%s5170_s5] sm:$0xff]  ;;  %s5064_s13 = scalar_lea.vmem %s5171_s6, %s2963_s7 }
  0x21   : > { %v3242_v52 = vld [vmem:[%s3445_s10 + $0x78] sm:$0xff]   ;;  %v3540_v4 = vrot.slane %v3533_v2, %v5176_v0  ;;  %v3243_v9 = vld [vmem:[%s5168_s3 + $0x8] sm:$0xff]   ;;  %v3555_v11 = vrot.slane %v3533_v2, %v5172_v6 }
  0x22   : > { %3136 = vmatprep.subr.bf16.mxu0 %v3243_v9  ;;  %3208 = vmatprep.subr.bf16.mxu1 %v3243_v9 }
  0x23   : > { %399 = vperm.xlu1 %3222, %v329_v18   ;;  %394 = vperm.xlu0 %3221, %v328_v19  }
  0x24   : > { %3109 = vmatmul.mubr.msk.bf16.gmra.mxu0 %vm652_vm0, %v3230_v16  ;;  %3210 = vmatpush3.bf16.msra.mxu1 %v3243_v9 }
  0x25   : > { %3112 = vmatprep.mubr.msk.bf16.mxu0 %vm652_vm0, %v3231_v17  ;;  %3137 = vmatpush3.bf16.msra.mxu0 %v3243_v9 }
  0x27   : > { %409 = vperm.xlu1 %3222, %v331_v20   ;;  %404 = vperm.xlu0 %3221, %v330_v21  }
  0x2b   : > { %419 = vperm.xlu1 %3222, %v333_v24   ;;  %414 = vperm.xlu0 %3221, %v332_v25  }
  0x2c   : > { %3113 = vmatmul.mubr.msk.bf16.gmra.mxu0 %vm652_vm0, %v3232_v22 }
  0x2d   : > { %3116 = vmatprep.mubr.msk.bf16.mxu0 %vm652_vm0, %v3233_v23 }
  0x2f   : > { %429 = vperm.xlu1 %3222, %v335_v26   ;;  %424 = vperm.xlu0 %3221, %v334_v27  }
  0x33   : > { %439 = vperm.xlu1 %3222, %v337_v30   ;;  %434 = vperm.xlu0 %3221, %v336_v31  }
  0x34   : > { %3117 = vmatmul.mubr.msk.bf16.gmra.mxu0 %vm652_vm0, %v3234_v28 }
  0x35   : > { %3120 = vmatprep.mubr.msk.bf16.mxu0 %vm652_vm0, %v3235_v29 }
  0x37   : > { %449 = vperm.xlu1 %3222, %v339_v32   ;;  %444 = vperm.xlu0 %3221, %v338_v33  }
  0x3b   : > { %459 = vperm.xlu1 %3222, %v341_v36   ;;  %454 = vperm.xlu0 %3221, %v340_v37  }
  0x3c   : > { %3121 = vmatmul.mubr.msk.bf16.gmra.mxu0 %vm652_vm0, %v3236_v34 }
  0x3d   : > { %3124 = vmatprep.mubr.msk.bf16.mxu0 %vm652_vm0, %v3237_v35 }
  0x3f   : > { %469 = vperm.xlu1 %3222, %v343_v38   ;;  %464 = vperm.xlu0 %3221, %v342_v39  }
  0x43   : > { %479 = vperm.xlu1 %3222, %v345_v42   ;;  %474 = vperm.xlu0 %3221, %v344_v43  }
  0x44   : > { %3125 = vmatmul.mubr.msk.bf16.gmra.mxu0 %vm652_vm0, %v3238_v40 }
  0x45   : > { %3128 = vmatprep.mubr.msk.bf16.mxu0 %vm652_vm0, %v3239_v41 }
  0x47   : > { %489 = vperm.xlu1 %3222, %v347_v44   ;;  %484 = vperm.xlu0 %3221, %v346_v45  }
  0x4b   : > { %499 = vperm.xlu1 %3222, %v349_v48   ;;  %494 = vperm.xlu0 %3221, %v348_v49  }
  0x4c   : > { %3129 = vmatmul.mubr.msk.bf16.gmra.mxu0 %vm652_vm0, %v3240_v46 }
  0x4d   : > { %3132 = vmatprep.mubr.msk.bf16.mxu0 %vm652_vm0, %v3241_v47 }
  0x4f   : > { %509 = vperm.xlu1 %3222, %v351_v50   ;;  %504 = vperm.xlu0 %3221, %v350_v51  }
  0x54   : > { %3133 = vmatmul.mubr.msk.bf16.gmra.mxu0 %vm652_vm0, %v3242_v52 }
  0x8e   : > { %v355_v53 = vpop.permute.xlu0 %354  ;;  %v365_v54 = vpop.permute.xlu1 %364 }
  0x8f   : > { %v518_v7 = vmul.f32 %v3540_v4, %v365_v54  ;;  %v516_v10 = vmul.f32 %v3540_v4, %v355_v53 }
  0x92   : > { %v360_v55 = vpop.permute.xlu0 %359  ;;  %v370_v56 = vpop.permute.xlu1 %369 }
  0x93   : > { %v519_v16 = vmul.f32 %v3540_v4, %v370_v56  ;;  %v517_v19 = vmul.f32 %v3540_v4, %v360_v55 }
  0x96   : > { %v375_v57 = vpop.permute.xlu0 %374  ;;  %v3521_v58 = vpop.permute.xlu1 %379 }
  0x97   : > { %v520_v41 = vmul.f32 %v3540_v4, %v375_v57  ;;  %v521_v56 = vmul.f32 %v3540_v4, %v3521_v58 }
  0x9a   : > { %v385_v59 = vpop.permute.xlu0 %384  ;;  %v390_v61 = vpop.permute.xlu1 %389 }
  0x9b   : > { %v522_v32 = vmul.f32 %v3540_v4, %v385_v59  ;;  %v523_v46 = vmul.f32 %v3540_v4, %v390_v61 }
  0x9e   : > { %v3525_v63 = vpop.permute.xlu0 %394  ;;  %v3528_v1 = vpop.permute.xlu1 %399 }
  0xa2   : > { %v3535_v3 = vpop.permute.xlu0 %404  ;;  %v3542_v5 = vpop.permute.xlu1 %409 }
  0xa6   : > { %v3546_v8 = vpop.permute.xlu0 %414  ;;  %v3557_v13 = vpop.permute.xlu1 %419 }
  0xaa   : > { %v3564_v20 = vpop.permute.xlu0 %424  ;;  %v3573_v27 = vpop.permute.xlu1 %429 }
  0xae   : > { %v3584_v35 = vpop.permute.xlu0 %434  ;;  %v3591_v42 = vpop.permute.xlu1 %439 }
  0xb2   : > { %v3603_v50 = vpop.permute.xlu0 %444  ;;  %v450_v57 = vpop.permute.xlu1 %449 }
  0xdc   : > { %v3106_v12 = vpop.f32.mrf.mxu0 }
  0xdd   : > { %v744_v14 = vadd.f32 %v3106_v12, %v518_v7  ;;  %v455_v12 = vpop.permute.xlu0 %454 }
  0xde   : > { %v735_v15 = vpop.f32.mrf.mxu0 }
  0xdf   : > { %v3561_v17 = vadd.f32 %v3555_v11, %v744_v14  ;;  %v736_v18 = vadd.f32 %v735_v15, %v516_v10 }
  0xe0   : > { %v3107_v21 = vpop.f32.mrf.mxu0 }
  0xe1   : > { %v3567_v22 = vadd.f32 %v3555_v11, %v736_v18  ;;  %v747_v23 = vadd.f32 %v3107_v21, %v519_v16  ;;  %v905_v24 = vsel %vm898_vm1, %v3561_v17, 0.0  ;;  %v1030_v25 = vmul.f32 %v3561_v17, %v3561_v17 }
  0xe2   : > { %906 = vadd.xlane.f32.xlu0 %v905_v24  ;;  %v738_v26 = vpop.f32.mrf.mxu0  ;;  %v526_v18 = vmul.f32 %v3540_v4, %v3535_v3  ;;  %v524_v3 = vmul.f32 %v3540_v4, %v3525_v63 }
  0xe3   : > { %v739_v28 = vadd.f32 %v738_v26, %v517_v19  ;;  %v1066_v29 = vsel %vm898_vm1, %v1030_v25, 0.0  ;;  %v1028_v31 = vmul.f32 %v3567_v22, %v3567_v22  ;;  %v3580_v33 = vadd.f32 %v3555_v11, %v747_v23  ;;  %v3627_v19 = vpop.permute.xlu1 %459 }
  0xe4   : > { %1067 = vadd.xlane.f32.xlu1 %v1066_v29  ;;  %v3110_v30 = vpop.f32.mrf.mxu0  ;;  %v899_v34 = vsel %vm898_vm1, %v3567_v22, 0.0  ;;  %v465_v29 = vpop.permute.xlu0 %464 }
  0xe5   : > { %v3587_v37 = vadd.f32 %v3555_v11, %v739_v28  ;;  %v760_v38 = vadd.f32 %v3110_v30, %v522_v32  ;;  %v1060_v39 = vsel %vm898_vm1, %v1028_v31, 0.0  ;;  %v908_v43 = vsel %vm898_vm1, %v3580_v33, 0.0 }
  0xe6   : > { %v751_v36 = vpop.f32.mrf.mxu0  ;;  %900 = vadd.xlane.f32.xlu0 %v899_v34  ;;  %v1031_v44 = vmul.f32 %v3580_v33, %v3580_v33 }
  0xe7   : > { %v3599_v47 = vadd.f32 %v3555_v11, %v760_v38  ;;  %v752_v48 = vadd.f32 %v751_v36, %v520_v41  ;;  %v902_v49 = vsel %vm898_vm1, %v3587_v37, 0.0  ;;  %v1029_v54 = vmul.f32 %v3587_v37, %v3587_v37  ;;  %v470_v38 = vpop.permute.xlu1 %469 }
  0xe8   : > { %v3111_v40 = vpop.f32.mrf.mxu0  ;;  %1061 = vadd.xlane.f32.xlu1 %v1060_v39  ;;  %v1069_v53 = vsel %vm898_vm1, %v1031_v44, 0.0  ;;  %v527_v36 = vmul.f32 %v3540_v4, %v3542_v5  ;;  %v532_v44 = vmul.f32 %v3540_v4, %v3584_v35  ;;  %v525_v5 = vmul.f32 %v3540_v4, %v3528_v1 }
  0xe9   : > { %v763_v52 = vadd.f32 %v3111_v40, %v523_v46  ;;  %v3611_v59 = vadd.f32 %v3555_v11, %v752_v48  ;;  %v917_v60 = vsel %vm898_vm1, %v3599_v47, 0.0  ;;  %v1063_v10 = vsel %vm898_vm1, %v1029_v54, 0.0  ;;  %v475_v48 = vpop.permute.xlu0 %474 }
  0xea   : > { %v754_v45 = vpop.f32.mrf.mxu0  ;;  %909 = vadd.xlane.f32.xlu0 %v908_v43  ;;  %v1034_v15 = vmul.f32 %v3599_v47, %v3599_v47  ;;  %v533_v35 = vmul.f32 %v3540_v4, %v3591_v42 }
  0xeb   : > { %v3616_v7 = vadd.f32 %v3555_v11, %v763_v52  ;;  %v755_v9 = vadd.f32 %v754_v45, %v521_v56  ;;  %v911_v58 = vsel %vm898_vm1, %v3611_v59, 0.0  ;;  %v1032_v28 = vmul.f32 %v3611_v59, %v3611_v59  ;;  %v3673_v1 = vpop.permute.xlu1 %479 }
  0xec   : > { %v3114_v51 = vpop.f32.mrf.mxu0  ;;  %903 = vadd.xlane.f32.xlu1 %v902_v49  ;;  %v1078_v26 = vsel %vm898_vm1, %v1034_v15, 0.0 }
  0xed   : > { %v3630_v21 = vadd.f32 %v3555_v11, %v755_v9  ;;  %v920_v23 = vsel %vm898_vm1, %v3616_v7, 0.0  ;;  %v776_v25 = vadd.f32 %v3114_v51, %v526_v18  ;;  %v1035_v32 = vmul.f32 %v3616_v7, %v3616_v7 }
  0xee   : > { %v767_v55 = vpop.f32.mrf.mxu0  ;;  %1070 = vadd.xlane.f32.xlu0 %v1069_v53  ;;  %v1072_v41 = vsel %vm898_vm1, %v1032_v28, 0.0  ;;  %v535_v51 = vmul.f32 %v3540_v4, %v450_v57 }
  0xef   : > { %v914_v31 = vsel %vm898_vm1, %v3630_v21, 0.0  ;;  %v3652_v39 = vadd.f32 %v3555_v11, %v776_v25  ;;  %v768_v40 = vadd.f32 %v767_v55, %v524_v3  ;;  %v1033_v43 = vmul.f32 %v3630_v21, %v3630_v21 }
  0xf0   : > { %v3115_v61 = vpop.f32.mrf.mxu0  ;;  %918 = vadd.xlane.f32.xlu1 %v917_v60  ;;  %v1081_v46 = vsel %vm898_vm1, %v1035_v32, 0.0  ;;  %v536_v25 = vmul.f32 %v3540_v4, %v455_v12  ;;  %v490_v12 = vpop.permute.xlu1 %489 }
  0xf1   : > { %v779_v45 = vadd.f32 %v3115_v61, %v527_v36  ;;  %v3666_v52 = vadd.f32 %v3555_v11, %v768_v40  ;;  %v929_v54 = vsel %vm898_vm1, %v3652_v39, 0.0  ;;  %v1075_v56 = vsel %vm898_vm1, %v1033_v43, 0.0 }
  0xf2   : > { %v770_v14 = vpop.f32.mrf.mxu0  ;;  %1064 = vadd.xlane.f32.xlu0 %v1063_v10  ;;  %v538_v10 = vmul.f32 %v3540_v4, %v465_v29  ;;  %v539_v36 = vmul.f32 %v3540_v4, %v470_v38  ;;  %v537_v38 = vmul.f32 %v3540_v4, %v3627_v19 }
  0xf3   : > { %v3676_v60 = vadd.f32 %v3555_v11, %v779_v45  ;;  %v771_v57 = vadd.f32 %v770_v14, %v525_v5  ;;  %v923_v18 = vsel %vm898_vm1, %v3666_v52, 0.0  ;;  %v530_v14 = vmul.f32 %v3540_v4, %v3564_v20 }
  0xf4   : > { %v3623_v16 = vpop.f32.mrf.mxu0  ;;  %912 = vadd.xlane.f32.xlu1 %v911_v58  ;;  %v1036_v20 = vmul.f32 %v3666_v52, %v3666_v52 }
  0xf5   : > { %v3693_v29 = vadd.f32 %v3555_v11, %v771_v57  ;;  %v932_v32 = vsel %vm898_vm1, %v3676_v60, 0.0 }
  0xf6   : > { %v3634_v24 = vpop.f32.mrf.mxu0  ;;  %921 = vadd.xlane.f32.xlu0 %v920_v23  ;;  %v1038_v23 = vmul.f32 %v3652_v39, %v3652_v39  ;;  %v1084_v19 = vsel %vm898_vm1, %v1036_v20, 0.0 }
  0xf8   : > { %v3639_v30 = vpop.f32.mrf.mxu0  ;;  %1079 = vadd.xlane.f32.xlu1 %v1078_v26  ;;  %v485_v26 = vpop.permute.xlu0 %484  ;;  %v1090_v45 = vsel %vm898_vm1, %v1038_v23, 0.0 }
  0xfa   : > { %v3647_v34 = vpop.f32.mrf.mxu0  ;;  %915 = vadd.xlane.f32.xlu0 %v914_v31 }
  0xfc   : > { %v3655_v63 = vpop.f32.mrf.mxu0  ;;  %1073 = vadd.xlane.f32.xlu1 %v1072_v41  ;;  %v792_v41 = vadd.f32 %v3623_v16, %v530_v14  ;;  %v926_v16 = vsel %vm898_vm1, %v3693_v29, 0.0 }
  0xfe   : > { %v799_v49 = vpop.f32.mrf.mxu0  ;;  %1082 = vadd.xlane.f32.xlu0 %v1081_v46  ;;  %v528_v46 = vmul.f32 %v3540_v4, %v3546_v8  ;;  %v542_v8 = vmul.f32 %v3540_v4, %v485_v26  ;;  %v529_v26 = vmul.f32 %v3540_v4, %v3557_v13 }
  0xff   : > { %v800_v53 = vadd.f32 %v799_v49, %v532_v44 }
 0x100   : > { %v3123_v55 = vpop.f32.mrf.mxu0  ;;  %930 = vadd.xlane.f32.xlu1 %v929_v54  ;;  %v531_v54 = vmul.f32 %v3540_v4, %v3573_v27  ;;  %v784_v57 = vadd.f32 %v3634_v24, %v528_v46  ;;  %v1037_v27 = vmul.f32 %v3693_v29, %v3693_v29 }
 0x101   : > { %v3679_v61 = vadd.f32 %v3555_v11, %v800_v53  ;;  %v811_v9 = vadd.f32 %v3123_v55, %v535_v51  ;;  %v1039_v53 = vmul.f32 %v3676_v60, %v3676_v60 }
 0x102   : > { %v802_v58 = vpop.f32.mrf.mxu0  ;;  %1076 = vadd.xlane.f32.xlu0 %v1075_v56  ;;  %v3724_v56 = vadd.f32 %v3555_v11, %v792_v41  ;;  %v795_v23 = vadd.f32 %v3639_v30, %v531_v54  ;;  %v1087_v13 = vsel %vm898_vm1, %v1037_v27, 0.0 }
 0x103   : > { %v3683_v42 = vadd.f32 %v3555_v11, %v811_v9  ;;  %v803_v15 = vadd.f32 %v802_v58, %v533_v35  ;;  %v495_v35 = vpop.permute.xlu0 %494  ;;  %v540_v58 = vmul.f32 %v3540_v4, %v475_v48  ;;  %v1093_v24 = vsel %vm898_vm1, %v1039_v53, 0.0 }
 0x104   : > { %v3126_v28 = vpop.f32.mrf.mxu0  ;;  %924 = vadd.xlane.f32.xlu1 %v923_v18  ;;  %v500_v18 = vpop.permute.xlu1 %499 }
 0x105   : > { %v3696_v3 = vadd.f32 %v3555_v11, %v803_v15  ;;  %v824_v31 = vadd.f32 %v3126_v28, %v538_v10  ;;  %v543_v28 = vmul.f32 %v3540_v4, %v490_v12  ;;  %v3244_v12 = vld [vmem:[%s5168_s3] sm:$0xff]  }
 0x106   : > { %v815_v40 = vpop.f32.mrf.mxu0  ;;  %933 = vadd.xlane.f32.xlu0 %v932_v32  ;;  %3138 = vmatprep.subr.bf16.mxu0 %v3244_v12 }
 0x107   : > { %v3705_v43 = vadd.f32 %v3555_v11, %v824_v31  ;;  %v816_v44 = vadd.f32 %v815_v40, %v536_v25  ;;  %v3742_v31 = vadd.f32 %v3555_v11, %v784_v57  ;;  %v541_v40 = vmul.f32 %v3540_v4, %v3673_v1  ;;  %v505_v20 = vpop.permute.xlu0 %504  ;;  %3139 = vmatpush3.bf16.msra.mxu0 %v3244_v12 }
 0x108   : > { %v3127_v5 = vpop.f32.mrf.mxu0  ;;  %1091 = vadd.xlane.f32.xlu1 %v1090_v45  ;;  %v787_v45 = vadd.f32 %v3647_v34, %v529_v26  ;;  %v1042_v1 = vmul.f32 %v3724_v56, %v3724_v56  ;;  %3209 = vmatprep.subr.bf16.mxu1 %v3244_v12 }
 0x109   : > { %v3713_v49 = vadd.f32 %v3555_v11, %v816_v44  ;;  %v827_v51 = vadd.f32 %v3127_v5, %v539_v36  ;;  %v941_v36 = vsel %vm898_vm1, %v3724_v56, 0.0  ;;  %v3756_v44 = vadd.f32 %v3555_v11, %v795_v23  ;;  %3211 = vmatpush3.bf16.msra.mxu1 %v3244_v12 }
 0x10a   : > { %v818_v55 = vpop.f32.mrf.mxu0  ;;  %927 = vadd.xlane.f32.xlu0 %v926_v16  ;;  %v546_v16 = vmul.f32 %v3540_v4, %v505_v20  ;;  %v935_v34 = vsel %vm898_vm1, %v3742_v31, 0.0  ;;  %v3774_v57 = vadd.f32 %v3555_v11, %v787_v45  ;;  %v1040_v26 = vmul.f32 %v3742_v31, %v3742_v31 }
 0x10b   : > { %v3728_v9 = vadd.f32 %v3555_v11, %v827_v51  ;;  %v819_v10 = vadd.f32 %v818_v55, %v537_v38  ;;  %v510_v51 = vpop.permute.xlu1 %509  ;;  %v544_v55 = vmul.f32 %v3540_v4, %v495_v35 }
 0x10c   : > { %v3130_v15 = vpop.f32.mrf.mxu0  ;;  %1085 = vadd.xlane.f32.xlu1 %v1084_v19  ;;  %v547_v27 = vmul.f32 %v3540_v4, %v510_v51  ;;  %v947_v51 = vsel %vm898_vm1, %v3679_v61, 0.0 }
 0x10d   : > { %v3735_v14 = vadd.f32 %v3555_v11, %v819_v10  ;;  %v840_v25 = vadd.f32 %v3130_v15, %v542_v8  ;;  %v534_v8 = vmul.f32 %v3540_v4, %v3603_v50  ;;  %v944_v15 = vsel %vm898_vm1, %v3756_v44, 0.0 }
 0x10e   : > { %v831_v48 = vpop.f32.mrf.mxu0  ;;  %1094 = vadd.xlane.f32.xlu0 %v1093_v24  ;;  %v1102_v50 = vsel %vm898_vm1, %v1042_v1, 0.0 }
 0x10f   : > { %v3745_v32 = vadd.f32 %v3555_v11, %v840_v25  ;;  %v832_v30 = vadd.f32 %v831_v48, %v540_v58  ;;  %v808_v35 = vadd.f32 %v3655_v63, %v534_v8  ;;  %v1043_v63 = vmul.f32 %v3756_v44, %v3756_v44 }
 0x110   : > { %v3131_v41 = vpop.f32.mrf.mxu0  ;;  %942 = vadd.xlane.f32.xlu1 %v941_v36  ;;  %v950_v8 = vsel %vm898_vm1, %v3696_v3, 0.0 }
 0x111   : > { %v3760_v46 = vadd.f32 %v3555_v11, %v832_v30  ;;  %v843_v38 = vadd.f32 %v3131_v41, %v543_v28  ;;  %v545_v28 = vmul.f32 %v3540_v4, %v500_v18  ;;  %v3798_v41 = vadd.f32 %v3555_v11, %v808_v35 }
 0x112   : > { %v834_v5 = vpop.f32.mrf.mxu0  ;;  %1088 = vadd.xlane.f32.xlu0 %v1087_v13  ;;  %v1096_v18 = vsel %vm898_vm1, %v1040_v26, 0.0  ;;  %v1105_v45 = vsel %vm898_vm1, %v1043_v63, 0.0  ;;  %v1050_v35 = vmul.f32 %v3705_v43, %v3705_v43 }
 0x113   : > { %v3766_v53 = vadd.f32 %v3555_v11, %v843_v38  ;;  %v835_v54 = vadd.f32 %v834_v5, %v541_v40  ;;  %v938_v40 = vsel %vm898_vm1, %v3774_v57, 0.0  ;;  %v1041_v38 = vmul.f32 %v3774_v57, %v3774_v57 }
 0x114   : > { %v3134_v19 = vpop.f32.mrf.mxu0  ;;  %936 = vadd.xlane.f32.xlu1 %v935_v34  ;;  %v953_v5 = vsel %vm898_vm1, %v3798_v41, 0.0  ;;  %v1044_v34 = vmul.f32 %v3679_v61, %v3679_v61  ;;  %v1126_v26 = vsel %vm898_vm1, %v1050_v35, 0.0 }
 0x115   : > { %v3777_v10 = vadd.f32 %v3555_v11, %v835_v54  ;;  %v856_v58 = vadd.f32 %v3134_v19, %v546_v16  ;;  %v1099_v1 = vsel %vm898_vm1, %v1041_v38, 0.0  ;;  %v956_v16 = vsel %vm898_vm1, %v3683_v42, 0.0 }
 0x116   : > { %v847_v23 = vpop.f32.mrf.mxu0  ;;  %945 = vadd.xlane.f32.xlu0 %v944_v15  ;;  %v1108_v19 = vsel %vm898_vm1, %v1044_v34, 0.0  ;;  %v1045_v15 = vmul.f32 %v3696_v3, %v3696_v3  ;;  %v1054_v38 = vmul.f32 %v3745_v32, %v3745_v32 }
 0x117   : > { %v3785_v25 = vadd.f32 %v3555_v11, %v856_v58  ;;  %v848_v24 = vadd.f32 %v847_v23, %v544_v55  ;;  %v1047_v55 = vmul.f32 %v3683_v42, %v3683_v42 }
 0x118   : > { %v3135_v48 = vpop.f32.mrf.mxu0  ;;  %1103 = vadd.xlane.f32.xlu1 %v1102_v50  ;;  %v1111_v23 = vsel %vm898_vm1, %v1045_v15, 0.0  ;;  %v959_v50 = vsel %vm898_vm1, %v3713_v49, 0.0 }
 0x119   : > { %v3791_v30 = vadd.f32 %v3555_v11, %v848_v24  ;;  %v859_v36 = vadd.f32 %v3135_v48, %v547_v27  ;;  %v1117_v58 = vsel %vm898_vm1, %v1047_v55, 0.0  ;;  %v965_v27 = vsel %vm898_vm1, %v3705_v43, 0.0 }
 0x11a   : > { %v850_v20 = vpop.f32.mrf.mxu0  ;;  %939 = vadd.xlane.f32.xlu0 %v938_v40  ;;  %v968_v24 = vsel %vm898_vm1, %v3728_v9, 0.0  ;;  %v962_v48 = vsel %vm898_vm1, %v3735_v14, 0.0  ;;  %v989_v55 = vsel %vm898_vm1, %v3785_v25, 0.0 }
 0x11b   : > { %v3801_v13 = vadd.f32 %v3555_v11, %v859_v36  ;;  %v851_v4 = vadd.f32 %v850_v20, %v545_v28  ;;  %v1048_v28 = vmul.f32 %v3713_v49, %v3713_v49  ;;  %v1051_v36 = vmul.f32 %v3728_v9, %v3728_v9 }
 0x11c   : > { %1097 = vadd.xlane.f32.xlu1 %v1096_v18  ;;  %v1049_v20 = vmul.f32 %v3735_v14, %v3735_v14  ;;  %v1056_v15 = vmul.f32 %v3791_v30, %v3791_v30 }
 0x11d   : > { %v3805_v12 = vadd.f32 %v3555_v11, %v851_v4  ;;  %v1046_v11 = vmul.f32 %v3798_v41, %v3798_v41  ;;  %v1120_v40 = vsel %vm898_vm1, %v1048_v28, 0.0  ;;  %v1129_v63 = vsel %vm898_vm1, %v1051_v36, 0.0 }
 0x11e   : > { %1106 = vadd.xlane.f32.xlu0 %v1105_v45  ;;  %v977_v4 = vsel %vm898_vm1, %v3745_v32, 0.0  ;;  %v1123_v18 = vsel %vm898_vm1, %v1049_v20, 0.0  ;;  %v971_v45 = vsel %vm898_vm1, %v3760_v46, 0.0 }
 0x11f   : > { %v1114_v54 = vsel %vm898_vm1, %v1046_v11, 0.0  ;;  %v974_v11 = vsel %vm898_vm1, %v3777_v10, 0.0  ;;  %v986_v35 = vsel %vm898_vm1, %v3805_v12, 0.0 }
 0x120   : > { %954 = vadd.xlane.f32.xlu1 %v953_v5  ;;  %v980_v5 = vsel %vm898_vm1, %v3766_v53, 0.0 }
 0x122   : > { %1100 = vadd.xlane.f32.xlu0 %v1099_v1  ;;  %v1138_v1 = vsel %vm898_vm1, %v1054_v38, 0.0 }
 0x124   : > { %948 = vadd.xlane.f32.xlu1 %v947_v51  ;;  %v1052_v51 = vmul.f32 %v3760_v46, %v3760_v46 }
 0x126   : > { %957 = vadd.xlane.f32.xlu0 %v956_v16  ;;  %v1055_v16 = vmul.f32 %v3766_v53, %v3766_v53 }
 0x128   : > { %1115 = vadd.xlane.f32.xlu1 %v1114_v54  ;;  %v1132_v54 = vsel %vm898_vm1, %v1052_v51, 0.0  ;;  %v1141_v34 = vsel %vm898_vm1, %v1055_v16, 0.0 }
 0x12a   : > { %951 = vadd.xlane.f32.xlu0 %v950_v8  ;;  %v1053_v8 = vmul.f32 %v3777_v10, %v3777_v10 }
 0x12c   : > { %1109 = vadd.xlane.f32.xlu1 %v1108_v19  ;;  %v1135_v19 = vsel %vm898_vm1, %v1053_v8, 0.0 }
 0x12e   : > { %1118 = vadd.xlane.f32.xlu0 %v1117_v58  ;;  %v983_v58 = vsel %vm898_vm1, %v3791_v30, 0.0 }
 0x130   : > { %966 = vadd.xlane.f32.xlu1 %v965_v27  ;;  %v992_v27 = vsel %vm898_vm1, %v3801_v13, 0.0 }
 0x132   : > { %1112 = vadd.xlane.f32.xlu0 %v1111_v23  ;;  %v1144_v23 = vsel %vm898_vm1, %v1056_v15, 0.0 }
 0x134   : > { %960 = vadd.xlane.f32.xlu1 %v959_v50  ;;  %v1058_v50 = vmul.f32 %v3785_v25, %v3785_v25 }
 0x136   : > { %969 = vadd.xlane.f32.xlu0 %v968_v24  ;;  %v1057_v24 = vmul.f32 %v3805_v12, %v3805_v12 }
 0x138   : > { %1127 = vadd.xlane.f32.xlu1 %v1126_v26  ;;  %v1150_v26 = vsel %vm898_vm1, %v1058_v50, 0.0  ;;  %v1147_v28 = vsel %vm898_vm1, %v1057_v24, 0.0 }
 0x13a   : > { %963 = vadd.xlane.f32.xlu0 %v962_v48  ;;  %v1059_v48 = vmul.f32 %v3801_v13, %v3801_v13 }
 0x13c   : > { %1121 = vadd.xlane.f32.xlu1 %v1120_v40  ;;  %v1153_v36 = vsel %vm898_vm1, %v1059_v48, 0.0 }
 0x13e   : > { %1130 = vadd.xlane.f32.xlu0 %v1129_v63 }
 0x140   : > { %978 = vadd.xlane.f32.xlu1 %v977_v4 }
 0x142   : > { %1124 = vadd.xlane.f32.xlu0 %v1123_v18 }
 0x144   : > { %972 = vadd.xlane.f32.xlu1 %v971_v45 }
 0x146   : > { %981 = vadd.xlane.f32.xlu0 %v980_v5 }
 0x148   : > { %1139 = vadd.xlane.f32.xlu1 %v1138_v1 }
 0x14a   : > { %975 = vadd.xlane.f32.xlu0 %v974_v11 }
 0x14c   : > { %1133 = vadd.xlane.f32.xlu1 %v1132_v54 }
 0x14e   : > { %1142 = vadd.xlane.f32.xlu0 %v1141_v34 }
 0x150   : > { %990 = vadd.xlane.f32.xlu1 %v989_v55 }
 0x152   : > { %1136 = vadd.xlane.f32.xlu0 %v1135_v19 }
 0x154   : > { %984 = vadd.xlane.f32.xlu1 %v983_v58 }
 0x156   : > { %993 = vadd.xlane.f32.xlu0 %v992_v27 }
 0x158   : > { %1145 = vadd.xlane.f32.xlu1 %v1144_v23 }
 0x15a   : > { %987 = vadd.xlane.f32.xlu0 %v986_v35 }
 0x15c   : > { %1151 = vadd.xlane.f32.xlu1 %v1150_v26 }
 0x15e   : > { %1148 = vadd.xlane.f32.xlu0 %v1147_v28 }
 0x162   : > { %1154 = vadd.xlane.f32.xlu0 %v1153_v36 }
 0x16b   : > { %v907_v40 = vpop.xlane.xlu0 %906 }
 0x16c   : > { %v3891_v63 = vmul.f32 0.03125, %v907_v40 }
 0x16d   : > { %v1068_v20 = vpop.xlane.xlu1 %1067 }
 0x16e   : > { %v1190_v4 = vmul.f32 %v3891_v63, %v3891_v63  ;;  %v1158_v18 = vmul.f32 0.03125, %v1068_v20 }
 0x16f   : > { %v901_v45 = vpop.xlane.xlu0 %900 }
 0x170   : > { %v1222_v38 = vsub.f32 %v1158_v18, %v1190_v4  ;;  %v3895_v5 = vmul.f32 0.03125, %v901_v45 }
 0x171   : > { %v1062_v1 = vpop.xlane.xlu1 %1061 }
 0x172   : > { %v1188_v51 = vmul.f32 %v3895_v5, %v3895_v5  ;;  %v1156_v11 = vmul.f32 0.03125, %v1062_v1  ;;  %v1254_v54 = vmax.f32 %v1222_v38, 0.0 }
 0x173   : > { %v910_v16 = vpop.xlane.xlu0 %909 }
 0x174   : > { %v1220_v34 = vsub.f32 %v1156_v11, %v1188_v51  ;;  %v3899_v8 = vmul.f32 0.03125, %v910_v16  ;;  %v1318_v15 = vadd.f32 1e-05, %v1254_v54 }
 0x175   : > { %v904_v55 = vpop.xlane.xlu1 %903 }
 0x176   : > { %v1252_v19 = vmax.f32 %v1220_v34, 0.0  ;;  %v1191_v27 = vmul.f32 %v3899_v8, %v3899_v8  ;;  %v3903_v23 = vmul.f32 0.03125, %v904_v55  ;;  %3247 = vrsqrt.f32 %v1318_v15 }
 0x177   : > { %v1071_v58 = vpop.xlane.xlu0 %1070 }
 0x178   : > { %v1159_v50 = vmul.f32 0.03125, %v1071_v58  ;;  %v1316_v35 = vadd.f32 1e-05, %v1252_v19  ;;  %v1189_v48 = vmul.f32 %v3903_v23, %v3903_v23 }
 0x179   : > { %v919_v24 = vpop.xlane.xlu1 %918 }
 0x17a   : > { %v1223_v26 = vsub.f32 %v1159_v50, %v1191_v27  ;;  %3249 = vrsqrt.f32 %v1316_v35  ;;  %v3907_v18 = vmul.f32 0.03125, %v919_v24  ;;  %v1414_v27 = vsub.s32 2, %v3523_v62 }
 0x17b   : > { %v1065_v28 = vpop.xlane.xlu0 %1064 }
 0x17c   : > { %v1255_v36 = vmax.f32 %v1223_v26, 0.0  ;;  %v1157_v40 = vmul.f32 0.03125, %v1065_v28  ;;  %v1194_v11 = vmul.f32 %v3907_v18, %v3907_v18 }
 0x17d   : > { %v913_v20 = vpop.xlane.xlu1 %912 }
 0x17e   : > { %v1319_v4 = vadd.f32 1e-05, %v1255_v36  ;;  %v1221_v45 = vsub.f32 %v1157_v40, %v1189_v48  ;;  %v3911_v34 = vmul.f32 0.03125, %v913_v20 }
 0x17f   : > { %v922_v38 = vpop.xlane.xlu0 %921 }
 0x180   : > { %3251 = vrsqrt.f32 %v1319_v4  ;;  %v1253_v1 = vmax.f32 %v1221_v45, 0.0  ;;  %v3913_v19 = vmul.f32 0.03125, %v922_v38  ;;  %v1192_v35 = vmul.f32 %v3911_v34, %v3911_v34 }
 0x181   : > { %v1080_v51 = vpop.xlane.xlu1 %1079 }
 0x182   : > { %v1317_v16 = vadd.f32 1e-05, %v1253_v1  ;;  %v1162_v54 = vmul.f32 0.03125, %v1080_v51  ;;  %v1195_v28 = vmul.f32 %v3913_v19, %v3913_v19  ;;  %v1286_v1 = vsub.f32 %v3561_v17, %v3891_v63  ;;  %v3937_v63 = vld [vmem:[%s5169_s4 + $0x8] sm:$0xff]  }
 0x183   : > { %v916_v55 = vpop.xlane.xlu0 %915  ;;  %v3248_v40 = vpop.eup %3247  ;;  %v3925_v51 = vrot.slane %v3533_v2, %v1414_v27  ;;  %3172 = vmatprep.subr.bf16.mxu1 %v3937_v63 }
 0x184   : > { %3253 = vrsqrt.f32 %v1317_v16  ;;  %v1226_v58 = vsub.f32 %v1162_v54, %v1194_v11  ;;  %v3920_v48 = vmul.f32 0.03125, %v916_v55  ;;  %v1284_v16 = vsub.f32 %v3567_v22, %v3895_v5 }
 0x185   : > { %v1074_v15 = vpop.xlane.xlu1 %1073  ;;  %v1287_v54 = vsub.f32 %v3580_v33, %v3899_v8 }
 0x186   : > { %v1258_v50 = vmax.f32 %v1226_v58, 0.0  ;;  %v1160_v24 = vmul.f32 0.03125, %v1074_v15  ;;  %v1450_v15 = vsub.s32 3, %v3523_v62 }
 0x187   : > { %v1083_v26 = vpop.xlane.xlu0 %1082  ;;  %v3250_v38 = vpop.eup %3249 }
 0x188   : > { %v1163_v36 = vmul.f32 0.03125, %v1083_v26  ;;  %v1322_v20 = vadd.f32 1e-05, %v1258_v50  ;;  %v1224_v4 = vsub.f32 %v1160_v24, %v1192_v35  ;;  %v1382_v50 = vmul.f32 %v3248_v40, %v1286_v1 }
 0x189   : > { %v931_v45 = vpop.xlane.xlu1 %930  ;;  %v1193_v35 = vmul.f32 %v3920_v48, %v3920_v48  ;;  %v1380_v8 = vmul.f32 %v3250_v38, %v1284_v16 }
 0x18a   : > { %v1227_v11 = vsub.f32 %v1163_v36, %v1195_v28  ;;  %v1256_v55 = vmax.f32 %v1224_v4, 0.0  ;;  %3255 = vrsqrt.f32 %v1322_v20  ;;  %v3939_v5 = vmul.f32 0.03125, %v931_v45 }
 0x18b   : > { %v1077_v58 = vpop.xlane.xlu0 %1076  ;;  %v1285_v4 = vsub.f32 %v3587_v37, %v3903_v23  ;;  %v1418_v45 = vmul.f32 %v3925_v51, %v1382_v50 }
 0x18c   : > { %v1259_v24 = vmax.f32 %v1227_v11, 0.0  ;;  %v1161_v17 = vmul.f32 0.03125, %v1077_v58  ;;  %v1320_v22 = vadd.f32 1e-05, %v1256_v55  ;;  %v1198_v38 = vmul.f32 %v3939_v5, %v3939_v5 }
 0x18d   : > { %v3252_v27 = vpop.eup %3251  ;;  %v925_v33 = vpop.xlane.xlu1 %924  ;;  %v3950_v55 = vrot.slane %v3533_v2, %v1450_v15 }
 0x18e   : > { %v1383_v26 = vmul.f32 %v3252_v27, %v1287_v54  ;;  %v1323_v28 = vadd.f32 1e-05, %v1259_v24  ;;  %v1225_v36 = vsub.f32 %v1161_v17, %v1193_v35  ;;  %3257 = vrsqrt.f32 %v1320_v22 }
 0x18f   : > { %v934_v40 = vpop.xlane.xlu0 %933  ;;  %v1416_v54 = vmul.f32 %v3925_v51, %v1380_v8  ;;  %v3952_v35 = vmul.f32 0.03125, %v925_v33 }
 0x190   : > { %v1419_v1 = vmul.f32 %v3925_v51, %v1383_v26  ;;  %3259 = vrsqrt.f32 %v1323_v28  ;;  %v1257_v11 = vmax.f32 %v1225_v36, 0.0  ;;  %v3954_v24 = vmul.f32 0.03125, %v934_v40 }
 0x191   : > { %v3254_v20 = vpop.eup %3253  ;;  %v1092_v16 = vpop.xlane.xlu1 %1091  ;;  %v3961_v8 = vadd.f32 %v3950_v55, %v1416_v54  ;;  %v1196_v2 = vmul.f32 %v3952_v35, %v3952_v35  ;;  %v3966_v28 = vadd.f32 %v3950_v55, %v1418_v45 }
 0x192   : > { %v1321_v58 = vadd.f32 1e-05, %v1257_v11  ;;  %v1166_v37 = vmul.f32 0.03125, %v1092_v16  ;;  %v1381_v23 = vmul.f32 %v3254_v20, %v1285_v4  ;;  %v3958_v22 = vadd.f32 %v3950_v55, %v1419_v1 }
 0x193   : > { %v928_v17 = vpop.xlane.xlu0 %927  ;;  %v1199_v36 = vmul.f32 %v3954_v24, %v3954_v24 }
 0x194   : > { %3261 = vrsqrt.f32 %v1321_v58  ;;  %v1230_v27 = vsub.f32 %v1166_v37, %v1198_v38  ;;  %v1417_v50 = vmul.f32 %v3925_v51, %v1381_v23  ;;  %v3973_v1 = vmul.f32 0.03125, %v928_v17 }
 0x195   : > { %v1086_v26 = vpop.xlane.xlu1 %1085  ;;  %v5175_v38 = vmax.f32 %v3958_v22, 0.0  ;;  %v5174_v58 = vmax.f32 %v3961_v8, 0.0  ;;  %v1288_v17 = vsub.f32 %v3611_v59, %v3911_v34 }
 0x196   : > { %v1262_v15 = vmax.f32 %v1230_v27, 0.0  ;;  %v1164_v33 = vmul.f32 0.03125, %v1086_v26  ;;  %v3971_v4 = vadd.f32 %v3950_v55, %v1417_v50  ;;  %v5205_v26 = vmax.f32 %v3966_v28, 0.0 }
 0x197   : > { %v1095_v40 = vpop.xlane.xlu0 %1094  ;;  %v3256_v37 = vpop.eup %3255  ;;  %v1290_v50 = vsub.f32 %v3599_v47, %v3907_v18 }
 0x198   : > { %v1228_v11 = vsub.f32 %v1164_v33, %v1196_v2  ;;  %v1167_v20 = vmul.f32 0.03125, %v1095_v40  ;;  %v1326_v16 = vadd.f32 1e-05, %v1262_v15  ;;  %v5173_v45 = vmax.f32 %v3971_v4, 0.0 }
 0x199   : > { %v943_v54 = vpop.xlane.xlu1 %942  ;;  %v1291_v2 = vsub.f32 %v3616_v7, %v3913_v19  ;;  %v1517_v47 = vpack.c.bf16 %v5175_v38, %v5205_v26  ;;  %v1386_v19 = vmul.f32 %v3256_v37, %v1290_v50  ;;  %v1289_v38 = vsub.f32 %v3630_v21, %v3920_v48 }
 0x19a   : > { %v1260_v23 = vmax.f32 %v1228_v11, 0.0  ;;  %v1231_v27 = vsub.f32 %v1167_v20, %v1199_v36  ;;  %v1516_v33 = vpack.c.bf16 %v5173_v45, %v5174_v58  ;;  %v1197_v36 = vmul.f32 %v3973_v1, %v3973_v1 }
 0x19b   : > { %v1089_v15 = vpop.xlane.xlu0 %1088  ;;  %v3258_v40 = vpop.eup %3257  ;;  %3263 = vrsqrt.f32 %v1326_v16  ;;  %v3996_v45 = vmul.f32 0.03125, %v943_v54  ;;  %v1422_v37 = vmul.f32 %v3925_v51, %v1386_v19 }
 0x19c   : > { %v1324_v11 = vadd.f32 1e-05, %v1260_v23  ;;  %v1263_v20 = vmax.f32 %v1231_v27, 0.0  ;;  %v1165_v7 = vmul.f32 0.03125, %v1089_v15  ;;  %3140 = vmatprep.mubr.msk.bf16.mxu0 %vm898_vm1, %v1516_v33  ;;  %v1384_v34 = vmul.f32 %v3258_v40, %v1288_v17 }
 0x19d   : > { %v3260_v59 = vpop.eup %3259  ;;  %v937_v18 = vpop.xlane.xlu1 %936  ;;  %3141 = vmatmul.mubr.msk.bf16.vlgmr.msra.gmra.mxu0 %vm898_vm1, %v1517_v47  ;;  %v1202_v54 = vmul.f32 %v3996_v45, %v3996_v45 }
 0x19e   : > { %3265 = vrsqrt.f32 %v1324_v11  ;;  %v1327_v6 = vadd.f32 1e-05, %v1263_v20  ;;  %v1387_v23 = vmul.f32 %v3260_v59, %v1291_v2  ;;  %v1229_v27 = vsub.f32 %v1165_v7, %v1197_v36 }
 0x19f   : > { %v946_v58 = vpop.xlane.xlu0 %945  ;;  %v1420_v33 = vmul.f32 %v3925_v51, %v1384_v34  ;;  %v4006_v17 = vmul.f32 0.03125, %v937_v18 }
 0x1a0   : > { %3267 = vrsqrt.f32 %v1327_v6  ;;  %v1261_v15 = vmax.f32 %v1229_v27, 0.0  ;;  %v1423_v50 = vmul.f32 %v3925_v51, %v1387_v23  ;;  %v4008_v11 = vmul.f32 0.03125, %v946_v58 }
 0x1a1   : > { %v3262_v16 = vpop.eup %3261  ;;  %v1104_v0 = vpop.xlane.xlu1 %1103  ;;  %v4015_v59 = vadd.f32 %v3950_v55, %v1420_v33  ;;  %v1200_v7 = vmul.f32 %v4006_v17, %v4006_v17  ;;  %v4020_v58 = vadd.f32 %v3950_v55, %v1422_v37 }
 0x1a2   : > { %v1170_v2 = vmul.f32 0.03125, %v1104_v0  ;;  %v1385_v40 = vmul.f32 %v3262_v16, %v1289_v38  ;;  %v1325_v36 = vadd.f32 1e-05, %v1261_v15  ;;  %v4012_v20 = vadd.f32 %v3950_v55, %v1423_v50 }
 0x1a3   : > { %v940_v6 = vpop.xlane.xlu0 %939  ;;  %v1203_v18 = vmul.f32 %v4008_v11, %v4008_v11 }
 0x1a4   : > { %v1234_v21 = vsub.f32 %v1170_v2, %v1202_v54  ;;  %v1421_v48 = vmul.f32 %v3925_v51, %v1385_v40  ;;  %3269 = vrsqrt.f32 %v1325_v36  ;;  %v4027_v23 = vmul.f32 0.03125, %v940_v6 }
 0x1a5   : > { %v1098_v47 = vpop.xlane.xlu1 %1097  ;;  %v5179_v15 = vmax.f32 %v4012_v20, 0.0  ;;  %v5178_v54 = vmax.f32 %v4015_v59, 0.0  ;;  %v1294_v6 = vsub.f32 %v3652_v39, %v3939_v5 }
 0x1a6   : > { %v1266_v0 = vmax.f32 %v1234_v21, 0.0  ;;  %v1168_v38 = vmul.f32 0.03125, %v1098_v47  ;;  %v4025_v19 = vadd.f32 %v3950_v55, %v1421_v48  ;;  %v5180_v21 = vmax.f32 %v4020_v58, 0.0 }
 0x1a7   : > { %v1107_v34 = vpop.xlane.xlu0 %1106  ;;  %v1292_v48 = vsub.f32 %v3666_v52, %v3952_v35 }
 0x1a8   : > { %v1232_v27 = vsub.f32 %v1168_v38, %v1200_v7  ;;  %v1171_v16 = vmul.f32 0.03125, %v1107_v34  ;;  %v1330_v33 = vadd.f32 1e-05, %v1266_v0  ;;  %v5177_v37 = vmax.f32 %v4025_v19, 0.0  ;;  %v3264_v2 = vpop.eup %3263 }
 0x1a9   : > { %v955_v50 = vpop.xlane.xlu1 %954  ;;  %v1295_v7 = vsub.f32 %v3676_v60, %v3954_v24  ;;  %v1519_v39 = vpack.c.bf16 %v5179_v15, %v5180_v21  ;;  %v1390_v24 = vmul.f32 %v3264_v2, %v1294_v6  ;;  %v1293_v15 = vsub.f32 %v3693_v29, %v3973_v1 }
 0x1aa   : > { %v1264_v40 = vmax.f32 %v1232_v27, 0.0  ;;  %v1235_v36 = vsub.f32 %v1171_v16, %v1203_v18  ;;  %v1518_v38 = vpack.c.bf16 %v5177_v37, %v5178_v54  ;;  %v1201_v18 = vmul.f32 %v4027_v23, %v4027_v23 }
 0x1ab   : > { %v3266_v47 = vpop.eup %3265  ;;  %v1101_v0 = vpop.xlane.xlu0 %1100  ;;  %3271 = vrsqrt.f32 %v1330_v33  ;;  %v4050_v37 = vmul.f32 0.03125, %v955_v50 }
 0x1ac   : > { %v1328_v34 = vadd.f32 1e-05, %v1264_v40  ;;  %v1267_v27 = vmax.f32 %v1235_v36, 0.0  ;;  %v1169_v5 = vmul.f32 0.03125, %v1101_v0  ;;  %3144 = vmatprep.mubr.msk.bf16.mxu0 %vm898_vm1, %v1518_v38  ;;  %v1388_v35 = vmul.f32 %v3266_v47, %v1292_v48 }
 0x1ad   : > { %v3268_v52 = vpop.eup %3267  ;;  %v949_v60 = vpop.xlane.xlu1 %948  ;;  %3145 = vmatmul.mubr.msk.bf16.gmra.mxu0 %vm898_vm1, %v1519_v39  ;;  %v1206_v50 = vmul.f32 %v4050_v37, %v4050_v37 }
 0x1ae   : > { %3273 = vrsqrt.f32 %v1328_v34  ;;  %v1331_v16 = vadd.f32 1e-05, %v1267_v27  ;;  %v1391_v40 = vmul.f32 %v3268_v52, %v1295_v7  ;;  %v1233_v36 = vsub.f32 %v1169_v5, %v1201_v18 }
 0x1af   : > { %v958_v54 = vpop.xlane.xlu0 %957  ;;  %v1424_v38 = vmul.f32 %v3925_v51, %v1388_v35  ;;  %v4059_v6 = vmul.f32 0.03125, %v949_v60  ;;  %v1426_v7 = vmul.f32 %v3925_v51, %v1390_v24 }
 0x1b0   : > { %3275 = vrsqrt.f32 %v1331_v16  ;;  %v1265_v33 = vmax.f32 %v1233_v36, 0.0  ;;  %v1427_v47 = vmul.f32 %v3925_v51, %v1391_v40  ;;  %v4062_v34 = vmul.f32 0.03125, %v958_v54 }
 0x1b1   : > { %v1116_v0 = vpop.xlane.xlu1 %1115  ;;  %v3270_v2 = vpop.eup %3269  ;;  %v4069_v35 = vadd.f32 %v3950_v55, %v1424_v38  ;;  %v1204_v60 = vmul.f32 %v4059_v6, %v4059_v6  ;;  %v4074_v54 = vadd.f32 %v3950_v55, %v1426_v7 }
 0x1b2   : > { %v1174_v48 = vmul.f32 0.03125, %v1116_v0  ;;  %v1329_v18 = vadd.f32 1e-05, %v1265_v33  ;;  %v1389_v29 = vmul.f32 %v3270_v2, %v1293_v15  ;;  %v4065_v39 = vadd.f32 %v3950_v55, %v1427_v47 }
 0x1b3   : > { %v952_v27 = vpop.xlane.xlu0 %951  ;;  %v1207_v15 = vmul.f32 %v4062_v34, %v4062_v34 }
 0x1b4   : > { %v1238_v1 = vsub.f32 %v1174_v48, %v1206_v50  ;;  %3277 = vrsqrt.f32 %v1329_v18  ;;  %v1425_v5 = vmul.f32 %v3925_v51, %v1389_v29  ;;  %v4081_v33 = vmul.f32 0.03125, %v952_v27 }
 0x1b5   : > { %v1110_v52 = vpop.xlane.xlu1 %1109  ;;  %v5183_v47 = vmax.f32 %v4065_v39, 0.0  ;;  %v5182_v48 = vmax.f32 %v4069_v35, 0.0  ;;  %v1298_v27 = vsub.f32 %v3724_v56, %v3996_v45 }
 0x1b6   : > { %v1270_v24 = vmax.f32 %v1238_v1, 0.0  ;;  %v1172_v16 = vmul.f32 0.03125, %v1110_v52  ;;  %v4079_v36 = vadd.f32 %v3950_v55, %v1425_v5  ;;  %v5184_v52 = vmax.f32 %v4074_v54, 0.0 }
 0x1b7   : > { %v1119_v40 = vpop.xlane.xlu0 %1118  ;;  %v1296_v5 = vsub.f32 %v3742_v31, %v4006_v17 }
 0x1b8   : > { %v1236_v0 = vsub.f32 %v1172_v16, %v1204_v60  ;;  %v1175_v38 = vmul.f32 0.03125, %v1119_v40  ;;  %v1334_v2 = vadd.f32 1e-05, %v1270_v24  ;;  %v5181_v7 = vmax.f32 %v4079_v36, 0.0  ;;  %v3272_v18 = vpop.eup %3271 }
 0x1b9   : > { %v967_v50 = vpop.xlane.xlu1 %966  ;;  %v1299_v60 = vsub.f32 %v3756_v44, %v4008_v11  ;;  %v1521_v56 = vpack.c.bf16 %v5183_v47, %v5184_v52  ;;  %v1394_v11 = vmul.f32 %v3272_v18, %v1298_v27  ;;  %v1297_v47 = vsub.f32 %v3774_v57, %v4027_v23 }
 0x1ba   : > { %v1268_v29 = vmax.f32 %v1236_v0, 0.0  ;;  %v1239_v1 = vsub.f32 %v1175_v38, %v1207_v15  ;;  %v1520_v16 = vpack.c.bf16 %v5181_v7, %v5182_v48  ;;  %v1205_v15 = vmul.f32 %v4081_v33, %v4081_v33 }
 0x1bb   : > { %v3274_v21 = vpop.eup %3273  ;;  %v1113_v24 = vpop.xlane.xlu0 %1112  ;;  %3279 = vrsqrt.f32 %v1334_v2  ;;  %v4104_v7 = vmul.f32 0.03125, %v967_v50 }
 0x1bc   : > { %v1332_v40 = vadd.f32 1e-05, %v1268_v29  ;;  %v1271_v0 = vmax.f32 %v1239_v1, 0.0  ;;  %v1173_v45 = vmul.f32 0.03125, %v1113_v24  ;;  %3148 = vmatprep.mubr.msk.bf16.mxu0 %vm898_vm1, %v1520_v16  ;;  %v1392_v17 = vmul.f32 %v3274_v21, %v1296_v5 }
 0x1bd   : > { %v3276_v31 = vpop.eup %3275  ;;  %v961_v44 = vpop.xlane.xlu1 %960  ;;  %3149 = vmatmul.mubr.msk.bf16.gmra.mxu0 %vm898_vm1, %v1521_v56  ;;  %v1210_v50 = vmul.f32 %v4104_v7, %v4104_v7 }
 0x1be   : > { %3281 = vrsqrt.f32 %v1332_v40  ;;  %v1335_v38 = vadd.f32 1e-05, %v1271_v0  ;;  %v1395_v29 = vmul.f32 %v3276_v31, %v1299_v60  ;;  %v1237_v1 = vsub.f32 %v1173_v45, %v1205_v15 }
 0x1bf   : > { %v970_v48 = vpop.xlane.xlu0 %969  ;;  %v1428_v16 = vmul.f32 %v3925_v51, %v1392_v17  ;;  %v4113_v27 = vmul.f32 0.03125, %v961_v44  ;;  %v1430_v60 = vmul.f32 %v3925_v51, %v1394_v11 }
 0x1c0   : > { %3283 = vrsqrt.f32 %v1335_v38  ;;  %v1269_v2 = vmax.f32 %v1237_v1, 0.0  ;;  %v1431_v21 = vmul.f32 %v3925_v51, %v1395_v29  ;;  %v4116_v40 = vmul.f32 0.03125, %v970_v48 }
 0x1c1   : > { %v1128_v24 = vpop.xlane.xlu1 %1127  ;;  %v3278_v18 = vpop.eup %3277  ;;  %v4123_v17 = vadd.f32 %v3950_v55, %v1428_v16  ;;  %v1208_v44 = vmul.f32 %v4113_v27, %v4113_v27  ;;  %v4128_v48 = vadd.f32 %v3950_v55, %v1430_v60 }
 0x1c2   : > { %v1178_v5 = vmul.f32 0.03125, %v1128_v24  ;;  %v1333_v15 = vadd.f32 1e-05, %v1269_v2  ;;  %v1393_v57 = vmul.f32 %v3278_v18, %v1297_v47  ;;  %v4119_v56 = vadd.f32 %v3950_v55, %v1431_v21 }
 0x1c3   : > { %v964_v0 = vpop.xlane.xlu0 %963  ;;  %v1211_v47 = vmul.f32 %v4116_v40, %v4116_v40 }
 0x1c4   : > { %v1242_v23 = vsub.f32 %v1178_v5, %v1210_v50  ;;  %3285 = vrsqrt.f32 %v1333_v15  ;;  %v1429_v45 = vmul.f32 %v3925_v51, %v1393_v57  ;;  %v4135_v2 = vmul.f32 0.03125, %v964_v0 }
 0x1c5   : > { %v1122_v31 = vpop.xlane.xlu1 %1121  ;;  %v5187_v21 = vmax.f32 %v4119_v56, 0.0  ;;  %v5186_v5 = vmax.f32 %v4123_v17, 0.0  ;;  %v1302_v0 = vsub.f32 %v3798_v41, %v4050_v37 }
 0x1c6   : > { %v1274_v11 = vmax.f32 %v1242_v23, 0.0  ;;  %v1176_v38 = vmul.f32 0.03125, %v1122_v31  ;;  %v4133_v1 = vadd.f32 %v3950_v55, %v1429_v45  ;;  %v5204_v31 = vmax.f32 %v4128_v48, 0.0 }
 0x1c7   : > { %v1131_v29 = vpop.xlane.xlu0 %1130  ;;  %v1300_v45 = vsub.f32 %v3679_v61, %v4059_v6  ;;  %v3246_v61 = vld [vmem:[%s5169_s4] sm:$0xff]  }
 0x1c8   : > { %v1240_v24 = vsub.f32 %v1176_v38, %v1208_v44  ;;  %v1179_v16 = vmul.f32 0.03125, %v1131_v29  ;;  %v1338_v18 = vadd.f32 1e-05, %v1274_v11  ;;  %v5185_v60 = vmax.f32 %v4133_v1, 0.0  ;;  %v3280_v15 = vpop.eup %3279 }
 0x1c9   : > { %v979_v50 = vpop.xlane.xlu1 %978  ;;  %v1303_v44 = vsub.f32 %v3683_v42, %v4062_v34  ;;  %v1523_v41 = vpack.c.bf16 %v5187_v21, %v5204_v31 }
 0x1ca   : > { %v1272_v57 = vmax.f32 %v1240_v24, 0.0  ;;  %v1243_v23 = vsub.f32 %v1179_v16, %v1211_v47  ;;  %v1522_v38 = vpack.c.bf16 %v5185_v60, %v5186_v5  ;;  %v1209_v47 = vmul.f32 %v4135_v2, %v4135_v2 }
 0x1cb   : > { %v3282_v52 = vpop.eup %3281  ;;  %v1125_v11 = vpop.xlane.xlu0 %1124  ;;  %3287 = vrsqrt.f32 %v1338_v18  ;;  %v1398_v16 = vmul.f32 %v3280_v15, %v1302_v0  ;;  %v1301_v18 = vsub.f32 %v3696_v3, %v4081_v33 }
 0x1cc   : > { %v1336_v29 = vadd.f32 1e-05, %v1272_v57  ;;  %v1275_v24 = vmax.f32 %v1243_v23, 0.0  ;;  %v1177_v37 = vmul.f32 0.03125, %v1125_v11  ;;  %3152 = vmatprep.mubr.msk.bf16.mxu1 %vm898_vm1, %v1522_v38  ;;  %v1396_v34 = vmul.f32 %v3282_v52, %v1300_v45 }
 0x1cd   : > { %v3284_v42 = vpop.eup %3283  ;;  %v973_v6 = vpop.xlane.xlu1 %972  ;;  %v4161_v23 = vmul.f32 0.03125, %v979_v50  ;;  %3153 = vmatmul.mubr.msk.bf16.vlgmr.msra.gmra.mxu1 %vm898_vm1, %v1523_v41 }
 0x1ce   : > { %3289 = vrsqrt.f32 %v1336_v29  ;;  %v1339_v57 = vadd.f32 1e-05, %v1275_v24  ;;  %v1399_v60 = vmul.f32 %v3284_v42, %v1303_v44  ;;  %v1241_v5 = vsub.f32 %v1177_v37, %v1209_v47  ;;  %3173 = vmatpush3.bf16.msra.mxu1 %v3937_v63 }
 0x1cf   : > { %v982_v21 = vpop.xlane.xlu0 %981  ;;  %3174 = vmatprep.subr.bf16.mxu1 %v3246_v61  ;;  %v1432_v52 = vmul.f32 %v3925_v51, %v1396_v34  ;;  %v1214_v0 = vmul.f32 %v4161_v23, %v4161_v23  ;;  %v4171_v45 = vmul.f32 0.03125, %v973_v6  ;;  %v1434_v63 = vmul.f32 %v3925_v51, %v1398_v16 }
 0x1d0   : > { %3291 = vrsqrt.f32 %v1339_v57  ;;  %v1273_v11 = vmax.f32 %v1241_v5, 0.0  ;;  %v1435_v15 = vmul.f32 %v3925_v51, %v1399_v60  ;;  %v4174_v29 = vmul.f32 0.03125, %v982_v21 }
 0x1d1   : > { %v1140_v38 = vpop.xlane.xlu1 %1139  ;;  %v3286_v50 = vpop.eup %3285  ;;  %v4181_v42 = vadd.f32 %v3950_v55, %v1432_v52  ;;  %v1212_v37 = vmul.f32 %v4171_v45, %v4171_v45  ;;  %v4186_v34 = vadd.f32 %v3950_v55, %v1434_v63 }
 0x1d2   : > { %v1182_v44 = vmul.f32 0.03125, %v1140_v38  ;;  %v1337_v47 = vadd.f32 1e-05, %v1273_v11  ;;  %v1397_v3 = vmul.f32 %v3286_v50, %v1301_v18  ;;  %3175 = vmatpush3.bf16.msra.mxu1 %v3246_v61  ;;  %v4177_v5 = vadd.f32 %v3950_v55, %v1435_v15 }
 0x1d3   : > { %v976_v24 = vpop.xlane.xlu0 %975  ;;  %5237 = vst [vmem:[#allocation3_spill] sm:$0xff] %v4181_v42  ;;  %5238 = vst [vmem:[#allocation4_spill] sm:$0xff] %v4186_v34  ;;  %v1215_v61 = vmul.f32 %v4174_v29, %v4174_v29 }
 0x1d4   : > { %v1246_v33 = vsub.f32 %v1182_v44, %v1214_v0  ;;  %5236 = vst [vmem:[#allocation2_spill] sm:$0xff] %v4177_v5  ;;  %3293 = vrsqrt.f32 %v1337_v47  ;;  %v1433_v41 = vmul.f32 %v3925_v51, %v1397_v3  ;;  %v4193_v18 = vmul.f32 0.03125, %v976_v24 }
 0x1d5   : > { %v1134_v60 = vpop.xlane.xlu1 %1133  ;;  %v5190_v52 = vmax.f32 %v4177_v5, 0.0  ;;  %v5189_v0 = vmax.f32 %v4181_v42, 0.0  ;;  %v1306_v24 = vsub.f32 %v3705_v43, %v4104_v7 }
 0x1d6   : > { %v1278_v6 = vmax.f32 %v1246_v33, 0.0  ;;  %v1180_v21 = vmul.f32 0.03125, %v1134_v60  ;;  %v4191_v57 = vadd.f32 %v3950_v55, %v1433_v41  ;;  %v5203_v33 = vmax.f32 %v4186_v34, 0.0 }
 0x1d7   : > { %v1143_v16 = vpop.xlane.xlu0 %1142  ;;  %v1304_v41 = vsub.f32 %v3713_v49, %v4113_v27 }
 0x1d8   : > { %5239 = vst [vmem:[#allocation5_spill] sm:$0xff] %v4191_v57  ;;  %v1244_v11 = vsub.f32 %v1180_v21, %v1212_v37  ;;  %v1183_v38 = vmul.f32 0.03125, %v1143_v16  ;;  %v1342_v15 = vadd.f32 1e-05, %v1278_v6  ;;  %v5188_v44 = vmax.f32 %v4191_v57, 0.0  ;;  %v3288_v63 = vpop.eup %3287 }
 0x1d9   : > { %v991_v50 = vpop.xlane.xlu1 %990  ;;  %v1307_v37 = vsub.f32 %v3728_v9, %v4116_v40  ;;  %v1525_v43 = vpack.c.bf16 %v5190_v52, %v5203_v33  ;;  %v1402_v40 = vmul.f32 %v3288_v63, %v1306_v24  ;;  %v1305_v52 = vsub.f32 %v3735_v14, %v4135_v2 }
 0x1da   : > { %v1276_v47 = vmax.f32 %v1244_v11, 0.0  ;;  %v1247_v3 = vsub.f32 %v1183_v38, %v1215_v61  ;;  %v1524_v21 = vpack.c.bf16 %v5188_v44, %v5189_v0  ;;  %v1213_v61 = vmul.f32 %v4193_v18, %v4193_v18 }
 0x1db   : > { %v3290_v60 = vpop.eup %3289  ;;  %v1137_v6 = vpop.xlane.xlu0 %1136  ;;  %3295 = vrsqrt.f32 %v1342_v15  ;;  %v4223_v24 = vmul.f32 0.03125, %v991_v50 }
 0x1dc   : > { %v1340_v16 = vadd.f32 1e-05, %v1276_v47  ;;  %v1279_v11 = vmax.f32 %v1247_v3, 0.0  ;;  %v1181_v7 = vmul.f32 0.03125, %v1137_v6  ;;  %3156 = vmatprep.mubr.msk.bf16.mxu1 %vm898_vm1, %v1524_v21  ;;  %v1400_v27 = vmul.f32 %v3290_v60, %v1304_v41 }
 0x1dd   : > { %v3292_v49 = vpop.eup %3291  ;;  %v985_v9 = vpop.xlane.xlu1 %984  ;;  %3157 = vmatmul.mubr.msk.bf16.gmra.mxu1 %vm898_vm1, %v1525_v43 }
 0x1de   : > { %3297 = vrsqrt.f32 %v1340_v16  ;;  %v1343_v38 = vadd.f32 1e-05, %v1279_v11  ;;  %v4216_v44 = vmul.f32 0.03125, %v985_v9  ;;  %v1403_v47 = vmul.f32 %v3292_v49, %v1307_v37 }
 0x1df   : > { %v1245_v3 = vsub.f32 %v1181_v7, %v1213_v61  ;;  %v994_v0 = vpop.xlane.xlu0 %993  ;;  %v1436_v21 = vmul.f32 %v3925_v51, %v1400_v27  ;;  %v1438_v37 = vmul.f32 %v3925_v51, %v1402_v40  ;;  %v1218_v27 = vmul.f32 %v4223_v24, %v4223_v24 }
 0x1e0   : > { %3299 = vrsqrt.f32 %v1343_v38  ;;  %v1439_v60 = vmul.f32 %v3925_v51, %v1403_v47  ;;  %v1216_v41 = vmul.f32 %v4216_v44, %v4216_v44  ;;  %v4242_v47 = vmul.f32 0.03125, %v994_v0 }
 0x1e1   : > { %v1277_v15 = vmax.f32 %v1245_v3, 0.0  ;;  %v1146_v6 = vpop.xlane.xlu1 %1145  ;;  %v3294_v63 = vpop.eup %3293  ;;  %v4235_v9 = vadd.f32 %v3950_v55, %v1436_v21 }
 0x1e2   : > { %v1184_v16 = vmul.f32 0.03125, %v1146_v6  ;;  %v1401_v43 = vmul.f32 %v3294_v63, %v1305_v52  ;;  %v4229_v14 = vadd.f32 %v3950_v55, %v1439_v60  ;;  %v4240_v52 = vadd.f32 %v3950_v55, %v1438_v37 }
 0x1e3   : > { %v1341_v61 = vadd.f32 1e-05, %v1277_v15  ;;  %v988_v11 = vpop.xlane.xlu0 %987  ;;  %5241 = vst [vmem:[#allocation7_spill] sm:$0xff] %v4235_v9 }
 0x1e4   : > { %5240 = vst [vmem:[#allocation6_spill] sm:$0xff] %v4229_v14  ;;  %v1248_v2 = vsub.f32 %v1184_v16, %v1216_v41  ;;  %v4231_v49 = vmul.f32 0.03125, %v988_v11  ;;  %v1437_v50 = vmul.f32 %v3925_v51, %v1401_v43  ;;  %5242 = vst [vmem:[#allocation8_spill] sm:$0xff] %v4240_v52  ;;  %v5193_v6 = vmax.f32 %v4229_v14, 0.0 }
 0x1e5   : > { %3301 = vrsqrt.f32 %v1341_v61  ;;  %v1152_v7 = vpop.xlane.xlu1 %1151  ;;  %v5192_v16 = vmax.f32 %v4235_v9, 0.0  ;;  %v5202_v43 = vmax.f32 %v4240_v52, 0.0 }
 0x1e6   : > { %v1280_v40 = vmax.f32 %v1248_v2, 0.0  ;;  %v1186_v38 = vmul.f32 0.03125, %v1152_v7  ;;  %v4245_v15 = vadd.f32 %v3950_v55, %v1437_v50  ;;  %v1217_v21 = vmul.f32 %v4231_v49, %v4231_v49 }
 0x1e7   : > { %v1149_v3 = vpop.xlane.xlu0 %1148  ;;  %v1310_v7 = vsub.f32 %v3745_v32, %v4161_v23  ;;  %v1308_v50 = vsub.f32 %v3760_v46, %v4171_v45  ;;  %v1527_v32 = vpack.c.bf16 %v5193_v6, %v5202_v43  ;;  %v1311_v46 = vsub.f32 %v3766_v53, %v4174_v29 }
 0x1e8   : > { %5243 = vst [vmem:[#allocation9_spill] sm:$0xff] %v4245_v15  ;;  %v1344_v60 = vadd.f32 1e-05, %v1280_v40  ;;  %v1250_v63 = vsub.f32 %v1186_v38, %v1218_v27  ;;  %v1185_v41 = vmul.f32 0.03125, %v1149_v3  ;;  %v5191_v61 = vmax.f32 %v4245_v15, 0.0  ;;  %v3296_v37 = vpop.eup %3295 }
 0x1e9   : > { %v1219_v27 = vmul.f32 %v4242_v47, %v4242_v47 }
 0x1ea   : > { %3303 = vrsqrt.f32 %v1344_v60  ;;  %v1282_v0 = vmax.f32 %v1250_v63, 0.0  ;;  %v1249_v11 = vsub.f32 %v1185_v41, %v1217_v21  ;;  %v1526_v38 = vpack.c.bf16 %v5191_v61, %v5192_v16 }
 0x1eb   : > { %v3298_v2 = vpop.eup %3297  ;;  %v1155_v40 = vpop.xlane.xlu0 %1154  ;;  %v1309_v61 = vsub.f32 %v3777_v10, %v4193_v18  ;;  %v1312_v10 = vsub.f32 %v3791_v30, %v4216_v44 }
 0x1ec   : > { %v1346_v3 = vadd.f32 1e-05, %v1282_v0  ;;  %v1281_v60 = vmax.f32 %v1249_v11, 0.0  ;;  %v1187_v21 = vmul.f32 0.03125, %v1155_v40  ;;  %3160 = vmatprep.mubr.msk.bf16.mxu1 %vm898_vm1, %v1526_v38  ;;  %v1404_v45 = vmul.f32 %v3298_v2, %v1308_v50 }
 0x1ed   : > { %v3300_v23 = vpop.eup %3299  ;;  %3161 = vmatmul.mubr.msk.bf16.gmra.mxu1 %vm898_vm1, %v1527_v32  ;;  %v1406_v0 = vmul.f32 %v3296_v37, %v1310_v7 }
 0x1ee   : > { %3305 = vrsqrt.f32 %v1346_v3  ;;  %v1345_v63 = vadd.f32 1e-05, %v1281_v60  ;;  %v1251_v41 = vsub.f32 %v1187_v21, %v1219_v27  ;;  %v1407_v11 = vmul.f32 %v3300_v23, %v1311_v46 }
 0x1ef   : > { %v1440_v16 = vmul.f32 %v3925_v51, %v1404_v45  ;;  %v1442_v2 = vmul.f32 %v3925_v51, %v1406_v0  ;;  %v1313_v23 = vsub.f32 %v3805_v12, %v4231_v49 }
 0x1f0   : > { %3307 = vrsqrt.f32 %v1345_v63  ;;  %v1283_v40 = vmax.f32 %v1251_v41, 0.0  ;;  %v1443_v6 = vmul.f32 %v3925_v51, %v1407_v11  ;;  %v1315_v41 = vsub.f32 %v3801_v13, %v4242_v47 }
 0x1f1   : > { %v4281_v7 = vadd.f32 %v3950_v55, %v1440_v16  ;;  %v4286_v18 = vadd.f32 %v3950_v55, %v1442_v2  ;;  %v1314_v16 = vsub.f32 %v3785_v25, %v4223_v24 }
 0x1f2   : > { %v3302_v53 = vpop.eup %3301  ;;  %v1347_v29 = vadd.f32 1e-05, %v1283_v40  ;;  %v4277_v27 = vadd.f32 %v3950_v55, %v1443_v6 }
 0x1f3   : > { %v1405_v50 = vmul.f32 %v3302_v53, %v1309_v61  ;;  %5245 = vst [vmem:[#allocation11_spill] sm:$0xff] %v4281_v7  ;;  %5246 = vst [vmem:[#allocation12_spill] sm:$0xff] %v4286_v18  ;;  %v5199_v6 = vmax.f32 %v4281_v7, 0.0  ;;  %v5201_v32 = vmax.f32 %v4286_v18, 0.0 }
 0x1f4   : > { %3309 = vrsqrt.f32 %v1347_v29  ;;  %5244 = vst [vmem:[#allocation10_spill] sm:$0xff] %v4277_v27  ;;  %v5200_v61 = vmax.f32 %v4277_v27, 0.0 }
 0x1f5   : > { %v1441_v37 = vmul.f32 %v3925_v51, %v1405_v50 }
 0x1f6   : > { %v1529_v46 = vpack.c.bf16 %v5200_v61, %v5201_v32 }
 0x1f7   : > { %v3304_v38 = vpop.eup %3303  ;;  %v4289_v3 = vadd.f32 %v3950_v55, %v1441_v37 }
 0x1f8   : > { %v1408_v60 = vmul.f32 %v3304_v38, %v1312_v10 }
 0x1f9   : > { %5247 = vst [vmem:[#allocation13_spill] sm:$0xff] %v4289_v3  ;;  %v5198_v21 = vmax.f32 %v4289_v3, 0.0 }
 0x1fa   : > { %v1444_v45 = vmul.f32 %v3925_v51, %v1408_v60  ;;  %v1538_v60 = vsub.s32 4, %v3523_v62 }
 0x1fb   : > { %v3306_v30 = vpop.eup %3305  ;;  %v1528_v44 = vpack.c.bf16 %v5198_v21, %v5199_v6 }
 0x1fc   : > { %v1410_v63 = vmul.f32 %v3306_v30, %v1314_v16  ;;  %v4314_v12 = vadd.f32 %v3950_v55, %v1444_v45 }
 0x1fd   : > { %v3308_v25 = vpop.eup %3307  ;;  %3164 = vmatprep.mubr.msk.bf16.mxu1 %vm898_vm1, %v1528_v44 }
 0x1fe   : > { %3165 = vmatmul.mubr.msk.bf16.gmra.mxu1 %vm898_vm1, %v1529_v46  ;;  %v1409_v24 = vmul.f32 %v3308_v25, %v1313_v23  ;;  %5248 = vst [vmem:[#allocation14_spill] sm:$0xff] %v4314_v12  ;;  %v1446_v49 = vmul.f32 %v3925_v51, %v1410_v63  ;;  %v5197_v29 = vmax.f32 %v4314_v12, 0.0 }
 0x200   : > { %v1445_v0 = vmul.f32 %v3925_v51, %v1409_v24  ;;  %v4324_v13 = vadd.f32 %v3950_v55, %v1446_v49 }
 0x201   : > { %v3310_v11 = vpop.eup %3309 }
 0x202   : > { %v4318_v40 = vadd.f32 %v3950_v55, %v1445_v0  ;;  %v1411_v53 = vmul.f32 %v3310_v11, %v1315_v41  ;;  %5250 = vst [vmem:[#allocation16_spill] sm:$0xff] %v4324_v13  ;;  %v5195_v10 = vmax.f32 %v4324_v13, 0.0 }
 0x204   : > { %5249 = vst [vmem:[#allocation15_spill] sm:$0xff] %v4318_v40  ;;  %v5196_v2 = vmax.f32 %v4318_v40, 0.0  ;;  %v1447_v50 = vmul.f32 %v3925_v51, %v1411_v53 }
 0x206   : > { %v1530_v47 = vpack.c.bf16 %v5196_v2, %v5197_v29  ;;  %v4331_v37 = vadd.f32 %v3950_v55, %v1447_v50  ;;  %v4345_v55 = vld [vmem:[%s5170_s5] sm:$0xff] }
 0x207   : > { %v4348_v30 = vrot.slane %v4345_v55, %v1538_v60 }
 0x208   : > { %5251 = vst [vmem:[#allocation17_spill] sm:$0xff] %v4331_v37  ;;  %3168 = vmatprep.mubr.msk.bf16.mxu1 %vm898_vm1, %v1530_v47  ;;  %v5194_v38 = vmax.f32 %v4331_v37, 0.0 }
 0x20a   : > { %v1531_v51 = vpack.c.bf16 %v5194_v38, %v5195_v10 }
 0x20c   : > { %3169 = vmatmul.mubr.msk.bf16.gmra.mxu1 %vm898_vm1, %v1531_v51 }
 0x25d   : > { %v3142_v16 = vpop.f32.mrf.mxu0 }
 0x25e   : > { %v1643_v63 = vadd.f32 %v3142_v16, %v4348_v30 }
 0x25f   : > { %v1634_v44 = vpop.f32.mrf.mxu0 }
 0x260   : > { %v1635_v46 = vadd.f32 %v1634_v44, %v4348_v30  ;;  %v1763_v11 = vmax.f32 %v1643_v63, 0.0 }
 0x261   : > { %v3143_v23 = vpop.f32.mrf.mxu0 }
 0x262   : > { %v1646_v45 = vadd.f32 %v3143_v23, %v4348_v30  ;;  %v1761_v0 = vmax.f32 %v1635_v46, 0.0 }
 0x263   : > { %v1637_v25 = vpop.f32.mrf.mxu0 }
 0x264   : > { %v1638_v24 = vadd.f32 %v1637_v25, %v4348_v30  ;;  %v1764_v41 = vmax.f32 %v1646_v45, 0.0 }
 0x266   : > { %v1762_v49 = vmax.f32 %v1638_v24, 0.0  ;;  %v1794_v50 = vpack.c.bf16 %v1764_v41, %v1763_v11 }
 0x268   : > { %v1793_v53 = vpack.c.bf16 %v1762_v49, %v1761_v0 }
 0x26a   : > { %3176 = vmatprep.mubr.msk.bf16.mxu1 %vm898_vm1, %v1793_v53 }
 0x26b   : > { %3177 = vmatmul.mubr.msk.bf16.vlgmr.msra.gmra.mxu1 %vm898_vm1, %v1794_v50 }
 0x26d   : > { %v3146_v47 = vpop.f32.mrf.mxu0 }
 0x26e   : > { %v1659_v23 = vadd.f32 %v3146_v47, %v4348_v30 }
 0x26f   : > { %v1650_v51 = vpop.f32.mrf.mxu0 }
 0x270   : > { %v1651_v44 = vadd.f32 %v1650_v51, %v4348_v30  ;;  %v1767_v41 = vmax.f32 %v1659_v23, 0.0 }
 0x271   : > { %v3147_v60 = vpop.f32.mrf.mxu0 }
 0x272   : > { %v1662_v16 = vadd.f32 %v3147_v60, %v4348_v30  ;;  %v1765_v63 = vmax.f32 %v1651_v44, 0.0 }
 0x273   : > { %v1653_v25 = vpop.f32.mrf.mxu0 }
 0x274   : > { %v1654_v46 = vadd.f32 %v1653_v25, %v4348_v30  ;;  %v1768_v45 = vmax.f32 %v1662_v16, 0.0 }
 0x276   : > { %v1766_v24 = vmax.f32 %v1654_v46, 0.0  ;;  %v1796_v49 = vpack.c.bf16 %v1768_v45, %v1767_v41 }
 0x278   : > { %v1795_v0 = vpack.c.bf16 %v1766_v24, %v1765_v63 }
 0x27a   : > { %3180 = vmatprep.mubr.msk.bf16.mxu1 %vm898_vm1, %v1795_v0 }
 0x27b   : > { %3181 = vmatmul.mubr.msk.bf16.gmra.mxu1 %vm898_vm1, %v1796_v49 }
 0x27d   : > { %v3150_v11 = vpop.f32.mrf.mxu0 }
 0x27e   : > { %v1675_v60 = vadd.f32 %v3150_v11, %v4348_v30 }
 0x27f   : > { %v1666_v53 = vpop.f32.mrf.mxu0 }
 0x280   : > { %v1667_v51 = vadd.f32 %v1666_v53, %v4348_v30  ;;  %v1771_v45 = vmax.f32 %v1675_v60, 0.0 }
 0x281   : > { %v3151_v50 = vpop.f32.mrf.mxu0 }
 0x282   : > { %v1678_v47 = vadd.f32 %v3151_v50, %v4348_v30  ;;  %v1769_v23 = vmax.f32 %v1667_v51, 0.0 }
 0x283   : > { %v1669_v25 = vpop.f32.mrf.mxu0 }
 0x284   : > { %v1670_v44 = vadd.f32 %v1669_v25, %v4348_v30  ;;  %v1772_v16 = vmax.f32 %v1678_v47, 0.0 }
 0x286   : > { %v1770_v46 = vmax.f32 %v1670_v44, 0.0  ;;  %v1798_v24 = vpack.c.bf16 %v1772_v16, %v1771_v45 }
 0x288   : > { %v1797_v63 = vpack.c.bf16 %v1770_v46, %v1769_v23 }
 0x28a   : > { %3184 = vmatprep.mubr.msk.bf16.mxu1 %vm898_vm1, %v1797_v63 }
 0x28b   : > { %3185 = vmatmul.mubr.msk.bf16.gmra.mxu1 %vm898_vm1, %v1798_v24 }
 0x28d   : > { %v3154_v41 = vpop.f32.mrf.mxu1 }
 0x28e   : > { %v1691_v50 = vadd.f32 %v3154_v41, %v4348_v30 }
 0x28f   : > { %v1682_v0 = vpop.f32.mrf.mxu1 }
 0x290   : > { %v1683_v53 = vadd.f32 %v1682_v0, %v4348_v30  ;;  %v1775_v16 = vmax.f32 %v1691_v50, 0.0 }
 0x291   : > { %v3155_v49 = vpop.f32.mrf.mxu1 }
 0x292   : > { %v1694_v11 = vadd.f32 %v3155_v49, %v4348_v30  ;;  %v1773_v60 = vmax.f32 %v1683_v53, 0.0 }
 0x293   : > { %v1685_v25 = vpop.f32.mrf.mxu1 }
 0x294   : > { %v1686_v51 = vadd.f32 %v1685_v25, %v4348_v30  ;;  %v1776_v47 = vmax.f32 %v1694_v11, 0.0 }
 0x296   : > { %v1774_v44 = vmax.f32 %v1686_v51, 0.0  ;;  %v1800_v46 = vpack.c.bf16 %v1776_v47, %v1775_v16 }
 0x298   : > { %v1799_v23 = vpack.c.bf16 %v1774_v44, %v1773_v60 }
 0x29a   : > { %3188 = vmatprep.mubr.msk.bf16.mxu1 %vm898_vm1, %v1799_v23 }
 0x29b   : > { %3189 = vmatmul.mubr.msk.bf16.gmra.mxu1 %vm898_vm1, %v1800_v46 }
 0x29d   : > { %v3158_v45 = vpop.f32.mrf.mxu1 }
 0x29e   : > { %v1707_v49 = vadd.f32 %v3158_v45, %v4348_v30 }
 0x29f   : > { %v1698_v63 = vpop.f32.mrf.mxu1 }
 0x2a0   : > { %v1699_v0 = vadd.f32 %v1698_v63, %v4348_v30  ;;  %v1779_v47 = vmax.f32 %v1707_v49, 0.0 }
 0x2a1   : > { %v3159_v24 = vpop.f32.mrf.mxu1 }
 0x2a2   : > { %v1710_v41 = vadd.f32 %v3159_v24, %v4348_v30  ;;  %v1777_v50 = vmax.f32 %v1699_v0, 0.0 }
 0x2a3   : > { %v1701_v25 = vpop.f32.mrf.mxu1 }
 0x2a4   : > { %v1702_v53 = vadd.f32 %v1701_v25, %v4348_v30  ;;  %v1780_v11 = vmax.f32 %v1710_v41, 0.0 }
 0x2a6   : > { %v1778_v51 = vmax.f32 %v1702_v53, 0.0  ;;  %v1802_v44 = vpack.c.bf16 %v1780_v11, %v1779_v47 }
 0x2a8   : > { %v1801_v60 = vpack.c.bf16 %v1778_v51, %v1777_v50 }
 0x2aa   : > { %3192 = vmatprep.mubr.msk.bf16.mxu1 %vm898_vm1, %v1801_v60 }
 0x2ab   : > { %3193 = vmatmul.mubr.msk.bf16.gmra.mxu1 %vm898_vm1, %v1802_v44 }
 0x2ad   : > { %v3162_v16 = vpop.f32.mrf.mxu1 }
 0x2ae   : > { %v1723_v24 = vadd.f32 %v3162_v16, %v4348_v30 }
 0x2af   : > { %v1714_v23 = vpop.f32.mrf.mxu1 }
 0x2b0   : > { %v1715_v63 = vadd.f32 %v1714_v23, %v4348_v30  ;;  %v1783_v11 = vmax.f32 %v1723_v24, 0.0 }
 0x2b1   : > { %v3163_v46 = vpop.f32.mrf.mxu1 }
 0x2b2   : > { %v1726_v45 = vadd.f32 %v3163_v46, %v4348_v30  ;;  %v1781_v49 = vmax.f32 %v1715_v63, 0.0 }
 0x2b3   : > { %v1717_v25 = vpop.f32.mrf.mxu1 }
 0x2b4   : > { %v1718_v0 = vadd.f32 %v1717_v25, %v4348_v30  ;;  %v1784_v41 = vmax.f32 %v1726_v45, 0.0 }
 0x2b6   : > { %v1782_v53 = vmax.f32 %v1718_v0, 0.0  ;;  %v1804_v51 = vpack.c.bf16 %v1784_v41, %v1783_v11 }
 0x2b8   : > { %v1803_v50 = vpack.c.bf16 %v1782_v53, %v1781_v49 }
 0x2ba   : > { %3196 = vmatprep.mubr.msk.bf16.mxu1 %vm898_vm1, %v1803_v50 }
 0x2bb   : > { %3197 = vmatmul.mubr.msk.bf16.gmra.mxu1 %vm898_vm1, %v1804_v51 }
 0x2be   : > { %v3166_v47 = vpop.f32.mrf.mxu1 }
 0x2bf   : > { %v1739_v46 = vadd.f32 %v3166_v47, %v4348_v30 }
 0x2c0   : > { %v1730_v60 = vpop.f32.mrf.mxu1 }
 0x2c1   : > { %v1731_v23 = vadd.f32 %v1730_v60, %v4348_v30  ;;  %v1787_v41 = vmax.f32 %v1739_v46, 0.0 }
 0x2c2   : > { %v3167_v44 = vpop.f32.mrf.mxu1 }
 0x2c3   : > { %v1742_v16 = vadd.f32 %v3167_v44, %v4348_v30  ;;  %v1785_v24 = vmax.f32 %v1731_v23, 0.0 }
 0x2c4   : > { %v1733_v25 = vpop.f32.mrf.mxu1 }
 0x2c5   : > { %v1734_v63 = vadd.f32 %v1733_v25, %v4348_v30  ;;  %v1788_v45 = vmax.f32 %v1742_v16, 0.0 }
 0x2c7   : > { %v1786_v0 = vmax.f32 %v1734_v63, 0.0  ;;  %v1806_v53 = vpack.c.bf16 %v1788_v45, %v1787_v41  ;;  %v1815_v41 = vsub.s32 5, %v3523_v62 }
 0x2c9   : > { %v1805_v49 = vpack.c.bf16 %v1786_v0, %v1785_v24 }
 0x2cb   : > { %3200 = vmatprep.mubr.msk.bf16.mxu1 %vm898_vm1, %v1805_v49  ;;  %v4400_v49 = vrot.slane %v4345_v55, %v1815_v41 }
 0x2cc   : > { %3201 = vmatmul.mubr.msk.bf16.gmra.mxu1 %vm898_vm1, %v1806_v53  ;;  %v3170_v11 = vpop.f32.mrf.mxu1 }
 0x2cd   : > { %v1755_v44 = vadd.f32 %v3170_v11, %v4348_v30 }
 0x2ce   : > { %v1746_v50 = vpop.f32.mrf.mxu1 }
 0x2cf   : > { %v1747_v60 = vadd.f32 %v1746_v50, %v4348_v30  ;;  %v1791_v45 = vmax.f32 %v1755_v44, 0.0 }
 0x2d0   : > { %v3171_v51 = vpop.f32.mrf.mxu1 }
 0x2d1   : > { %v1758_v47 = vadd.f32 %v3171_v51, %v4348_v30  ;;  %v1789_v46 = vmax.f32 %v1747_v60, 0.0 }
 0x2d2   : > { %v1749_v25 = vpop.f32.mrf.mxu1 }
 0x2d3   : > { %v1750_v23 = vadd.f32 %v1749_v25, %v4348_v30  ;;  %v1792_v16 = vmax.f32 %v1758_v47, 0.0 }
 0x2d5   : > { %v1790_v63 = vmax.f32 %v1750_v23, 0.0  ;;  %v1808_v0 = vpack.c.bf16 %v1792_v16, %v1791_v45 }
 0x2d7   : > { %v1807_v24 = vpack.c.bf16 %v1790_v63, %v1789_v46 }
 0x2d9   : > { %3204 = vmatprep.mubr.msk.bf16.mxu1 %vm898_vm1, %v1807_v24 }
 0x2da   : > { %3205 = vmatmul.mubr.msk.bf16.gmra.mxu1 %vm898_vm1, %v1808_v0 }
 0x32b   : > { %v3178_v53 = vpop.f32.mrf.mxu1 }
 0x32c   : > { %v4403_v11 = vadd.f32 %v3178_v53, %v4400_v49 }
 0x32d   : > { %v1911_v30 = vpop.f32.mrf.mxu1 }
 0x32e   : > { %v4406_v50 = vadd.f32 %v1911_v30, %v4400_v49  ;;  %v2044_v51 = vsel %vm898_vm1, %v4403_v11, 0.0  ;;  %v2168_v46 = vmul.f32 %v4403_v11, %v4403_v11 }
 0x32f   : > { %2045 = vadd.xlane.f32.xlu1 %v2044_v51  ;;  %v3179_v60 = vpop.f32.mrf.mxu1 }
 0x330   : > { %v4411_v47 = vadd.f32 %v3179_v60, %v4400_v49  ;;  %v2038_v16 = vsel %vm898_vm1, %v4406_v50, 0.0  ;;  %v2204_v45 = vsel %vm898_vm1, %v2168_v46, 0.0  ;;  %v2166_v0 = vmul.f32 %v4406_v50, %v4406_v50 }
 0x331   : > { %v1914_v44 = vpop.f32.mrf.mxu1 }
 0x332   : > { %v4414_v25 = vadd.f32 %v1914_v44, %v4400_v49  ;;  %v2047_v23 = vsel %vm898_vm1, %v4411_v47, 0.0  ;;  %v2169_v24 = vmul.f32 %v4411_v47, %v4411_v47  ;;  %v2198_v53 = vsel %vm898_vm1, %v2166_v0, 0.0 }
 0x333   : > { %2048 = vadd.xlane.f32.xlu0 %v2047_v23  ;;  %2039 = vadd.xlane.f32.xlu1 %v2038_v16 }
 0x334   : > { %v2041_v63 = vsel %vm898_vm1, %v4414_v25, 0.0  ;;  %v2207_v41 = vsel %vm898_vm1, %v2169_v24, 0.0  ;;  %v2167_v30 = vmul.f32 %v4414_v25, %v4414_v25 }
 0x336   : > { %v2201_v16 = vsel %vm898_vm1, %v2167_v30, 0.0 }
 0x337   : > { %2042 = vadd.xlane.f32.xlu0 %v2041_v63  ;;  %2205 = vadd.xlane.f32.xlu1 %v2204_v45 }
 0x33b   : > { %v3182_v51 = vpop.f32.mrf.mxu1  ;;  %2208 = vadd.xlane.f32.xlu0 %v2207_v41  ;;  %2199 = vadd.xlane.f32.xlu1 %v2198_v53 }
 0x33c   : > { %v4434_v60 = vadd.f32 %v3182_v51, %v4400_v49 }
 0x33d   : > { %v1927_v44 = vpop.f32.mrf.mxu1 }
 0x33e   : > { %v4437_v23 = vadd.f32 %v1927_v44, %v4400_v49  ;;  %v2056_v46 = vsel %vm898_vm1, %v4434_v60, 0.0  ;;  %v2172_v30 = vmul.f32 %v4434_v60, %v4434_v60 }
 0x33f   : > { %v3183_v63 = vpop.f32.mrf.mxu1  ;;  %2202 = vadd.xlane.f32.xlu0 %v2201_v16  ;;  %2057 = vadd.xlane.f32.xlu1 %v2056_v46 }
 0x340   : > { %v4443_v45 = vadd.f32 %v3183_v63, %v4400_v49  ;;  %v2050_v53 = vsel %vm898_vm1, %v4437_v23, 0.0  ;;  %v2216_v44 = vsel %vm898_vm1, %v2172_v30, 0.0  ;;  %v2170_v46 = vmul.f32 %v4437_v23, %v4437_v23 }
 0x341   : > { %v1930_v24 = vpop.f32.mrf.mxu1 }
 0x342   : > { %v4446_v0 = vadd.f32 %v1930_v24, %v4400_v49  ;;  %v2059_v41 = vsel %vm898_vm1, %v4443_v45, 0.0  ;;  %v2173_v16 = vmul.f32 %v4443_v45, %v4443_v45  ;;  %v2210_v24 = vsel %vm898_vm1, %v2170_v46, 0.0 }
 0x343   : > { %2060 = vadd.xlane.f32.xlu0 %v2059_v41  ;;  %2051 = vadd.xlane.f32.xlu1 %v2050_v53 }
 0x344   : > { %v2053_v51 = vsel %vm898_vm1, %v4446_v0, 0.0  ;;  %v2219_v63 = vsel %vm898_vm1, %v2173_v16, 0.0  ;;  %v2171_v41 = vmul.f32 %v4446_v0, %v4446_v0 }
 0x347   : > { %2054 = vadd.xlane.f32.xlu0 %v2053_v51  ;;  %2217 = vadd.xlane.f32.xlu1 %v2216_v44  ;;  %v2213_v51 = vsel %vm898_vm1, %v2171_v41, 0.0 }
 0x34b   : > { %v3186_v53 = vpop.f32.mrf.mxu1  ;;  %2220 = vadd.xlane.f32.xlu0 %v2219_v63  ;;  %2211 = vadd.xlane.f32.xlu1 %v2210_v24 }
 0x34c   : > { %v4466_v30 = vadd.f32 %v3186_v53, %v4400_v49 }
 0x34d   : > { %v1943_v38 = vpop.f32.mrf.mxu1 }
 0x34e   : > { %v4469_v10 = vadd.f32 %v1943_v38, %v4400_v49  ;;  %v2068_v44 = vsel %vm898_vm1, %v4466_v30, 0.0  ;;  %v2176_v41 = vmul.f32 %v4466_v30, %v4466_v30 }
 0x34f   : > { %v3187_v16 = vpop.f32.mrf.mxu1  ;;  %2214 = vadd.xlane.f32.xlu0 %v2213_v51  ;;  %2069 = vadd.xlane.f32.xlu1 %v2068_v44 }
 0x350   : > { %v4475_v46 = vadd.f32 %v3187_v16, %v4400_v49  ;;  %v2062_v38 = vsel %vm898_vm1, %v4469_v10, 0.0  ;;  %v2228_v44 = vsel %vm898_vm1, %v2176_v41, 0.0 }
 0x351   : > { %v1946_v63 = vpop.f32.mrf.mxu1 }
 0x352   : > { %v4478_v24 = vadd.f32 %v1946_v63, %v4400_v49  ;;  %v2071_v53 = vsel %vm898_vm1, %v4475_v46, 0.0  ;;  %v2177_v16 = vmul.f32 %v4475_v46, %v4475_v46  ;;  %v2174_v63 = vmul.f32 %v4469_v10, %v4469_v10 }
 0x353   : > { %2072 = vadd.xlane.f32.xlu0 %v2071_v53  ;;  %2063 = vadd.xlane.f32.xlu1 %v2062_v38 }
 0x354   : > { %v2065_v51 = vsel %vm898_vm1, %v4478_v24, 0.0  ;;  %v2231_v2 = vsel %vm898_vm1, %v2177_v16, 0.0  ;;  %v2222_v29 = vsel %vm898_vm1, %v2174_v63, 0.0  ;;  %v2175_v53 = vmul.f32 %v4478_v24, %v4478_v24 }
 0x357   : > { %2066 = vadd.xlane.f32.xlu0 %v2065_v51  ;;  %2229 = vadd.xlane.f32.xlu1 %v2228_v44  ;;  %v2225_v51 = vsel %vm898_vm1, %v2175_v53, 0.0 }
 0x35b   : > { %v3190_v38 = vpop.f32.mrf.mxu1  ;;  %2232 = vadd.xlane.f32.xlu0 %v2231_v2  ;;  %2223 = vadd.xlane.f32.xlu1 %v2222_v29 }
 0x35c   : > { %v4498_v41 = vadd.f32 %v3190_v38, %v4400_v49 }
 0x35d   : > { %v1959_v21 = vpop.f32.mrf.mxu1 }
 0x35e   : > { %v4501_v6 = vadd.f32 %v1959_v21, %v4400_v49  ;;  %v2080_v44 = vsel %vm898_vm1, %v4498_v41, 0.0  ;;  %v2180_v53 = vmul.f32 %v4498_v41, %v4498_v41 }
 0x35f   : > { %v3191_v16 = vpop.f32.mrf.mxu1  ;;  %2226 = vadd.xlane.f32.xlu0 %v2225_v51  ;;  %2081 = vadd.xlane.f32.xlu1 %v2080_v44 }
 0x360   : > { %v4507_v63 = vadd.f32 %v3191_v16, %v4400_v49  ;;  %v2074_v21 = vsel %vm898_vm1, %v4501_v6, 0.0  ;;  %v2240_v44 = vsel %vm898_vm1, %v2180_v53, 0.0 }
 0x361   : > { %v1962_v2 = vpop.f32.mrf.mxu1 }
 0x362   : > { %v4510_v29 = vadd.f32 %v1962_v2, %v4400_v49  ;;  %v2083_v38 = vsel %vm898_vm1, %v4507_v63, 0.0  ;;  %v2181_v16 = vmul.f32 %v4507_v63, %v4507_v63  ;;  %v2178_v2 = vmul.f32 %v4501_v6, %v4501_v6 }
 0x363   : > { %2084 = vadd.xlane.f32.xlu0 %v2083_v38  ;;  %2075 = vadd.xlane.f32.xlu1 %v2074_v21 }
 0x364   : > { %v2077_v51 = vsel %vm898_vm1, %v4510_v29, 0.0  ;;  %v2243_v61 = vsel %vm898_vm1, %v2181_v16, 0.0  ;;  %v2234_v32 = vsel %vm898_vm1, %v2178_v2, 0.0  ;;  %v2179_v38 = vmul.f32 %v4510_v29, %v4510_v29 }
 0x367   : > { %2078 = vadd.xlane.f32.xlu0 %v2077_v51  ;;  %2241 = vadd.xlane.f32.xlu1 %v2240_v44  ;;  %v2237_v51 = vsel %vm898_vm1, %v2179_v38, 0.0 }
 0x36b   : > { %v3194_v21 = vpop.f32.mrf.mxu1  ;;  %2244 = vadd.xlane.f32.xlu0 %v2243_v61  ;;  %2235 = vadd.xlane.f32.xlu1 %v2234_v32 }
 0x36c   : > { %v4530_v53 = vadd.f32 %v3194_v21, %v4400_v49 }
 0x36d   : > { %v1975_v43 = vpop.f32.mrf.mxu1 }
 0x36e   : > { %v4533_v33 = vadd.f32 %v1975_v43, %v4400_v49  ;;  %v2092_v44 = vsel %vm898_vm1, %v4530_v53, 0.0  ;;  %v2184_v38 = vmul.f32 %v4530_v53, %v4530_v53 }
 0x36f   : > { %v3195_v16 = vpop.f32.mrf.mxu1  ;;  %2238 = vadd.xlane.f32.xlu0 %v2237_v51  ;;  %2093 = vadd.xlane.f32.xlu1 %v2092_v44 }
 0x370   : > { %5252 = vst [vmem:[#allocation18_spill] sm:$0xff] %v4533_v33  ;;  %v4539_v2 = vadd.f32 %v3195_v16, %v4400_v49  ;;  %v2086_v43 = vsel %vm898_vm1, %v4533_v33, 0.0  ;;  %v2252_v44 = vsel %vm898_vm1, %v2184_v38, 0.0 }
 0x371   : > { %v1978_v61 = vpop.f32.mrf.mxu1 }
 0x372   : > { %v4542_v32 = vadd.f32 %v1978_v61, %v4400_v49  ;;  %v2095_v21 = vsel %vm898_vm1, %v4539_v2, 0.0  ;;  %v2185_v16 = vmul.f32 %v4539_v2, %v4539_v2  ;;  %v2182_v61 = vmul.f32 %v4533_v33, %v4533_v33 }
 0x373   : > { %2096 = vadd.xlane.f32.xlu0 %v2095_v21  ;;  %2087 = vadd.xlane.f32.xlu1 %v2086_v43 }
 0x374   : > { %5253 = vst [vmem:[#allocation19_spill] sm:$0xff] %v4542_v32  ;;  %v2089_v51 = vsel %vm898_vm1, %v4542_v32, 0.0  ;;  %v2255_v31 = vsel %vm898_vm1, %v2185_v16, 0.0  ;;  %v2246_v26 = vsel %vm898_vm1, %v2182_v61, 0.0  ;;  %v2183_v21 = vmul.f32 %v4542_v32, %v4542_v32 }
 0x377   : > { %2090 = vadd.xlane.f32.xlu0 %v2089_v51  ;;  %2253 = vadd.xlane.f32.xlu1 %v2252_v44  ;;  %v2249_v51 = vsel %vm898_vm1, %v2183_v21, 0.0 }
 0x37b   : > { %v3198_v43 = vpop.f32.mrf.mxu1  ;;  %2256 = vadd.xlane.f32.xlu0 %v2255_v31  ;;  %2247 = vadd.xlane.f32.xlu1 %v2246_v26 }
 0x37c   : > { %v4562_v38 = vadd.f32 %v3198_v43, %v4400_v49 }
 0x37d   : > { %v1991_v37 = vpop.f32.mrf.mxu1 }
 0x37e   : > { %5254 = vst [vmem:[#allocation20_spill] sm:$0xff] %v4562_v38  ;;  %v4565_v13 = vadd.f32 %v1991_v37, %v4400_v49  ;;  %v2104_v44 = vsel %vm898_vm1, %v4562_v38, 0.0  ;;  %v2188_v21 = vmul.f32 %v4562_v38, %v4562_v38 }
 0x37f   : > { %v3199_v16 = vpop.f32.mrf.mxu1  ;;  %2250 = vadd.xlane.f32.xlu0 %v2249_v51  ;;  %2105 = vadd.xlane.f32.xlu1 %v2104_v44 }
 0x380   : > { %5255 = vst [vmem:[#allocation21_spill] sm:$0xff] %v4565_v13  ;;  %v4571_v61 = vadd.f32 %v3199_v16, %v4400_v49  ;;  %v2098_v37 = vsel %vm898_vm1, %v4565_v13, 0.0  ;;  %v2264_v44 = vsel %vm898_vm1, %v2188_v21, 0.0 }
 0x381   : > { %v1994_v31 = vpop.f32.mrf.mxu1 }
 0x382   : > { %5256 = vst [vmem:[#allocation22_spill] sm:$0xff] %v4571_v61  ;;  %v4574_v26 = vadd.f32 %v1994_v31, %v4400_v49  ;;  %v2107_v43 = vsel %vm898_vm1, %v4571_v61, 0.0  ;;  %v2189_v16 = vmul.f32 %v4571_v61, %v4571_v61  ;;  %v2186_v31 = vmul.f32 %v4565_v13, %v4565_v13 }
 0x383   : > { %2108 = vadd.xlane.f32.xlu0 %v2107_v43  ;;  %2099 = vadd.xlane.f32.xlu1 %v2098_v37 }
 0x384   : > { %5257 = vst [vmem:[#allocation23_spill] sm:$0xff] %v4574_v26  ;;  %v2101_v51 = vsel %vm898_vm1, %v4574_v26, 0.0  ;;  %v2267_v40 = vsel %vm898_vm1, %v2189_v16, 0.0  ;;  %v2258_v12 = vsel %vm898_vm1, %v2186_v31, 0.0  ;;  %v2187_v43 = vmul.f32 %v4574_v26, %v4574_v26 }
 0x387   : > { %2102 = vadd.xlane.f32.xlu0 %v2101_v51  ;;  %2265 = vadd.xlane.f32.xlu1 %v2264_v44  ;;  %v2261_v51 = vsel %vm898_vm1, %v2187_v43, 0.0 }
 0x38b   : > { %2268 = vadd.xlane.f32.xlu0 %v2267_v40  ;;  %2259 = vadd.xlane.f32.xlu1 %v2258_v12 }
 0x38c   : > { %v3202_v37 = vpop.f32.mrf.mxu1 }
 0x38d   : > { %v4594_v21 = vadd.f32 %v3202_v37, %v4400_v49 }
 0x38e   : > { %v2007_v3 = vpop.f32.mrf.mxu1 }
 0x38f   : > { %5258 = vst [vmem:[#allocation24_spill] sm:$0xff] %v4594_v21  ;;  %v4597_v7 = vadd.f32 %v2007_v3, %v4400_v49  ;;  %v2116_v44 = vsel %vm898_vm1, %v4594_v21, 0.0  ;;  %2262 = vadd.xlane.f32.xlu0 %v2261_v51  ;;  %v2192_v43 = vmul.f32 %v4594_v21, %v4594_v21 }
 0x390   : > { %v3203_v16 = vpop.f32.mrf.mxu1  ;;  %2117 = vadd.xlane.f32.xlu1 %v2116_v44 }
 0x391   : > { %5259 = vst [vmem:[#allocation25_spill] sm:$0xff] %v4597_v7  ;;  %v4603_v31 = vadd.f32 %v3203_v16, %v4400_v49  ;;  %v2110_v3 = vsel %vm898_vm1, %v4597_v7, 0.0  ;;  %v2276_v44 = vsel %vm898_vm1, %v2192_v43, 0.0 }
 0x392   : > { %v2010_v40 = vpop.f32.mrf.mxu1 }
 0x393   : > { %5260 = vst [vmem:[#allocation26_spill] sm:$0xff] %v4603_v31  ;;  %v4606_v12 = vadd.f32 %v2010_v40, %v4400_v49  ;;  %v2119_v37 = vsel %vm898_vm1, %v4603_v31, 0.0  ;;  %v2193_v16 = vmul.f32 %v4603_v31, %v4603_v31  ;;  %v2190_v40 = vmul.f32 %v4597_v7, %v4597_v7 }
 0x394   : > { %2120 = vadd.xlane.f32.xlu0 %v2119_v37  ;;  %2111 = vadd.xlane.f32.xlu1 %v2110_v3 }
 0x395   : > { %5261 = vst [vmem:[#allocation27_spill] sm:$0xff] %v4606_v12  ;;  %v2113_v51 = vsel %vm898_vm1, %v4606_v12, 0.0  ;;  %v2279_v37 = vsel %vm898_vm1, %v2193_v16, 0.0  ;;  %v2270_v3 = vsel %vm898_vm1, %v2190_v40, 0.0  ;;  %v2191_v15 = vmul.f32 %v4606_v12, %v4606_v12 }
 0x398   : > { %2114 = vadd.xlane.f32.xlu0 %v2113_v51  ;;  %2277 = vadd.xlane.f32.xlu1 %v2276_v44  ;;  %v2273_v44 = vsel %vm898_vm1, %v2191_v15, 0.0 }
 0x39a   : > { %v3206_v27 = vpop.f32.mrf.mxu1 }
 0x39b   : > { %v4622_v18 = vadd.f32 %v3206_v27, %v4400_v49 }
 0x39c   : > { %2280 = vadd.xlane.f32.xlu0 %v2279_v37  ;;  %2271 = vadd.xlane.f32.xlu1 %v2270_v3  ;;  %v2023_v43 = vpop.f32.mrf.mxu1 }
 0x39d   : > { %5262 = vst [vmem:[#allocation28_spill] sm:$0xff] %v4622_v18  ;;  %v2128_v9 = vsel %vm898_vm1, %v4622_v18, 0.0  ;;  %v4631_v51 = vadd.f32 %v2023_v43, %v4400_v49 }
 0x39e   : > { %v3207_v7 = vpop.f32.mrf.mxu1 }
 0x39f   : > { %5263 = vst [vmem:[#allocation29_spill] sm:$0xff] %v4631_v51  ;;  %v4634_v27 = vadd.f32 %v3207_v7, %v4400_v49  ;;  %v2122_v3 = vsel %vm898_vm1, %v4631_v51, 0.0  ;;  %v2194_v43 = vmul.f32 %v4631_v51, %v4631_v51 }
 0x3a0   : > { %2274 = vadd.xlane.f32.xlu0 %v2273_v44  ;;  %2129 = vadd.xlane.f32.xlu1 %v2128_v9  ;;  %v2026_v16 = vpop.f32.mrf.mxu1 }
 0x3a1   : > { %5264 = vst [vmem:[#allocation30_spill] sm:$0xff] %v4634_v27  ;;  %v2131_v40 = vsel %vm898_vm1, %v4634_v27, 0.0  ;;  %v4640_v37 = vadd.f32 %v2026_v16, %v4400_v49  ;;  %v2282_v9 = vsel %vm898_vm1, %v2194_v43, 0.0  ;;  %v2196_v49 = vmul.f32 %v4622_v18, %v4622_v18 }
 0x3a3   : > { %5265 = vst [vmem:[#allocation31_spill] sm:$0xff] %v4640_v37  ;;  %v2125_v15 = vsel %vm898_vm1, %v4640_v37, 0.0  ;;  %v2195_v7 = vmul.f32 %v4640_v37, %v4640_v37  ;;  %v2288_v16 = vsel %vm898_vm1, %v2196_v49, 0.0 }
 0x3a4   : > { %2132 = vadd.xlane.f32.xlu0 %v2131_v40  ;;  %2123 = vadd.xlane.f32.xlu1 %v2122_v3  ;;  %v2197_v40 = vmul.f32 %v4634_v27, %v4634_v27 }
 0x3a5   : > { %v2285_v44 = vsel %vm898_vm1, %v2195_v7, 0.0 }
 0x3a6   : > { %v2291_v3 = vsel %vm898_vm1, %v2197_v40, 0.0 }
 0x3a8   : > { %2126 = vadd.xlane.f32.xlu0 %v2125_v15  ;;  %2283 = vadd.xlane.f32.xlu1 %v2282_v9 }
 0x3ac   : > { %2286 = vadd.xlane.f32.xlu0 %v2285_v44  ;;  %2289 = vadd.xlane.f32.xlu1 %v2288_v16 }
 0x3b0   : > { %2292 = vadd.xlane.f32.xlu0 %v2291_v3 }
 0x3b8   : > { %v2046_v43 = vpop.xlane.xlu1 %2045 }
 0x3b9   : > { %v2136_v12 = vmul.f32 0.03125, %v2046_v43 }
 0x3bb   : > { %v2328_v18 = vmul.f32 %v2136_v12, %v2136_v12 }
 0x3bc   : > { %v2049_v51 = vpop.xlane.xlu0 %2048  ;;  %v2040_v37 = vpop.xlane.xlu1 %2039 }
 0x3bd   : > { %v4658_v31 = vmul.f32 0.03125, %v2049_v51  ;;  %v4660_v7 = vmul.f32 0.03125, %v2040_v37 }
 0x3bf   : > { %v2329_v44 = vmul.f32 %v4658_v31, %v4658_v31  ;;  %v2326_v27 = vmul.f32 %v4660_v7, %v4660_v7 }
 0x3c0   : > { %v2043_v15 = vpop.xlane.xlu0 %2042  ;;  %v2206_v9 = vpop.xlane.xlu1 %2205 }
 0x3c1   : > { %v2296_v49 = vmul.f32 0.03125, %v2206_v9  ;;  %v4664_v16 = vmul.f32 0.03125, %v2043_v15 }
 0x3c3   : > { %v2360_v14 = vsub.f32 %v2296_v49, %v2328_v18  ;;  %v2327_v37 = vmul.f32 %v4664_v16, %v4664_v16 }
 0x3c4   : > { %v2209_v40 = vpop.xlane.xlu0 %2208  ;;  %v2200_v3 = vpop.xlane.xlu1 %2199 }
 0x3c5   : > { %v2392_v43 = vmax.f32 %v2360_v14, 0.0  ;;  %v2297_v51 = vmul.f32 0.03125, %v2209_v40  ;;  %v2294_v21 = vmul.f32 0.03125, %v2200_v3 }
 0x3c7   : > { %v2456_v52 = vadd.f32 1e-05, %v2392_v43  ;;  %v2361_v26 = vsub.f32 %v2297_v51, %v2329_v44  ;;  %v2358_v13 = vsub.f32 %v2294_v21, %v2326_v27 }
 0x3c8   : > { %v2203_v18 = vpop.xlane.xlu0 %2202  ;;  %v2058_v9 = vpop.xlane.xlu1 %2057 }
 0x3c9   : > { %3311 = vrsqrt.f32 %v2456_v52  ;;  %v2393_v49 = vmax.f32 %v2361_v26, 0.0  ;;  %v2390_v15 = vmax.f32 %v2358_v13, 0.0  ;;  %v2295_v57 = vmul.f32 0.03125, %v2203_v18 }
 0x3ca   : > { %v4670_v40 = vmul.f32 0.03125, %v2058_v9 }
 0x3cb   : > { %v2457_v42 = vadd.f32 1e-05, %v2393_v49  ;;  %v2454_v61 = vadd.f32 1e-05, %v2390_v15  ;;  %v2359_v5 = vsub.f32 %v2295_v57, %v2327_v37  ;;  %v2552_v57 = vsub.s32 6, %v3523_v62 }
 0x3cc   : > { %v2061_v38 = vpop.xlane.xlu0 %2060  ;;  %v2052_v34 = vpop.xlane.xlu1 %2051  ;;  %v2332_v52 = vmul.f32 %v4670_v40, %v4670_v40  ;;  %v2588_v37 = vsub.s32 7, %v3523_v62 }
 0x3cd   : > { %3313 = vrsqrt.f32 %v2457_v42  ;;  %v2391_v14 = vmax.f32 %v2359_v5, 0.0  ;;  %v4672_v27 = vmul.f32 0.03125, %v2061_v38  ;;  %v4676_v13 = vmul.f32 0.03125, %v2052_v34 }
 0x3ce   : > { %3315 = vrsqrt.f32 %v2454_v61  ;;  %v2424_v5 = vsub.f32 %v4403_v11, %v2136_v12 }
 0x3cf   : > { %v2455_v21 = vadd.f32 1e-05, %v2391_v14  ;;  %v2333_v42 = vmul.f32 %v4672_v27, %v4672_v27  ;;  %v2330_v18 = vmul.f32 %v4676_v13, %v4676_v13  ;;  %v4688_v14 = vrot.slane %v4345_v55, %v2552_v57 }
 0x3d0   : > { %v2055_v44 = vpop.xlane.xlu0 %2054  ;;  %v2218_v3 = vpop.xlane.xlu1 %2217 }
 0x3d1   : > { %3317 = vrsqrt.f32 %v2455_v21  ;;  %v2300_v26 = vmul.f32 0.03125, %v2218_v3  ;;  %v4682_v61 = vmul.f32 0.03125, %v2055_v44  ;;  %v2425_v44 = vsub.f32 %v4411_v47, %v4658_v31 }
 0x3d3   : > { %v2364_v43 = vsub.f32 %v2300_v26, %v2332_v52  ;;  %v2331_v52 = vmul.f32 %v4682_v61, %v4682_v61 }
 0x3d4   : > { %v2221_v38 = vpop.xlane.xlu0 %2220  ;;  %v2212_v51 = vpop.xlane.xlu1 %2211 }
 0x3d5   : > { %v2396_v34 = vmax.f32 %v2364_v43, 0.0  ;;  %v2301_v9 = vmul.f32 0.03125, %v2221_v38  ;;  %v2298_v49 = vmul.f32 0.03125, %v2212_v51  ;;  %v4695_v43 = vrot.slane %v4345_v55, %v2588_v37 }
 0x3d6   : > { %v3312_v15 = vpop.eup %3311 }
 0x3d7   : > { %v2460_v11 = vadd.f32 1e-05, %v2396_v34  ;;  %v2365_v12 = vsub.f32 %v2301_v9, %v2333_v42  ;;  %v2362_v21 = vsub.f32 %v2298_v49, %v2330_v18  ;;  %v2520_v3 = vmul.f32 %v3312_v15, %v2424_v5  ;;  %v279_v34 = vld [vmem:[%s5170_s5 + $0x8] sm:$0x3] }
 0x3d8   : > { %v2215_v26 = vpop.xlane.xlu0 %2214  ;;  %v2070_v32 = vpop.xlane.xlu1 %2069  ;;  %v2422_v42 = vsub.f32 %v4406_v50, %v4660_v7  ;;  %v5266_v7 = vmax.f32 %v3966_v28, 0.0 }
 0x3d9   : > { %3319 = vrsqrt.f32 %v2460_v11  ;;  %v2397_v38 = vmax.f32 %v2365_v12, 0.0  ;;  %v2394_v51 = vmax.f32 %v2362_v21, 0.0  ;;  %v2299_v57 = vmul.f32 0.03125, %v2215_v26 }
 0x3da   : > { %v3314_v33 = vpop.eup %3313  ;;  %v2556_v5 = vmul.f32 %v4688_v14, %v2520_v3  ;;  %v4704_v21 = vmul.f32 0.03125, %v2070_v32 }
 0x3db   : > { %v3316_v18 = vpop.eup %3315  ;;  %v2461_v47 = vadd.f32 1e-05, %v2397_v38  ;;  %v2363_v31 = vsub.f32 %v2299_v57, %v2331_v52  ;;  %v2521_v9 = vmul.f32 %v3314_v33, %v2425_v44  ;;  %v2458_v55 = vadd.f32 1e-05, %v2394_v51 }
 0x3dc   : > { %v2073_v37 = vpop.xlane.xlu0 %2072  ;;  %v2064_v49 = vpop.xlane.xlu1 %2063  ;;  %v2592_v15 = vadd.f32 %v4695_v43, %v2556_v5  ;;  %v2518_v11 = vmul.f32 %v3316_v18, %v2422_v42  ;;  %v5267_v52 = vsub.s32 0, %v3523_v62  ;;  %v2423_v38 = vsub.f32 %v4414_v25, %v4664_v16 }
 0x3dd   : > { %3321 = vrsqrt.f32 %v2461_v47  ;;  %v2395_v12 = vmax.f32 %v2363_v31, 0.0  ;;  %v2557_v33 = vmul.f32 %v4688_v14, %v2521_v9  ;;  %v4716_v57 = vmul.f32 0.03125, %v2073_v37 }
 0x3de   : > { %v3318_v50 = vpop.eup %3317  ;;  %v2624_v3 = vadd.f32 %v2592_v15, %v5266_v7  ;;  %v4710_v26 = vrot.slane %v279_v34, %v5267_v52  ;;  %v2554_v44 = vmul.f32 %v4688_v14, %v2518_v11  ;;  %v4718_v32 = vmul.f32 0.03125, %v2064_v49 }
 0x3df   : > { %v2459_v51 = vadd.f32 1e-05, %v2395_v12  ;;  %3323 = vrsqrt.f32 %v2458_v55  ;;  %v2593_v18 = vadd.f32 %v4695_v43, %v2557_v33  ;;  %v2336_v31 = vmul.f32 %v4704_v21, %v4704_v21 }
 0x3e0   : > { %v2067_v42 = vpop.xlane.xlu0 %2066  ;;  %v2230_v28 = vpop.xlane.xlu1 %2229  ;;  %v2656_v5 = vmax.f32 %v2624_v3, 0.0  ;;  %v2590_v47 = vadd.f32 %v4695_v43, %v2554_v44  ;;  %v2519_v9 = vmul.f32 %v3318_v50, %v2423_v38  ;;  %v5268_v16 = vmax.f32 %v3958_v22, 0.0 }
 0x3e1   : > { %3325 = vrsqrt.f32 %v2459_v51  ;;  %v2304_v34 = vmul.f32 0.03125, %v2230_v28  ;;  %v5269_v55 = vmax.f32 %v3961_v8, 0.0  ;;  %v2337_v15 = vmul.f32 %v4716_v57, %v4716_v57 }
 0x3e2   : > { %v2692_v25 = vmul.f32 %v4710_v26, %v2656_v5  ;;  %v2625_v37 = vadd.f32 %v2593_v18, %v5268_v16  ;;  %v2334_v11 = vmul.f32 %v4718_v32, %v4718_v32  ;;  %v2555_v7 = vmul.f32 %v4688_v14, %v2519_v9 }
 0x3e3   : > { %v2622_v49 = vadd.f32 %v2590_v47, %v5269_v55  ;;  %v2368_v12 = vsub.f32 %v2304_v34, %v2336_v31  ;;  %v4734_v3 = vmul.f32 0.03125, %v2067_v42  ;;  %v2428_v18 = vsub.f32 %v4434_v60, %v4670_v40 }
 0x3e4   : > { %v2233_v50 = vpop.xlane.xlu0 %2232  ;;  %v2224_v52 = vpop.xlane.xlu1 %2223  ;;  %v2728_v33 = vsel %vm898_vm1, %v2692_v25, 0.0  ;;  %v2657_v22 = vmax.f32 %v2625_v37, 0.0  ;;  %v2591_v28 = vadd.f32 %v4695_v43, %v2555_v7  ;;  %v2429_v42 = vsub.f32 %v4443_v45, %v4672_v27 }
 0x3e5   : > { %v2654_v44 = vmax.f32 %v2622_v49, 0.0  ;;  %v2400_v38 = vmax.f32 %v2368_v12, 0.0  ;;  %v2305_v8 = vmul.f32 0.03125, %v2233_v50  ;;  %v2302_v51 = vmul.f32 0.03125, %v2224_v52  ;;  %2729 = vadd.xlane.f32.xlu1 %v2728_v33 }
 0x3e6   : > { %v3320_v5 = vpop.eup %3319  ;;  %v2693_v47 = vmul.f32 %v4710_v26, %v2657_v22  ;;  %v5270_v16 = vmax.f32 %v3971_v4, 0.0  ;;  %v2335_v55 = vmul.f32 %v4734_v3, %v4734_v3 }
 0x3e7   : > { %v2690_v31 = vmul.f32 %v4710_v26, %v2654_v44  ;;  %v2464_v34 = vadd.f32 1e-05, %v2400_v38  ;;  %v2369_v9 = vsub.f32 %v2305_v8, %v2337_v15  ;;  %v2366_v25 = vsub.f32 %v2302_v51, %v2334_v11 }
 0x3e8   : > { %v2623_v37 = vadd.f32 %v2591_v28, %v5270_v16  ;;  %v2227_v49 = vpop.xlane.xlu0 %2226  ;;  %v2082_v12 = vpop.xlane.xlu1 %2081  ;;  %v2731_v60 = vsel %vm898_vm1, %v2693_v47, 0.0  ;;  %v2524_v45 = vmul.f32 %v3320_v5, %v2428_v18 }
 0x3e9   : > { %v2722_v40 = vsel %vm898_vm1, %v2690_v31, 0.0  ;;  %3327 = vrsqrt.f32 %v2464_v34  ;;  %v2401_v27 = vmax.f32 %v2369_v9, 0.0  ;;  %v2398_v7 = vmax.f32 %v2366_v25, 0.0  ;;  %2732 = vadd.xlane.f32.xlu0 %v2731_v60 }
 0x3ea   : > { %v2303_v50 = vmul.f32 0.03125, %v2227_v49  ;;  %2723 = vadd.xlane.f32.xlu1 %v2722_v40  ;;  %v3322_v15 = vpop.eup %3321  ;;  %v2655_v11 = vmax.f32 %v2623_v37, 0.0  ;;  %v2560_v4 = vmul.f32 %v4688_v14, %v2524_v45  ;;  %v4753_v47 = vmul.f32 0.03125, %v2082_v12 }
 0x3eb   : > { %v2465_v52 = vadd.f32 1e-05, %v2401_v27  ;;  %v2525_v22 = vmul.f32 %v3322_v15, %v2429_v42  ;;  %v2462_v44 = vadd.f32 1e-05, %v2398_v7  ;;  %v2426_v34 = vsub.f32 %v4437_v23, %v4676_v13 }
 0x3ec   : > { %v2367_v33 = vsub.f32 %v2303_v50, %v2335_v55  ;;  %v2085_v38 = vpop.xlane.xlu0 %2084  ;;  %v2076_v8 = vpop.xlane.xlu1 %2075  ;;  %v2691_v51 = vmul.f32 %v4710_v26, %v2655_v11  ;;  %v2596_v28 = vadd.f32 %v4695_v43, %v2560_v4  ;;  %v5271_v42 = vmax.f32 %v4020_v58, 0.0 }
 0x3ed   : > { %v3324_v5 = vpop.eup %3323  ;;  %3329 = vrsqrt.f32 %v2465_v52  ;;  %v2561_v16 = vmul.f32 %v4688_v14, %v2525_v22  ;;  %v2427_v37 = vsub.f32 %v4446_v0, %v4682_v61  ;;  %v4763_v49 = vmul.f32 0.03125, %v2085_v38 }
 0x3ee   : > { %v2399_v18 = vmax.f32 %v2367_v33, 0.0  ;;  %v3326_v31 = vpop.eup %3325  ;;  %v2725_v9 = vsel %vm898_vm1, %v2691_v51, 0.0  ;;  %v2628_v25 = vadd.f32 %v2596_v28, %v5271_v42  ;;  %v4765_v60 = vmul.f32 0.03125, %v2076_v8 }
 0x3ef   : > { %2726 = vadd.xlane.f32.xlu0 %v2725_v9  ;;  %3331 = vrsqrt.f32 %v2462_v44  ;;  %v2597_v13 = vadd.f32 %v4695_v43, %v2561_v16  ;;  %v2522_v45 = vmul.f32 %v3324_v5, %v2426_v34  ;;  %v2340_v58 = vmul.f32 %v4753_v47, %v4753_v47 }
 0x3f0   : > { %v2463_v55 = vadd.f32 1e-05, %v2399_v18  ;;  %v2079_v12 = vpop.xlane.xlu0 %2078  ;;  %v2242_v40 = vpop.xlane.xlu1 %2241  ;;  %v2660_v23 = vmax.f32 %v2628_v25, 0.0  ;;  %v2523_v7 = vmul.f32 %v3326_v31, %v2427_v37  ;;  %v5272_v61 = vmax.f32 %v4012_v20, 0.0 }
 0x3f1   : > { %v2308_v27 = vmul.f32 0.03125, %v2242_v40  ;;  %v2558_v15 = vmul.f32 %v4688_v14, %v2522_v45  ;;  %v2341_v11 = vmul.f32 %v4763_v49, %v4763_v49  ;;  %v2338_v4 = vmul.f32 %v4765_v60, %v4765_v60 }
 0x3f2   : > { %3333 = vrsqrt.f32 %v2463_v55  ;;  %v2696_v0 = vmul.f32 %v4710_v26, %v2660_v23  ;;  %v2629_v50 = vadd.f32 %v2597_v13, %v5272_v61  ;;  %v2559_v33 = vmul.f32 %v4688_v14, %v2523_v7 }
 0x3f3   : > { %v2372_v52 = vsub.f32 %v2308_v27, %v2340_v58  ;;  %v4779_v22 = vmul.f32 0.03125, %v2079_v12  ;;  %v2594_v20 = vadd.f32 %v4695_v43, %v2558_v15  ;;  %v2432_v9 = vsub.f32 %v4466_v30, %v4704_v21 }
 0x3f4   : > { %v2245_v44 = vpop.xlane.xlu0 %2244  ;;  %v2236_v38 = vpop.xlane.xlu1 %2235  ;;  %v2740_v8 = vsel %vm898_vm1, %v2696_v0, 0.0  ;;  %v2661_v51 = vmax.f32 %v2629_v50, 0.0  ;;  %v2595_v31 = vadd.f32 %v4695_v43, %v2559_v33  ;;  %v2433_v42 = vsub.f32 %v4475_v46, %v4716_v57 }
 0x3f5   : > { %v2404_v28 = vmax.f32 %v2372_v52, 0.0  ;;  %v2309_v5 = vmul.f32 0.03125, %v2245_v44  ;;  %v2306_v18 = vmul.f32 0.03125, %v2236_v38  ;;  %2741 = vadd.xlane.f32.xlu1 %v2740_v8  ;;  %v5273_v16 = vmax.f32 %v4015_v59, 0.0 }
 0x3f6   : > { %v3328_v34 = vpop.eup %3327  ;;  %v2697_v25 = vmul.f32 %v4710_v26, %v2661_v51  ;;  %v5274_v23 = vmax.f32 %v4025_v19, 0.0  ;;  %v2339_v45 = vmul.f32 %v4779_v22, %v4779_v22 }
 0x3f7   : > { %v2626_v37 = vadd.f32 %v2594_v20, %v5273_v16  ;;  %v2468_v55 = vadd.f32 1e-05, %v2404_v28  ;;  %v2373_v12 = vsub.f32 %v2309_v5, %v2341_v11  ;;  %v2370_v40 = vsub.f32 %v2306_v18, %v2338_v4 }
 0x3f8   : > { %v2627_v13 = vadd.f32 %v2595_v31, %v5274_v23  ;;  %v2239_v58 = vpop.xlane.xlu0 %2238  ;;  %v2094_v27 = vpop.xlane.xlu1 %2093  ;;  %v2743_v30 = vsel %vm898_vm1, %v2697_v25, 0.0  ;;  %v2528_v46 = vmul.f32 %v3328_v34, %v2432_v9  ;;  %v2430_v18 = vsub.f32 %v4469_v10, %v4718_v32 }
 0x3f9   : > { %v2658_v21 = vmax.f32 %v2626_v37, 0.0  ;;  %3335 = vrsqrt.f32 %v2468_v55  ;;  %v2405_v57 = vmax.f32 %v2373_v12, 0.0  ;;  %v2402_v7 = vmax.f32 %v2370_v40, 0.0  ;;  %2744 = vadd.xlane.f32.xlu0 %v2743_v30 }
 0x3fa   : > { %v2307_v59 = vmul.f32 0.03125, %v2239_v58  ;;  %v3330_v0 = vpop.eup %3329  ;;  %v2659_v50 = vmax.f32 %v2627_v13, 0.0  ;;  %v2564_v19 = vmul.f32 %v4688_v14, %v2528_v46  ;;  %v4800_v28 = vmul.f32 0.03125, %v2094_v27 }
 0x3fb   : > { %v2694_v61 = vmul.f32 %v4710_v26, %v2658_v21  ;;  %v2469_v15 = vadd.f32 1e-05, %v2405_v57  ;;  %v2529_v4 = vmul.f32 %v3330_v0, %v2433_v42  ;;  %v2466_v52 = vadd.f32 1e-05, %v2402_v7 }
 0x3fc   : > { %v2371_v11 = vsub.f32 %v2307_v59, %v2339_v45  ;;  %v2097_v44 = vpop.xlane.xlu0 %2096  ;;  %v2088_v38 = vpop.xlane.xlu1 %2087  ;;  %v2695_v8 = vmul.f32 %v4710_v26, %v2659_v50  ;;  %v2600_v34 = vadd.f32 %v4695_v43, %v2564_v19  ;;  %v2431_v42 = vsub.f32 %v4478_v24, %v4734_v3 }
 0x3fd   : > { %v2734_v33 = vsel %vm898_vm1, %v2694_v61, 0.0  ;;  %v3332_v51 = vpop.eup %3331  ;;  %3337 = vrsqrt.f32 %v2469_v15  ;;  %v2565_v9 = vmul.f32 %v4688_v14, %v2529_v4  ;;  %v4809_v16 = vmul.f32 0.03125, %v2097_v44 }
 0x3fe   : > { %v2403_v20 = vmax.f32 %v2371_v11, 0.0  ;;  %2735 = vadd.xlane.f32.xlu1 %v2734_v33  ;;  %v2737_v31 = vsel %vm898_vm1, %v2695_v8, 0.0  ;;  %v4811_v37 = vmul.f32 0.03125, %v2088_v38  ;;  %3339 = vrsqrt.f32 %v2466_v52 }
 0x3ff   : > { %v3334_v5 = vpop.eup %3333  ;;  %2738 = vadd.xlane.f32.xlu0 %v2737_v31  ;;  %v5275_v10 = vmax.f32 %v4074_v54, 0.0  ;;  %v2601_v40 = vadd.f32 %v4695_v43, %v2565_v9  ;;  %v2526_v23 = vmul.f32 %v3332_v51, %v2430_v18  ;;  %v2344_v13 = vmul.f32 %v4800_v28, %v4800_v28 }
 0x400   : > { %v2467_v25 = vadd.f32 1e-05, %v2403_v20  ;;  %v2091_v55 = vpop.xlane.xlu0 %2090  ;;  %v2254_v12 = vpop.xlane.xlu1 %2253  ;;  %v2527_v3 = vmul.f32 %v3334_v5, %v2431_v42  ;;  %v2436_v45 = vsub.f32 %v4498_v41, %v4753_v47  ;;  %v5276_v27 = vmax.f32 %v4065_v39, 0.0 }
 0x401   : > { %v2632_v32 = vadd.f32 %v2600_v34, %v5275_v10  ;;  %v2312_v24 = vmul.f32 0.03125, %v2254_v12  ;;  %v2562_v21 = vmul.f32 %v4688_v14, %v2526_v23  ;;  %v2345_v54 = vmul.f32 %v4809_v16, %v4809_v16 }
 0x402   : > { %3341 = vrsqrt.f32 %v2467_v25  ;;  %v2633_v30 = vadd.f32 %v2601_v40, %v5276_v27  ;;  %v2342_v46 = vmul.f32 %v4811_v37, %v4811_v37  ;;  %v2563_v7 = vmul.f32 %v4688_v14, %v2527_v3 }
 0x403   : > { %v2664_v58 = vmax.f32 %v2632_v32, 0.0  ;;  %v2376_v57 = vsub.f32 %v2312_v24, %v2344_v13  ;;  %v4828_v59 = vmul.f32 0.03125, %v2091_v55  ;;  %v2598_v39 = vadd.f32 %v4695_v43, %v2562_v21 }
 0x404   : > { %v2257_v0 = vpop.xlane.xlu0 %2256  ;;  %v2248_v61 = vpop.xlane.xlu1 %2247  ;;  %v2665_v47 = vmax.f32 %v2633_v30, 0.0  ;;  %v2599_v11 = vadd.f32 %v4695_v43, %v2563_v7  ;;  %v2437_v52 = vsub.f32 %v4507_v63, %v4763_v49  ;;  %v5277_v38 = vmax.f32 %v4069_v35, 0.0 }
 0x405   : > { %v2700_v41 = vmul.f32 %v4710_v26, %v2664_v58  ;;  %v2408_v50 = vmax.f32 %v2376_v57, 0.0  ;;  %v2313_v19 = vmul.f32 0.03125, %v2257_v0  ;;  %v2310_v15 = vmul.f32 0.03125, %v2248_v61 }
 0x406   : > { %v3336_v4 = vpop.eup %3335  ;;  %v2701_v44 = vmul.f32 %v4710_v26, %v2665_v47  ;;  %v2630_v8 = vadd.f32 %v2598_v39, %v5277_v38  ;;  %v5278_v18 = vmax.f32 %v4079_v36, 0.0  ;;  %v2343_v34 = vmul.f32 %v4828_v59, %v4828_v59 }
 0x407   : > { %v2752_v33 = vsel %vm898_vm1, %v2700_v41, 0.0  ;;  %v2472_v51 = vadd.f32 1e-05, %v2408_v50  ;;  %v2377_v20 = vsub.f32 %v2313_v19, %v2345_v54  ;;  %v2374_v5 = vsub.f32 %v2310_v15, %v2342_v46 }
 0x408   : > { %2753 = vadd.xlane.f32.xlu1 %v2752_v33  ;;  %v2631_v31 = vadd.f32 %v2599_v11, %v5278_v18  ;;  %v2251_v9 = vpop.xlane.xlu0 %2250  ;;  %v2106_v42 = vpop.xlane.xlu1 %2105  ;;  %v2755_v63 = vsel %vm898_vm1, %v2701_v44, 0.0  ;;  %v2662_v49 = vmax.f32 %v2630_v8, 0.0  ;;  %v2532_v25 = vmul.f32 %v3336_v4, %v2436_v45 }
 0x409   : > { %3343 = vrsqrt.f32 %v2472_v51  ;;  %v2409_v55 = vmax.f32 %v2377_v20, 0.0  ;;  %v2406_v35 = vmax.f32 %v2374_v5, 0.0  ;;  %v2311_v12 = vmul.f32 0.03125, %v2251_v9  ;;  %2756 = vadd.xlane.f32.xlu0 %v2755_v63 }
 0x40a   : > { %v3338_v10 = vpop.eup %3337  ;;  %v2698_v32 = vmul.f32 %v4710_v26, %v2662_v49  ;;  %v2663_v40 = vmax.f32 %v2631_v31, 0.0  ;;  %v2568_v36 = vmul.f32 %v4688_v14, %v2532_v25  ;;  %v4848_v46 = vmul.f32 0.03125, %v2106_v42 }
 0x40b   : > { %v2473_v23 = vadd.f32 1e-05, %v2409_v55  ;;  %v2375_v13 = vsub.f32 %v2311_v12, %v2343_v34  ;;  %v2533_v24 = vmul.f32 %v3338_v10, %v2437_v52  ;;  %v2470_v3 = vadd.f32 1e-05, %v2406_v35  ;;  %v3340_v21 = vpop.eup %3339 }
 0x40c   : > { %v2746_v58 = vsel %vm898_vm1, %v2698_v32, 0.0  ;;  %v2109_v27 = vpop.xlane.xlu0 %2108  ;;  %v2100_v30 = vpop.xlane.xlu1 %2099  ;;  %v2699_v45 = vmul.f32 %v4710_v26, %v2663_v40  ;;  %v2434_v7 = vsub.f32 %v4501_v6, %v4765_v60  ;;  %v2604_v61 = vadd.f32 %v4695_v43, %v2568_v36 }
 0x40d   : > { %3345 = vrsqrt.f32 %v2473_v23  ;;  %v2407_v54 = vmax.f32 %v2375_v13, 0.0  ;;  %2747 = vadd.xlane.f32.xlu1 %v2746_v58  ;;  %v2569_v41 = vmul.f32 %v4688_v14, %v2533_v24  ;;  %v2435_v47 = vsub.f32 %v4510_v29, %v4779_v22 }
 0x40e   : > { %v2749_v0 = vsel %vm898_vm1, %v2699_v45, 0.0  ;;  %v4857_v50 = vmul.f32 0.03125, %v2109_v27  ;;  %v4859_v19 = vmul.f32 0.03125, %v2100_v30  ;;  %3347 = vrsqrt.f32 %v2470_v3 }
 0x40f   : > { %v3342_v57 = vpop.eup %3341  ;;  %v2471_v39 = vadd.f32 1e-05, %v2407_v54  ;;  %2750 = vadd.xlane.f32.xlu0 %v2749_v0  ;;  %v5279_v6 = vmax.f32 %v4128_v48, 0.0  ;;  %v2605_v4 = vadd.f32 %v4695_v43, %v2569_v41  ;;  %v2530_v52 = vmul.f32 %v3340_v21, %v2434_v7 }
 0x410   : > { %v2103_v15 = vpop.xlane.xlu0 %2102  ;;  %v2266_v11 = vpop.xlane.xlu1 %2265  ;;  %v2348_v33 = vmul.f32 %v4848_v46, %v4848_v46  ;;  %v2531_v22 = vmul.f32 %v3342_v57, %v2435_v47  ;;  %v2440_v44 = vsub.f32 %v4530_v53, %v4800_v28  ;;  %v5280_v8 = vmax.f32 %v4119_v56, 0.0 }
 0x411   : > { %v2636_v60 = vadd.f32 %v2604_v61, %v5279_v6  ;;  %3349 = vrsqrt.f32 %v2471_v39  ;;  %v2316_v29 = vmul.f32 0.03125, %v2266_v11  ;;  %v2566_v20 = vmul.f32 %v4688_v14, %v2530_v52 }
 0x412   : > { %v2637_v51 = vadd.f32 %v2605_v4, %v5280_v8  ;;  %v2349_v48 = vmul.f32 %v4857_v50, %v4857_v50  ;;  %v2346_v5 = vmul.f32 %v4859_v19, %v4859_v19  ;;  %v2567_v31 = vmul.f32 %v4688_v14, %v2531_v22 }
 0x413   : > { %v2668_v38 = vmax.f32 %v2636_v60, 0.0  ;;  %v2380_v18 = vsub.f32 %v2316_v29, %v2348_v33  ;;  %v4876_v34 = vmul.f32 0.03125, %v2103_v15  ;;  %v2602_v56 = vadd.f32 %v4695_v43, %v2566_v20 }
 0x414   : > { %v2269_v9 = vpop.xlane.xlu0 %2268  ;;  %v2260_v42 = vpop.xlane.xlu1 %2259  ;;  %v2669_v28 = vmax.f32 %v2637_v51, 0.0  ;;  %v2603_v55 = vadd.f32 %v4695_v43, %v2567_v31  ;;  %v2441_v12 = vsub.f32 %v4539_v2, %v4809_v16  ;;  %v5281_v40 = vmax.f32 %v4123_v17, 0.0 }
 0x415   : > { %v2704_v53 = vmul.f32 %v4710_v26, %v2668_v38  ;;  %v2412_v63 = vmax.f32 %v2380_v18, 0.0  ;;  %v2317_v49 = vmul.f32 0.03125, %v2269_v9  ;;  %v2314_v25 = vmul.f32 0.03125, %v2260_v42 }
 0x416   : > { %v3344_v35 = vpop.eup %3343  ;;  %v2705_v32 = vmul.f32 %v4710_v26, %v2669_v28  ;;  %v2634_v36 = vadd.f32 %v2602_v56, %v5281_v40  ;;  %v5282_v3 = vmax.f32 %v4133_v1, 0.0  ;;  %v2347_v27 = vmul.f32 %v4876_v34, %v4876_v34  ;;  %v5285_v28 = vld [vmem:[#allocation4_spill] sm:$0xff] }
 0x417   : > { %v2764_v10 = vsel %vm898_vm1, %v2704_v53, 0.0  ;;  %v2476_v23 = vadd.f32 1e-05, %v2412_v63  ;;  %v2381_v13 = vsub.f32 %v2317_v49, %v2349_v48  ;;  %v2378_v24 = vsub.f32 %v2314_v25, %v2346_v5  ;;  %v5284_v48 = vld [vmem:[#allocation19_spill] sm:$0xff] }
 0x418   : > { %2765 = vadd.xlane.f32.xlu1 %v2764_v10  ;;  %v2635_v58 = vadd.f32 %v2603_v55, %v5282_v3  ;;  %v2263_v30 = vpop.xlane.xlu0 %2262  ;;  %v2767_v2 = vsel %vm898_vm1, %v2705_v32, 0.0  ;;  %v2666_v16 = vmax.f32 %v2634_v36, 0.0  ;;  %v2536_v21 = vmul.f32 %v3344_v35, %v2440_v44  ;;  %v5283_v44 = vld [vmem:[#allocation18_spill] sm:$0xff]  ;;  %v5287_v35 = vld [vmem:[#allocation20_spill] sm:$0xff] }
 0x419   : > { %v2118_v45 = vpop.xlane.xlu1 %2117  ;;  %3351 = vrsqrt.f32 %v2476_v23  ;;  %v2413_v54 = vmax.f32 %v2381_v13, 0.0  ;;  %v2410_v17 = vmax.f32 %v2378_v24, 0.0  ;;  %v2315_v57 = vmul.f32 0.03125, %v2263_v30  ;;  %2768 = vadd.xlane.f32.xlu0 %v2767_v2  ;;  %v5288_v32 = vld [vmem:[#allocation2_spill] sm:$0xff] }
 0x41a   : > { %v3346_v7 = vpop.eup %3345  ;;  %v2702_v0 = vmul.f32 %v4710_v26, %v2666_v16  ;;  %v2667_v61 = vmax.f32 %v2635_v58, 0.0  ;;  %v2572_v1 = vmul.f32 %v4688_v14, %v2536_v21  ;;  %v4896_v29 = vmul.f32 0.03125, %v2118_v45 }
 0x41b   : > { %v2477_v41 = vadd.f32 1e-05, %v2413_v54  ;;  %v2379_v47 = vsub.f32 %v2315_v57, %v2347_v27  ;;  %v2537_v39 = vmul.f32 %v3346_v7, %v2441_v12  ;;  %v2474_v15 = vadd.f32 1e-05, %v2410_v17  ;;  %v3348_v52 = vpop.eup %3347 }
 0x41c   : > { %v2758_v11 = vsel %vm898_vm1, %v2702_v0, 0.0  ;;  %v2703_v4 = vmul.f32 %v4710_v26, %v2667_v61  ;;  %v2438_v38 = vsub.f32 %v5283_v44, %v4811_v37  ;;  %v2608_v51 = vadd.f32 %v4695_v43, %v2572_v1  ;;  %v5290_v0 = vld [vmem:[#allocation22_spill] sm:$0xff] }
 0x41d   : > { %v2121_v6 = vpop.xlane.xlu0 %2120  ;;  %v2112_v60 = vpop.xlane.xlu1 %2111  ;;  %3353 = vrsqrt.f32 %v2477_v41  ;;  %v2411_v33 = vmax.f32 %v2379_v47, 0.0  ;;  %2759 = vadd.xlane.f32.xlu1 %v2758_v11  ;;  %v2573_v20 = vmul.f32 %v4688_v14, %v2537_v39  ;;  %v2439_v5 = vsub.f32 %v5284_v48, %v4828_v59  ;;  %v5291_v47 = vld [vmem:[#allocation3_spill] sm:$0xff] }
 0x41e   : > { %v3350_v22 = vpop.eup %3349  ;;  %v2761_v8 = vsel %vm898_vm1, %v2703_v4, 0.0  ;;  %v4905_v31 = vmul.f32 0.03125, %v2121_v6  ;;  %v4907_v9 = vmul.f32 0.03125, %v2112_v60  ;;  %3355 = vrsqrt.f32 %v2474_v15  ;;  %v5293_v4 = vld [vmem:[#allocation5_spill] sm:$0xff] }
 0x41f   : > { %v2475_v18 = vadd.f32 1e-05, %v2411_v33  ;;  %2762 = vadd.xlane.f32.xlu0 %v2761_v8  ;;  %v5286_v37 = vmax.f32 %v5285_v28, 0.0  ;;  %v2609_v63 = vadd.f32 %v4695_v43, %v2573_v20  ;;  %v2534_v49 = vmul.f32 %v3348_v52, %v2438_v38 }
 0x420   : > { %v2352_v25 = vmul.f32 %v4896_v29, %v4896_v29  ;;  %v2535_v55 = vmul.f32 %v3350_v22, %v2439_v5  ;;  %v2444_v12 = vsub.f32 %v5287_v35, %v4848_v46  ;;  %v5289_v40 = vmax.f32 %v5288_v32, 0.0 }
 0x421   : > { %v2115_v42 = vpop.xlane.xlu0 %2114  ;;  %v2278_v53 = vpop.xlane.xlu1 %2277  ;;  %v2640_v56 = vadd.f32 %v2608_v51, %v5286_v37  ;;  %3357 = vrsqrt.f32 %v2475_v18  ;;  %v2570_v23 = vmul.f32 %v4688_v14, %v2534_v49  ;;  %v2353_v13 = vmul.f32 %v4905_v31, %v4905_v31 }
 0x422   : > { %v2320_v59 = vmul.f32 0.03125, %v2278_v53  ;;  %v2641_v36 = vadd.f32 %v2609_v63, %v5289_v40  ;;  %v2350_v24 = vmul.f32 %v4907_v9, %v4907_v9  ;;  %v2571_v58 = vmul.f32 %v4688_v14, %v2535_v55 }
 0x423   : > { %v2672_v10 = vmax.f32 %v2640_v56, 0.0  ;;  %v4924_v27 = vmul.f32 0.03125, %v2115_v42  ;;  %v2606_v16 = vadd.f32 %v4695_v43, %v2570_v23  ;;  %v2445_v61 = vsub.f32 %v5290_v0, %v4857_v50 }
 0x424   : > { %v2384_v3 = vsub.f32 %v2320_v59, %v2352_v25  ;;  %v2673_v2 = vmax.f32 %v2641_v36, 0.0  ;;  %v2607_v57 = vadd.f32 %v4695_v43, %v2571_v58  ;;  %v5292_v39 = vmax.f32 %v5291_v47, 0.0  ;;  %v5296_v58 = vld [vmem:[#allocation23_spill] sm:$0xff] }
 0x425   : > { %v2281_v30 = vpop.xlane.xlu0 %2280  ;;  %v2272_v45 = vpop.xlane.xlu1 %2271  ;;  %v2708_v46 = vmul.f32 %v4710_v26, %v2672_v10  ;;  %v5294_v52 = vmax.f32 %v5293_v4, 0.0  ;;  %v2351_v22 = vmul.f32 %v4924_v27, %v4924_v27  ;;  %v5295_v10 = vld [vmem:[#allocation21_spill] sm:$0xff] }
 0x426   : > { %v2416_v21 = vmax.f32 %v2384_v3, 0.0  ;;  %v2321_v54 = vmul.f32 0.03125, %v2281_v30  ;;  %v2318_v17 = vmul.f32 0.03125, %v2272_v45  ;;  %v3352_v7 = vpop.eup %3351  ;;  %v2709_v41 = vmul.f32 %v4710_v26, %v2673_v2 }
 0x427   : > { %v2776_v1 = vsel %vm898_vm1, %v2708_v46, 0.0  ;;  %v2638_v15 = vadd.f32 %v2606_v16, %v5292_v39  ;;  %v2639_v33 = vadd.f32 %v2607_v57, %v5294_v52  ;;  %v2540_v51 = vmul.f32 %v3352_v7, %v2444_v12  ;;  %v5300_v39 = vld [vmem:[#allocation6_spill] sm:$0xff] }
 0x428   : > { %v2480_v11 = vadd.f32 1e-05, %v2416_v21  ;;  %v2385_v6 = vsub.f32 %v2321_v54, %v2353_v13  ;;  %v2382_v60 = vsub.f32 %v2318_v17, %v2350_v24  ;;  %2777 = vadd.xlane.f32.xlu1 %v2776_v1  ;;  %v2779_v50 = vsel %vm898_vm1, %v2709_v41, 0.0  ;;  %v5297_v21 = vld [vmem:[#allocation8_spill] sm:$0xff] }
 0x429   : > { %v2275_v44 = vpop.xlane.xlu0 %2274  ;;  %v2130_v38 = vpop.xlane.xlu1 %2129  ;;  %v2670_v8 = vmax.f32 %v2638_v15, 0.0  ;;  %2780 = vadd.xlane.f32.xlu0 %v2779_v50  ;;  %v2671_v53 = vmax.f32 %v2639_v33, 0.0  ;;  %v2576_v28 = vmul.f32 %v4688_v14, %v2540_v51  ;;  %v2442_v32 = vsub.f32 %v5295_v10, %v4859_v19  ;;  %v5299_v1 = vld [vmem:[#allocation24_spill] sm:$0xff] }
 0x42a   : > { %3359 = vrsqrt.f32 %v2480_v11  ;;  %v2417_v20 = vmax.f32 %v2385_v6, 0.0  ;;  %v2414_v48 = vmax.f32 %v2382_v60, 0.0  ;;  %v2319_v5 = vmul.f32 0.03125, %v2275_v44  ;;  %v3354_v18 = vpop.eup %3353 }
 0x42b   : > { %v2706_v42 = vmul.f32 %v4710_v26, %v2670_v8  ;;  %v2541_v49 = vmul.f32 %v3354_v18, %v2445_v61  ;;  %v2707_v55 = vmul.f32 %v4710_v26, %v2671_v53  ;;  %v3356_v12 = vpop.eup %3355  ;;  %v2612_v24 = vadd.f32 %v4695_v43, %v2576_v28 }
 0x42c   : > { %v2481_v37 = vadd.f32 1e-05, %v2417_v20  ;;  %v2478_v56 = vadd.f32 1e-05, %v2414_v48  ;;  %v2383_v63 = vsub.f32 %v2319_v5, %v2351_v22  ;;  %v2443_v30 = vsub.f32 %v5296_v58, %v4876_v34 }
 0x42d   : > { %v2770_v25 = vsel %vm898_vm1, %v2706_v42, 0.0  ;;  %v2133_v59 = vpop.xlane.xlu0 %2132  ;;  %v2124_v35 = vpop.xlane.xlu1 %2123  ;;  %v2773_v13 = vsel %vm898_vm1, %v2707_v55, 0.0  ;;  %v2577_v3 = vmul.f32 %v4688_v14, %v2541_v49  ;;  %v4953_v46 = vmul.f32 0.03125, %v2130_v38  ;;  %v5302_v42 = vld [vmem:[#allocation26_spill] sm:$0xff] }
 0x42e   : > { %3361 = vrsqrt.f32 %v2481_v37  ;;  %v2415_v40 = vmax.f32 %v2383_v63, 0.0  ;;  %2771 = vadd.xlane.f32.xlu1 %v2770_v25  ;;  %v4946_v36 = vmul.f32 0.03125, %v2124_v35  ;;  %v3358_v23 = vpop.eup %3357  ;;  %2774 = vadd.xlane.f32.xlu0 %v2773_v13  ;;  %v5298_v54 = vmax.f32 %v5297_v21, 0.0  ;;  %v5305_v35 = vld [vmem:[#allocation9_spill] sm:$0xff] }
 0x42f   : > { %3363 = vrsqrt.f32 %v2478_v56  ;;  %v2613_v57 = vadd.f32 %v4695_v43, %v2577_v3  ;;  %v2538_v7 = vmul.f32 %v3356_v12, %v2442_v32  ;;  %v2539_v34 = vmul.f32 %v3358_v23, %v2443_v30  ;;  %v5303_v56 = vld [vmem:[#allocation7_spill] sm:$0xff] }
 0x430   : > { %v2479_v45 = vadd.f32 1e-05, %v2415_v40  ;;  %v2354_v19 = vmul.f32 %v4946_v36, %v4946_v36  ;;  %v2644_v17 = vadd.f32 %v2612_v24, %v5298_v54  ;;  %v2448_v41 = vsub.f32 %v5299_v1, %v4896_v29 }
 0x431   : > { %v2127_v2 = vpop.xlane.xlu0 %2126  ;;  %v2284_v16 = vpop.xlane.xlu1 %2283  ;;  %v5301_v15 = vmax.f32 %v5300_v39, 0.0  ;;  %v2574_v6 = vmul.f32 %v4688_v14, %v2538_v7  ;;  %v2356_v60 = vmul.f32 %v4953_v46, %v4953_v46  ;;  %v4969_v4 = vmul.f32 0.03125, %v2133_v59  ;;  %v5308_v39 = vld [vmem:[#allocation27_spill] sm:$0xff] }
 0x432   : > { %3365 = vrsqrt.f32 %v2479_v45  ;;  %v4960_v0 = vmul.f32 0.03125, %v2127_v2  ;;  %v2322_v61 = vmul.f32 0.03125, %v2284_v16  ;;  %v2676_v47 = vmax.f32 %v2644_v17, 0.0  ;;  %v5307_v45 = vld [vmem:[#allocation25_spill] sm:$0xff] }
 0x433   : > { %v2645_v11 = vadd.f32 %v2613_v57, %v5301_v15  ;;  %v2575_v33 = vmul.f32 %v4688_v14, %v2539_v34  ;;  %v2610_v8 = vadd.f32 %v4695_v43, %v2574_v6  ;;  %v2449_v53 = vsub.f32 %v5302_v42, %v4905_v31  ;;  %v5313_v42 = vld [vmem:[#allocation11_spill] sm:$0xff] }
 0x434   : > { %v2386_v52 = vsub.f32 %v2322_v61, %v2354_v19  ;;  %v2355_v22 = vmul.f32 %v4960_v0, %v4960_v0  ;;  %v2712_v29 = vmul.f32 %v4710_v26, %v2676_v47  ;;  %v5304_v63 = vmax.f32 %v5303_v56, 0.0 }
 0x435   : > { %v2287_v44 = vpop.xlane.xlu0 %2286  ;;  %v2290_v38 = vpop.xlane.xlu1 %2289  ;;  %v2677_v50 = vmax.f32 %v2645_v11, 0.0  ;;  %v2611_v5 = vadd.f32 %v4695_v43, %v2575_v33  ;;  %v5306_v12 = vmax.f32 %v5305_v35, 0.0  ;;  %v2357_v32 = vmul.f32 %v4969_v4, %v4969_v4  ;;  %v5316_v35 = vld [vmem:[#allocation13_spill] sm:$0xff] }
 0x436   : > { %v2418_v51 = vmax.f32 %v2386_v52, 0.0  ;;  %v2323_v20 = vmul.f32 0.03125, %v2287_v44  ;;  %v2324_v48 = vmul.f32 0.03125, %v2290_v38  ;;  %v2788_v28 = vsel %vm898_vm1, %v2712_v29, 0.0  ;;  %v5309_v52 = vld [vmem:[#allocation12_spill] sm:$0xff] }
 0x437   : > { %v3360_v18 = vpop.eup %3359  ;;  %v2713_v37 = vmul.f32 %v4710_v26, %v2677_v50  ;;  %v2642_v49 = vadd.f32 %v2610_v8, %v5304_v63  ;;  %2789 = vadd.xlane.f32.xlu1 %v2788_v28  ;;  %v2643_v10 = vadd.f32 %v2611_v5, %v5306_v12  ;;  %v2446_v19 = vsub.f32 %v5307_v45, %v4907_v9 }
 0x438   : > { %v2482_v25 = vadd.f32 1e-05, %v2418_v51  ;;  %v2387_v59 = vsub.f32 %v2323_v20, %v2355_v22  ;;  %v2388_v55 = vsub.f32 %v2324_v48, %v2356_v60  ;;  %v2544_v13 = vmul.f32 %v3360_v18, %v2448_v41  ;;  %v5311_v51 = vld [vmem:[#allocation10_spill] sm:$0xff] }
 0x439   : > { %v2791_v40 = vsel %vm898_vm1, %v2713_v37, 0.0  ;;  %v2293_v31 = vpop.xlane.xlu0 %2292  ;;  %v2674_v23 = vmax.f32 %v2642_v49, 0.0  ;;  %v2675_v16 = vmax.f32 %v2643_v10, 0.0  ;;  %v2447_v9 = vsub.f32 %v5308_v39, %v4924_v27 }
 0x43a   : > { %3367 = vrsqrt.f32 %v2482_v25  ;;  %v2419_v24 = vmax.f32 %v2387_v59, 0.0  ;;  %v2420_v3 = vmax.f32 %v2388_v55, 0.0  ;;  %2792 = vadd.xlane.f32.xlu0 %v2791_v40  ;;  %v2325_v58 = vmul.f32 0.03125, %v2293_v31  ;;  %v5315_v25 = vld [vmem:[#allocation29_spill] sm:$0xff] }
 0x43b   : > { %v3362_v30 = vpop.eup %3361  ;;  %v2710_v2 = vmul.f32 %v4710_v26, %v2674_v23  ;;  %v2580_v21 = vmul.f32 %v4688_v14, %v2544_v13  ;;  %v2711_v1 = vmul.f32 %v4710_v26, %v2675_v16  ;;  %v5310_v33 = vmax.f32 %v5309_v52, 0.0 }
 0x43c   : > { %v3364_v54 = vpop.eup %3363  ;;  %v2483_v17 = vadd.f32 1e-05, %v2419_v24  ;;  %v2484_v57 = vadd.f32 1e-05, %v2420_v3  ;;  %v2389_v7 = vsub.f32 %v2325_v58, %v2357_v32  ;;  %v2545_v61 = vmul.f32 %v3362_v30, %v2449_v53  ;;  %v5318_v3 = vld [vmem:[#allocation31_spill] sm:$0xff] }
 0x43d   : > { %v2782_v34 = vsel %vm898_vm1, %v2710_v2, 0.0  ;;  %v2616_v41 = vadd.f32 %v4695_v43, %v2580_v21  ;;  %v2542_v47 = vmul.f32 %v3364_v54, %v2446_v19  ;;  %v2785_v60 = vsel %vm898_vm1, %v2711_v1, 0.0  ;;  %v5319_v19 = vld [vmem:[#allocation28_spill] sm:$0xff] }
 0x43e   : > { %3369 = vrsqrt.f32 %v2483_v17  ;;  %v2421_v15 = vmax.f32 %v2389_v7, 0.0  ;;  %2783 = vadd.xlane.f32.xlu1 %v2782_v34  ;;  %v2581_v11 = vmul.f32 %v4688_v14, %v2545_v61  ;;  %2786 = vadd.xlane.f32.xlu0 %v2785_v60  ;;  %v5312_v20 = vmax.f32 %v5311_v51, 0.0  ;;  %v5320_v7 = vld [vmem:[#allocation30_spill] sm:$0xff]  ;;  %v5323_v60 = vld [vmem:[#allocation15_spill] sm:$0xff] }
 0x43f   : > { %v3366_v6 = vpop.eup %3365  ;;  %3371 = vrsqrt.f32 %v2484_v57  ;;  %v2648_v22 = vadd.f32 %v2616_v41, %v5310_v33  ;;  %v2578_v44 = vmul.f32 %v4688_v14, %v2542_v47  ;;  %v5314_v53 = vmax.f32 %v5313_v42, 0.0  ;;  %v5321_v61 = vld [vmem:[#allocation14_spill] sm:$0xff] }
 0x440   : > { %v2485_v29 = vadd.f32 1e-05, %v2421_v15  ;;  %v2617_v38 = vadd.f32 %v4695_v43, %v2581_v11  ;;  %v2543_v50 = vmul.f32 %v3366_v6, %v2447_v9  ;;  %v2450_v59 = vsub.f32 %v5315_v25, %v4946_v36 }
 0x441   : > { %v2680_v27 = vmax.f32 %v2648_v22, 0.0  ;;  %v2614_v8 = vadd.f32 %v4695_v43, %v2578_v44  ;;  %v5317_v12 = vmax.f32 %v5316_v35, 0.0  ;;  %v2451_v58 = vsub.f32 %v5318_v3, %v4960_v0  ;;  %v5325_v22 = vld [vmem:[#allocation16_spill] sm:$0xff] }
 0x442   : > { %3373 = vrsqrt.f32 %v2485_v29  ;;  %v2649_v48 = vadd.f32 %v2617_v38, %v5312_v20  ;;  %v2579_v5 = vmul.f32 %v4688_v14, %v2543_v50  ;;  %v2452_v2 = vsub.f32 %v5319_v19, %v4953_v46  ;;  %v5327_v20 = vld [vmem:[#allocation17_spill] sm:$0xff] }
 0x443   : > { %v2716_v18 = vmul.f32 %v4710_v26, %v2680_v27  ;;  %v2646_v28 = vadd.f32 %v2614_v8, %v5314_v53  ;;  %v2453_v0 = vsub.f32 %v5320_v7, %v4969_v4  ;;  %v5322_v34 = vmax.f32 %v5321_v61, 0.0 }
 0x444   : > { %v2681_v37 = vmax.f32 %v2649_v48, 0.0  ;;  %v2615_v56 = vadd.f32 %v4695_v43, %v2579_v5  ;;  %v5324_v52 = vmax.f32 %v5323_v60, 0.0  ;;  %v5326_v44 = vmax.f32 %v5325_v22, 0.0 }
 0x445   : > { %v2800_v63 = vsel %vm898_vm1, %v2716_v18, 0.0  ;;  %v2678_v49 = vmax.f32 %v2646_v28, 0.0  ;;  %v5328_v48 = vmax.f32 %v5327_v20, 0.0 }
 0x446   : > { %2801 = vadd.xlane.f32.xlu1 %v2800_v63  ;;  %v2717_v55 = vmul.f32 %v4710_v26, %v2681_v37  ;;  %v2647_v10 = vadd.f32 %v2615_v56, %v5317_v12  ;;  %v3376_v37 = vld [vmem:[%s5170_s5 + $0x8] sm:$0x3]  ;;  %v5329_v56 = vsub.s32 1, %v3523_v62 }
 0x447   : > { %v3368_v32 = vpop.eup %3367  ;;  %v2714_v40 = vmul.f32 %v4710_v26, %v2678_v49 }
 0x448   : > { %v2803_v31 = vsel %vm898_vm1, %v2717_v55, 0.0  ;;  %v2679_v23 = vmax.f32 %v2647_v10, 0.0  ;;  %v2546_v13 = vmul.f32 %v3368_v32, %v2450_v59  ;;  %v5057_v63 = vrot.slane %v3376_v37, %v5329_v56 }
 0x449   : > { %2804 = vadd.xlane.f32.xlu0 %v2803_v31  ;;  %v2794_v24 = vsel %vm898_vm1, %v2714_v40, 0.0 }
 0x44a   : > { %2795 = vadd.xlane.f32.xlu1 %v2794_v24  ;;  %v2715_v36 = vmul.f32 %v4710_v26, %v2679_v23  ;;  %v2582_v30 = vmul.f32 %v4688_v14, %v2546_v13 }
 0x44b   : > { %v3370_v45 = vpop.eup %3369 }
 0x44c   : > { %v3372_v16 = vpop.eup %3371  ;;  %v2797_v21 = vsel %vm898_vm1, %v2715_v36, 0.0  ;;  %v2618_v54 = vadd.f32 %v4695_v43, %v2582_v30  ;;  %v2547_v17 = vmul.f32 %v3370_v45, %v2451_v58 }
 0x44d   : > { %2798 = vadd.xlane.f32.xlu0 %v2797_v21  ;;  %v2548_v57 = vmul.f32 %v3372_v16, %v2452_v2 }
 0x44e   : > { %v2650_v1 = vadd.f32 %v2618_v54, %v5322_v34  ;;  %v2583_v41 = vmul.f32 %v4688_v14, %v2547_v17 }
 0x44f   : > { %v3374_v47 = vpop.eup %3373  ;;  %v2584_v39 = vmul.f32 %v4688_v14, %v2548_v57 }
 0x450   : > { %v2682_v46 = vmax.f32 %v2650_v1, 0.0  ;;  %v2619_v9 = vadd.f32 %v4695_v43, %v2583_v41  ;;  %v2549_v15 = vmul.f32 %v3374_v47, %v2453_v0 }
 0x451   : > { %v2620_v11 = vadd.f32 %v4695_v43, %v2584_v39 }
 0x452   : > { %v2718_v6 = vmul.f32 %v4710_v26, %v2682_v46  ;;  %v2651_v33 = vadd.f32 %v2619_v9, %v5324_v52  ;;  %v2585_v4 = vmul.f32 %v4688_v14, %v2549_v15 }
 0x453   : > { %v2652_v29 = vadd.f32 %v2620_v11, %v5326_v44 }
 0x454   : > { %v2806_v38 = vsel %vm898_vm1, %v2718_v6, 0.0  ;;  %v2683_v50 = vmax.f32 %v2651_v33, 0.0  ;;  %v2621_v27 = vadd.f32 %v4695_v43, %v2585_v4 }
 0x455   : > { %2807 = vadd.xlane.f32.xlu1 %v2806_v38  ;;  %v2684_v8 = vmax.f32 %v2652_v29, 0.0 }
 0x456   : > { %v2719_v51 = vmul.f32 %v4710_v26, %v2683_v50  ;;  %v2653_v5 = vadd.f32 %v2621_v27, %v5328_v48 }
 0x457   : > { %v2720_v18 = vmul.f32 %v4710_v26, %v2684_v8 }
 0x458   : > { %v2809_v14 = vsel %vm898_vm1, %v2719_v51, 0.0  ;;  %v2685_v42 = vmax.f32 %v2653_v5, 0.0 }
 0x459   : > { %2810 = vadd.xlane.f32.xlu0 %v2809_v14  ;;  %v2812_v53 = vsel %vm898_vm1, %v2720_v18, 0.0 }
 0x45a   : > { %2813 = vadd.xlane.f32.xlu1 %v2812_v53  ;;  %v2721_v28 = vmul.f32 %v4710_v26, %v2685_v42 }
 0x45c   : > { %v2815_v43 = vsel %vm898_vm1, %v2721_v28, 0.0 }
 0x45d   : > { %2816 = vadd.xlane.f32.xlu0 %v2815_v43 }
 0x46e   : > { %v2730_v26 = vpop.xlane.xlu1 %2729 }
 0x46f   : > { %v2824_v49 = vadd.f32 %v5057_v63, %v2730_v26 }
 0x471   : > { %2857 = vst.msk [vmem:[%s5064_s13 + $0x10] sm:$0xff] %vm2854_vm2, %v2824_v49 }
 0x472   : > { %v2733_v62 = vpop.xlane.xlu0 %2732 }
 0x473   : > { %v2724_v25 = vpop.xlane.xlu1 %2723  ;;  %v2825_v59 = vadd.f32 %v5057_v63, %v2733_v62 }
 0x474   : > { %v2822_v55 = vadd.f32 %v5057_v63, %v2724_v25 }
 0x475   : > { %2858 = vst.msk [vmem:[%s5064_s13 + $0x18] sm:$0xff] %vm2854_vm2, %v2825_v59 }
 0x476   : > { %2855 = vst.msk [vmem:[%s5064_s13] sm:$0xff] %vm2854_vm2, %v2822_v55 }
 0x478   : > { %v2727_v35 = vpop.xlane.xlu0 %2726 }
 0x479   : > { %v2823_v12 = vadd.f32 %v5057_v63, %v2727_v35 }
 0x47b   : > { %2856 = vst.msk [vmem:[%s5064_s13 + $0x8] sm:$0xff] %vm2854_vm2, %v2823_v12 }
 0x47e   : > { %v2742_v10 = vpop.xlane.xlu1 %2741 }
 0x47f   : > { %v2828_v32 = vadd.f32 %v5057_v63, %v2742_v10 }
 0x481   : > { %2861 = vst.msk [vmem:[%s5064_s13 + $0x30] sm:$0xff] %vm2854_vm2, %v2828_v32 }
 0x482   : > { %v2745_v40 = vpop.xlane.xlu0 %2744 }
 0x483   : > { %v2829_v31 = vadd.f32 %v5057_v63, %v2745_v40 }
 0x485   : > { %2862 = vst.msk [vmem:[%s5064_s13 + $0x38] sm:$0xff] %vm2854_vm2, %v2829_v31 }
 0x487   : > { %v2736_v23 = vpop.xlane.xlu1 %2735 }
 0x488   : > { %v2826_v13 = vadd.f32 %v5057_v63, %v2736_v23  ;;  %v2739_v24 = vpop.xlane.xlu0 %2738 }
 0x489   : > { %v2827_v3 = vadd.f32 %v5057_v63, %v2739_v24 }
 0x48a   : > { %2859 = vst.msk [vmem:[%s5064_s13 + $0x20] sm:$0xff] %vm2854_vm2, %v2826_v13 }
 0x48b   : > { %2860 = vst.msk [vmem:[%s5064_s13 + $0x28] sm:$0xff] %vm2854_vm2, %v2827_v3 }
 0x491   : > { %v2754_v58 = vpop.xlane.xlu1 %2753 }
 0x492   : > { %v2832_v36 = vadd.f32 %v5057_v63, %v2754_v58  ;;  %v2757_v30 = vpop.xlane.xlu0 %2756 }
 0x493   : > { %v2833_v45 = vadd.f32 %v5057_v63, %v2757_v30 }
 0x494   : > { %2865 = vst.msk [vmem:[%s5064_s13 + $0x50] sm:$0xff] %vm2854_vm2, %v2832_v36 }
 0x495   : > { %2866 = vst.msk [vmem:[%s5064_s13 + $0x58] sm:$0xff] %vm2854_vm2, %v2833_v45 }
 0x496   : > { %v2748_v19 = vpop.xlane.xlu1 %2747 }
 0x497   : > { %v2830_v2 = vadd.f32 %v5057_v63, %v2748_v19 }
 0x498   : > { %v2751_v16 = vpop.xlane.xlu0 %2750 }
 0x499   : > { %2863 = vst.msk [vmem:[%s5064_s13 + $0x40] sm:$0xff] %vm2854_vm2, %v2830_v2  ;;  %v2831_v21 = vadd.f32 %v5057_v63, %v2751_v16 }
 0x49b   : > { %2864 = vst.msk [vmem:[%s5064_s13 + $0x48] sm:$0xff] %vm2854_vm2, %v2831_v21 }
 0x4a1   : > { %v2766_v54 = vpop.xlane.xlu1 %2765 }
 0x4a2   : > { %v2836_v17 = vadd.f32 %v5057_v63, %v2766_v54  ;;  %v2769_v57 = vpop.xlane.xlu0 %2768 }
 0x4a3   : > { %v2837_v7 = vadd.f32 %v5057_v63, %v2769_v57 }
 0x4a4   : > { %2869 = vst.msk [vmem:[%s5064_s13 + $0x70] sm:$0xff] %vm2854_vm2, %v2836_v17 }
 0x4a5   : > { %2870 = vst.msk [vmem:[%s5064_s13 + $0x78] sm:$0xff] %vm2854_vm2, %v2837_v7 }
 0x4a6   : > { %v2760_v0 = vpop.xlane.xlu1 %2759 }
 0x4a7   : > { %v2834_v61 = vadd.f32 %v5057_v63, %v2760_v0 }
 0x4a8   : > { %v2763_v34 = vpop.xlane.xlu0 %2762 }
 0x4a9   : > { %2867 = vst.msk [vmem:[%s5064_s13 + $0x60] sm:$0xff] %vm2854_vm2, %v2834_v61  ;;  %v2835_v1 = vadd.f32 %v5057_v63, %v2763_v34 }
 0x4ab   : > { %2868 = vst.msk [vmem:[%s5064_s13 + $0x68] sm:$0xff] %vm2854_vm2, %v2835_v1 }
 0x4b1   : > { %v2778_v41 = vpop.xlane.xlu1 %2777 }
 0x4b2   : > { %v2840_v47 = vadd.f32 %v5057_v63, %v2778_v41  ;;  %v2781_v39 = vpop.xlane.xlu0 %2780 }
 0x4b3   : > { %v2841_v46 = vadd.f32 %v5057_v63, %v2781_v39 }
 0x4b4   : > { %2873 = vst.msk [vmem:[%s5064_s13 + $0x90] sm:$0xff] %vm2854_vm2, %v2840_v47 }
 0x4b5   : > { %2874 = vst.msk [vmem:[%s5064_s13 + $0x98] sm:$0xff] %vm2854_vm2, %v2841_v46 }
 0x4b7   : > { %v2772_v9 = vpop.xlane.xlu1 %2771  ;;  %v2775_v11 = vpop.xlane.xlu0 %2774 }
 0x4b8   : > { %v2838_v15 = vadd.f32 %v5057_v63, %v2772_v9  ;;  %v2839_v6 = vadd.f32 %v5057_v63, %v2775_v11 }
 0x4ba   : > { %2871 = vst.msk [vmem:[%s5064_s13 + $0x80] sm:$0xff] %vm2854_vm2, %v2838_v15  ;;  %2872 = vst.msk [vmem:[%s5064_s13 + $0x88] sm:$0xff] %vm2854_vm2, %v2839_v6 }
 0x4c0   : > { %v2790_v60 = vpop.xlane.xlu1 %2789 }
 0x4c1   : > { %v2844_v52 = vadd.f32 %v5057_v63, %v2790_v60 }
 0x4c3   : > { %v2793_v33 = vpop.xlane.xlu0 %2792  ;;  %2877 = vst.msk [vmem:[%s5064_s13 + $0xb0] sm:$0xff] %vm2854_vm2, %v2844_v52 }
 0x4c4   : > { %v2845_v4 = vadd.f32 %v5057_v63, %v2793_v33 }
 0x4c6   : > { %2878 = vst.msk [vmem:[%s5064_s13 + $0xb8] sm:$0xff] %vm2854_vm2, %v2845_v4 }
 0x4c7   : > { %v2784_v22 = vpop.xlane.xlu1 %2783  ;;  %v2787_v29 = vpop.xlane.xlu0 %2786 }
 0x4c8   : > { %v2842_v44 = vadd.f32 %v5057_v63, %v2784_v22  ;;  %v2843_v38 = vadd.f32 %v5057_v63, %v2787_v29 }
 0x4ca   : > { %2875 = vst.msk [vmem:[%s5064_s13 + $0xa0] sm:$0xff] %vm2854_vm2, %v2842_v44  ;;  %2876 = vst.msk [vmem:[%s5064_s13 + $0xa8] sm:$0xff] %vm2854_vm2, %v2843_v38 }
 0x4cf   : > { %v2802_v50 = vpop.xlane.xlu1 %2801 }
 0x4d0   : > { %v2848_v27 = vadd.f32 %v5057_v63, %v2802_v50 }
 0x4d2   : > { %2881 = vst.msk [vmem:[%s5064_s13 + $0xd0] sm:$0xff] %vm2854_vm2, %v2848_v27  ;;  %v2805_v8 = vpop.xlane.xlu0 %2804 }
 0x4d3   : > { %v2849_v51 = vadd.f32 %v5057_v63, %v2805_v8  ;;  %v2796_v20 = vpop.xlane.xlu1 %2795 }
 0x4d4   : > { %v2846_v48 = vadd.f32 %v5057_v63, %v2796_v20 }
 0x4d5   : > { %2882 = vst.msk [vmem:[%s5064_s13 + $0xd8] sm:$0xff] %vm2854_vm2, %v2849_v51 }
 0x4d6   : > { %2879 = vst.msk [vmem:[%s5064_s13 + $0xc0] sm:$0xff] %vm2854_vm2, %v2846_v48  ;;  %v2799_v5 = vpop.xlane.xlu0 %2798 }
 0x4d7   : > { %v2847_v18 = vadd.f32 %v5057_v63, %v2799_v5 }
 0x4d9   : > { %2880 = vst.msk [vmem:[%s5064_s13 + $0xc8] sm:$0xff] %vm2854_vm2, %v2847_v18 }
 0x4de   : > { %v2808_v14 = vpop.xlane.xlu1 %2807 }
 0x4df   : > { %v2850_v42 = vadd.f32 %v5057_v63, %v2808_v14 }
 0x4e1   : > { %2883 = vst.msk [vmem:[%s5064_s13 + $0xe0] sm:$0xff] %vm2854_vm2, %v2850_v42 }
 0x4e2   : > { %v2811_v53 = vpop.xlane.xlu0 %2810 }
 0x4e3   : > { %v2851_v28 = vadd.f32 %v5057_v63, %v2811_v53  ;;  %v2814_v43 = vpop.xlane.xlu1 %2813 }
 0x4e4   : > { %v2852_v37 = vadd.f32 %v5057_v63, %v2814_v43 }
 0x4e5   : > { %2884 = vst.msk [vmem:[%s5064_s13 + $0xe8] sm:$0xff] %vm2854_vm2, %v2851_v28 }
 0x4e6   : > { %2885 = vst.msk [vmem:[%s5064_s13 + $0xf0] sm:$0xff] %vm2854_vm2, %v2852_v37  ;;  %v2817_v56 = vpop.xlane.xlu0 %2816 }
 0x4e7   : > { %v2853_v26 = vadd.f32 %v5057_v63, %v2817_v56 }
 0x4e9   : > { %2886 = vst.msk [vmem:[%s5064_s13 + $0xf8] sm:$0xff] %vm2854_vm2, %v2853_v26 }
 0x4ea PF: > { %s16_s21 = sadd.s32 1, %s3383_s21  }
 0x4eb   : > { %p13_p4 = scmp.ge.s32.totalorder %s16_s21, 6  }
 0x4ed   :  { %15 = sbr.rel (!%p13_p4) target bundleno = 1 (0x1), region = 77 }

</bundles_post_ra>
